<compile_context>
chip_gen: v5e
topology: v5e:2x2
jax: 0.10.0
libtpu: 0.0.40
codegen_flags: <defaults>
</compile_context>

<pallas_src>
import functools

import jax
import jax.numpy as jnp
from jax.experimental import pallas as pl
from jax.experimental.pallas import tpu as pltpu

IN_FEATURES = 4096
HIDDEN = 200
HIDDEN_PAD = 256          # next multiple of 128 >= 200
BN_EPS = 1e-5
MAX_TB = 512              # batch tile (multiple of 8); large tile -> better HBM efficiency


def _round_up(x, m):
    return ((x + m - 1) // m) * m


def mlp_kernel(x_ref, w1_ref, b1_ref, w2_ref, b2_ref, o_ref):
    # ---- Linear(4096 -> 200) with eval-mode BatchNorm folded in (bf16 MXU, f32 accumulate) ----
    x_bf = x_ref[...].astype(jnp.bfloat16)
    h = jnp.dot(x_bf, w1_ref[...], preferred_element_type=jnp.float32)
    h = h + b1_ref[...]                    # (1, HIDDEN_PAD) broadcast bias

    # ---- Dropout(0.1): identity in eval mode ----
    # TODO(synk): training-mode stochastic dropout (pltpu.prng_random_bits) not emitted.

    # ---- ReLU ----
    h = jnp.maximum(h, 0.0)

    # ---- Linear(200 -> class_num) ----
    out = jnp.dot(h.astype(jnp.bfloat16), w2_ref[...],
                  preferred_element_type=jnp.float32)
    o_ref[...] = out + b2_ref[...]


@functools.partial(jax.jit, static_argnames=("class_num",))
def conv_classifier_forward(z, params, class_num):
    """z: [B, 4096] float32. Returns logits [B, class_num] float32."""
    B = z.shape[0]
    w1, b1, w2, b2 = params
    class_pad = w2.shape[1]

    # Batch tiling: tile size up to MAX_TB, multiple of 8 (sublane); pad B to a tile multiple.
    b_pad = _round_up(B, 8)
    tb = min(MAX_TB, b_pad)
    b_pad = _round_up(b_pad, tb)
    if b_pad != B:
        z = jnp.pad(z, ((0, b_pad - B), (0, 0)))

    out = pl.pallas_call(
        mlp_kernel,
        out_shape=jax.ShapeDtypeStruct((b_pad, class_pad), jnp.float32),
        grid=(b_pad // tb,),
        in_specs=[
            pl.BlockSpec((tb, IN_FEATURES), lambda i: (i, 0)),          # x tile (pipelined)
            pl.BlockSpec((IN_FEATURES, HIDDEN_PAD), lambda i: (0, 0)),  # W1 (resident)
            pl.BlockSpec((1, HIDDEN_PAD), lambda i: (0, 0)),            # b1 (resident)
            pl.BlockSpec((HIDDEN_PAD, class_pad), lambda i: (0, 0)),    # W2 (resident)
            pl.BlockSpec((1, class_pad), lambda i: (0, 0)),             # b2 (resident)
        ],
        out_specs=pl.BlockSpec((tb, class_pad), lambda i: (i, 0)),
        compiler_params=pltpu.CompilerParams(
            dimension_semantics=("parallel",),     # shard batch tiles across v7x TCs
            vmem_limit_bytes=40 * 1024 * 1024,     # ~21 MiB needed; safe on v5e/v6e/v7x
        ),
    )(z, w1, b1, w2, b2)
    return out[:B, :class_num]


def init_params(key, class_num):
    """Deterministic synthetic parameters: PyTorch-shaped, BN folded, padded, bf16 weights."""
    class_pad = 128 * ((class_num + 127) // 128)
    k1, k2, k3, k4 = jax.random.split(key, 4)

    # PyTorch shapes: W1 [200, 4096], b1 [200], W2 [class_num, 200], b2 [class_num]
    w1_pt = jax.random.normal(k1, (HIDDEN, IN_FEATURES), jnp.float32) * 0.02
    b1_pt = jax.random.normal(k2, (HIDDEN,), jnp.float32) * 0.01
    w2_pt = jax.random.normal(k3, (class_num, HIDDEN), jnp.float32) * 0.05
    b2_pt = jax.random.normal(k4, (class_num,), jnp.float32) * 0.01

    # BatchNorm1d(200): fresh-init running stats / affine (eval mode).
    gamma = jnp.ones((HIDDEN,), jnp.float32)
    beta = jnp.zeros((HIDDEN,), jnp.float32)
    rmean = jnp.zeros((HIDDEN,), jnp.float32)
    rvar = jnp.ones((HIDDEN,), jnp.float32)

    # Fold eval-mode BatchNorm into the first Linear (all in f32).
    scale = gamma * jax.lax.rsqrt(rvar + BN_EPS)            # (200,)
    w1_fold = w1_pt.T * scale[None, :]                      # (4096, 200)
    b1_fold = (b1_pt - rmean) * scale + beta                # (200,)

    # Kernel layout: [in, out], lane-padded; matmul operands stored bf16, biases f32.
    w1 = (jnp.zeros((IN_FEATURES, HIDDEN_PAD), jnp.float32)
          .at[:, :HIDDEN].set(w1_fold)).astype(jnp.bfloat16)
    b1 = jnp.zeros((1, HIDDEN_PAD), jnp.float32).at[0, :HIDDEN].set(b1_fold)
    w2 = (jnp.zeros((HIDDEN_PAD, class_pad), jnp.float32)
          .at[:HIDDEN, :class_num].set(w2_pt.T)).astype(jnp.bfloat16)
    b2 = jnp.zeros((1, class_pad), jnp.float32).at[0, :class_num].set(b2_pt)

    return (w1, b1, w2, b2)


def reference_forward(z, params, class_num):
    """Pure-JAX reference with identical bf16-operand / f32-accumulate semantics."""
    w1, b1, w2, b2 = params
    h = jnp.dot(z.astype(jnp.bfloat16), w1, preferred_element_type=jnp.float32) + b1
    h = jnp.maximum(h, 0.0)
    out = jnp.dot(h.astype(jnp.bfloat16), w2, preferred_element_type=jnp.float32) + b2
    return out[:, :class_num]


if __name__ == "__main__":
    CLASS_NUM = 10
    key = jax.random.PRNGKey(0)
    k_param, k_x = jax.random.split(key)

    params = init_params(k_param, CLASS_NUM)
    z = jax.random.normal(k_x, (8, IN_FEATURES), jnp.float32)   # B=8, 4096 features

    out = conv_classifier_forward(z, params, class_num=CLASS_NUM)
    out = jax.block_until_ready(out)

    ref = reference_forward(z, params, CLASS_NUM)
    assert out.shape == (8, CLASS_NUM), out.shape
    assert jnp.allclose(out, ref, atol=2e-3, rtol=2e-3), "mismatch vs JAX reference"

    print("KERNEL_OK")
</pallas_src>

<mosaic_0001>
module attributes {stable_mosaic.version = 11 : i64} {
  func.func @mlp_kernel(%arg0: i32, %arg1: memref<8x4096xf32, #tpu.memory_space<vmem>>, %arg2: memref<4096x256xbf16, #tpu.memory_space<vmem>>, %arg3: memref<1x256xf32, #tpu.memory_space<vmem>>, %arg4: memref<256x128xbf16, #tpu.memory_space<vmem>>, %arg5: memref<1x128xf32, #tpu.memory_space<vmem>>, %arg6: memref<8x128xf32, #tpu.memory_space<vmem>>) attributes {dimension_semantics = [#tpu.dimension_semantics<parallel>], iteration_bounds = array<i64: 1>, scalar_prefetch = 0 : i64, scratch_operands = 0 : i64, tpu.core_type = #tpu.core_type<tc>, window_params = [{transform_indices = @transform_0, window_bounds = array<i64: 8, 4096>}, {pipeline_mode = #tpu.pipeline_mode<synchronous>, transform_indices = @transform_1, window_bounds = array<i64: 4096, 256>}, {pipeline_mode = #tpu.pipeline_mode<synchronous>, transform_indices = @transform_2, window_bounds = array<i64: 1, 256>}, {pipeline_mode = #tpu.pipeline_mode<synchronous>, transform_indices = @transform_3, window_bounds = array<i64: 256, 128>}, {pipeline_mode = #tpu.pipeline_mode<synchronous>, transform_indices = @transform_4, window_bounds = array<i64: 1, 128>}, {transform_indices = @transform_5, window_bounds = array<i64: 8, 128>}]} {
    %c0 = arith.constant 0 : index
    %c0_0 = arith.constant 0 : index
    %0 = vector.load %arg1[%c0, %c0_0] : memref<8x4096xf32, #tpu.memory_space<vmem>>, vector<8x4096xf32>
    %1 = arith.truncf %0 : vector<8x4096xf32> to vector<8x4096xbf16>
    %c0_1 = arith.constant 0 : index
    %c0_2 = arith.constant 0 : index
    %2 = vector.load %arg2[%c0_1, %c0_2] : memref<4096x256xbf16, #tpu.memory_space<vmem>>, vector<4096x256xbf16>
    %cst = arith.constant dense<0.000000e+00> : vector<8x256xf32>
    %3 = tpu.matmul %1, %2, %cst {dimension_numbers = #tpu.dot_dimension_numbers<[1], [0], [0], [1], [0, 0, 1, 1], [], []>} : vector<8x4096xbf16>, vector<4096x256xbf16>, vector<8x256xf32> -> vector<8x256xf32>
    %c0_3 = arith.constant 0 : index
    %c0_4 = arith.constant 0 : index
    %4 = vector.load %arg3[%c0_3, %c0_4] : memref<1x256xf32, #tpu.memory_space<vmem>>, vector<1x256xf32>
    %5 = vector.broadcast %4 : vector<1x256xf32> to vector<8x256xf32>
    %6 = arith.addf %3, %5 : vector<8x256xf32>
    %cst_5 = arith.constant 0.000000e+00 : f32
    %7 = vector.broadcast %cst_5 : f32 to vector<8x256xf32>
    %8 = arith.maximumf %6, %7 : vector<8x256xf32>
    %9 = arith.truncf %8 : vector<8x256xf32> to vector<8x256xbf16>
    %c0_6 = arith.constant 0 : index
    %c0_7 = arith.constant 0 : index
    %10 = vector.load %arg4[%c0_6, %c0_7] : memref<256x128xbf16, #tpu.memory_space<vmem>>, vector<256x128xbf16>
    %cst_8 = arith.constant dense<0.000000e+00> : vector<8x128xf32>
    %11 = tpu.matmul %9, %10, %cst_8 {dimension_numbers = #tpu.dot_dimension_numbers<[1], [0], [0], [1], [0, 0, 1, 1], [], []>} : vector<8x256xbf16>, vector<256x128xbf16>, vector<8x128xf32> -> vector<8x128xf32>
    %c0_9 = arith.constant 0 : index
    %c0_10 = arith.constant 0 : index
    %12 = vector.load %arg5[%c0_9, %c0_10] : memref<1x128xf32, #tpu.memory_space<vmem>>, vector<1x128xf32>
    %13 = vector.broadcast %12 : vector<1x128xf32> to vector<8x128xf32>
    %14 = arith.addf %11, %13 : vector<8x128xf32>
    %c0_11 = arith.constant 0 : index
    %c0_12 = arith.constant 0 : index
    %15 = vector.load %arg6[%c0_11, %c0_12] : memref<8x128xf32, #tpu.memory_space<vmem>>, vector<8x128xf32>
    tpu.vector_store %arg6[%c0_11, %c0_12], %14 {strides = array<i32>} : memref<8x128xf32, #tpu.memory_space<vmem>>, vector<8x128xf32>,
    return
  }
  func.func @transform_0(%arg0: i32) -> (i32, i32) {
    %c0_i32 = arith.constant 0 : i32
    %c0_i32_0 = arith.constant 0 : i32
    return %arg0, %c0_i32 : i32, i32
  }
  func.func @transform_1(%arg0: i32) -> (i32, i32) {
    %c0_i32 = arith.constant 0 : i32
    %c0_i32_0 = arith.constant 0 : i32
    %c0_i32_1 = arith.constant 0 : i32
    return %c0_i32, %c0_i32_0 : i32, i32
  }
  func.func @transform_2(%arg0: i32) -> (i32, i32) {
    %c0_i32 = arith.constant 0 : i32
    %c0_i32_0 = arith.constant 0 : i32
    %c0_i32_1 = arith.constant 0 : i32
    return %c0_i32, %c0_i32_0 : i32, i32
  }
  func.func @transform_3(%arg0: i32) -> (i32, i32) {
    %c0_i32 = arith.constant 0 : i32
    %c0_i32_0 = arith.constant 0 : i32
    %c0_i32_1 = arith.constant 0 : i32
    return %c0_i32, %c0_i32_0 : i32, i32
  }
  func.func @transform_4(%arg0: i32) -> (i32, i32) {
    %c0_i32 = arith.constant 0 : i32
    %c0_i32_0 = arith.constant 0 : i32
    %c0_i32_1 = arith.constant 0 : i32
    return %c0_i32, %c0_i32_0 : i32, i32
  }
  func.func @transform_5(%arg0: i32) -> (i32, i32) {
    %c0_i32 = arith.constant 0 : i32
    %c0_i32_0 = arith.constant 0 : i32
    return %arg0, %c0_i32 : i32, i32
  }
}

</mosaic_0001>

<bundles_post_ra>
// kernel: conv_classifier_forward.1
= control target key start
LH: loop header
LB: loop body
LE: loop exit
PB: predicated region body
PF: predicated region fallthrough
CT: control target
= control target key end

     0   :  { %10 = vsyncpa [#allocation3], 0  ;;  %s7269_s0 = inlined_call_operand.hbm [shape: f32[8,4096], index: 0, kind: input, shape index: {}]   ;;  %s7270_s1 = inlined_call_operand.hbm [shape: bf16[4096,256], index: 1, kind: input, shape index: {}]   ;;  %s7271_s2 = inlined_call_operand.hbm [shape: f32[1,256], index: 2, kind: input, shape index: {}]   ;;  %s7272_s3 = inlined_call_operand.hbm [shape: bf16[256,128], index: 3, kind: input, shape index: {}]   ;;  %s7273_s4 = inlined_call_operand.hbm [shape: f32[1,128], index: 4, kind: input, shape index: {}]   ;;  %s7274_s5 = inlined_call_operand.hbm [shape: f32[8,128], index: 5, kind: output, shape index: {}]  }
   0x1   :  { %11 = vsyncpa [#allocation6], 0 }
   0x2   :  { %12 = vsyncpa [#allocation9], 0  ;;  %s29_s20 = sshll.u32 %s7270_s1, 4  ;;  %s30_s20 = int_to_ptr.hbm [resolvable:$true] %s29_s20 }
   0x3   :  { %13 = vsyncpa [#allocation4], 0  ;;  %s7053_s21 = smov [#allocation5]   ;;  %s53_s25 = sshll.u32 %s7272_s3, 4  ;;  %s54_s25 = int_to_ptr.hbm [resolvable:$true] %s53_s25 }
   0x4   :  { %s31_s22 = sshll.u32 %s7053_s21, 4  ;;  %s7054_s26 = smov 128   ;;  %s32_s22 = int_to_ptr.vmem [resolvable:$true] %s31_s22 }
   0x5   :  { %s7055_s27 = smov 8   ;;  %s7056_s28 = smov [#allocation8]  }
   0x6   :  { %37 = dma.hbm_to_vmem [thread:$0]  %s30_s20, 65536, %s32_s22, [#allocation6], %s7054_s26, %s7054_s26, %s7055_s27  }
   0x7   :  { %s55_s29 = sshll.u32 %s7056_s28, 4  ;;  %s7057_s30 = smov 64   ;;  %s56_s29 = int_to_ptr.vmem [resolvable:$true] %s55_s29 }
   0x8   :  { %s7058_s6 = smov 4   ;;  %s19_s8 = sshll.u32 %s7269_s0, 4  ;;  %s20_s8 = int_to_ptr.hbm [resolvable:$true] %s19_s8 }
   0x9   :  { %61 = dma.hbm_to_vmem [thread:$0]  %s54_s25, 2048, %s56_s29, [#allocation9], %s7057_s30, %s7057_s30, %s7058_s6  }
   0xa   :  { %s7059_s9 = smov [#allocation2]   ;;  %s43_s12 = sshll.u32 %s7271_s2, 4  ;;  %s44_s12 = int_to_ptr.hbm [resolvable:$true] %s43_s12 }
   0xb   :  { %s21_s10 = sshll.u32 %s7059_s9, 4  ;;  %s7060_s13 = smov [#allocation7]   ;;  %s22_s10 = int_to_ptr.vmem [resolvable:$true] %s21_s10 }
   0xc   :  { %24 = dma.hbm_to_vmem [thread:$0]  %s20_s8, 4096, %s22_s10, [#allocation3]  }
   0xd   :  { %s45_s14 = sshll.u32 %s7060_s13, 4  ;;  %s67_s17 = sshll.u32 %s7273_s4, 4  ;;  %s46_s14 = int_to_ptr.vmem [resolvable:$true] %s45_s14  ;;  %s68_s17 = int_to_ptr.hbm [resolvable:$true] %s67_s17 }
   0xe   :  { %48 = dma.hbm_to_vmem [thread:$0]  %s44_s12, 32, %s46_s14, [#allocation6]  }
   0xf   :  { %s7061_s0 = smov [#allocation10]  }
  0x10   :  { %s69_s18 = sshll.u32 %s7061_s0, 4  ;;  %s70_s18 = int_to_ptr.vmem [resolvable:$true] %s69_s18 }
  0x11   :  { %72 = dma.hbm_to_vmem [thread:$0]  %s68_s17, 16, %s70_s18, [#allocation9]  }
  0x12   :  { %7045 = dma.done.wait [#allocation3], 4096  }
  0x13   :  { %7046 = vsyncadd [#allocation3], 4294963200 }
  0x14   :  { %7047 = dma.done.wait [#allocation6], 65568  }
  0x15   :  { %7048 = vsyncadd [#allocation6], 4294901728 }
  0x16   :  { %7049 = dma.done.wait [#allocation9], 2064  }
  0x17   :  { %7050 = vsyncadd [#allocation9], 4294965232  ;;  %v4307_v0 = vld [vmem:[#allocation5 + $0x70] sm:$0xf]  ;;  %v6376_v1 = vld [vmem:[#allocation5 + $0x74] sm:$0xf0] }
  0x18   :  { %v4371_v2 = vld [vmem:[#allocation5 + $0xf0] sm:$0xf]  ;;  %v4308_v3 = vor.u32 %v6376_v1, %v4307_v0  ;;  %v6392_v4 = vld [vmem:[#allocation5 + $0xf4] sm:$0xf0]  ;;  %v4299_v11 = vld [vmem:[#allocation5 + $0x60] sm:$0xf] }
  0x19   :  { %v4435_v5 = vld [vmem:[#allocation5 + $0x170] sm:$0xf]  ;;  %v6408_v6 = vld [vmem:[#allocation5 + $0x174] sm:$0xf0]  ;;  %v4372_v7 = vor.u32 %v6392_v4, %v4371_v2  ;;  %v6374_v13 = vld [vmem:[#allocation5 + $0x64] sm:$0xf0] }
  0x1a   :  { %v4436_v8 = vor.u32 %v6408_v6, %v4435_v5  ;;  %v4499_v9 = vld [vmem:[#allocation5 + $0x1f0] sm:$0xf]  ;;  %v6424_v10 = vld [vmem:[#allocation5 + $0x1f4] sm:$0xf0]  ;;  %3235 = vmatpush.bf16.msra.mxu0 %v4308_v3  ;;  %v4363_v14 = vld [vmem:[#allocation5 + $0xe0] sm:$0xf]  ;;  %v4300_v16 = vor.u32 %v6374_v13, %v4299_v11 }
  0x1b   :  { %v4500_v12 = vor.u32 %v6424_v10, %v4499_v9  ;;  %v6390_v15 = vld [vmem:[#allocation5 + $0xe4] sm:$0xf0]  ;;  %3248 = vmatpush.bf16.msra.mxu1 %v4372_v7  ;;  %v4427_v18 = vld [vmem:[#allocation5 + $0x160] sm:$0xf]  ;;  %v4291_v23 = vld [vmem:[#allocation5 + $0x50] sm:$0xf] }
  0x1c   :  { %3261 = vmatpush.bf16.msra.mxu2 %v4436_v8  ;;  %v4364_v17 = vor.u32 %v6390_v15, %v4363_v14  ;;  %v6406_v19 = vld [vmem:[#allocation5 + $0x164] sm:$0xf0]  ;;  %v4491_v20 = vld [vmem:[#allocation5 + $0x1e0] sm:$0xf]  ;;  %v6372_v24 = vld [vmem:[#allocation5 + $0x54] sm:$0xf0] }
  0x1d   :  { %3274 = vmatpush.bf16.msra.mxu3 %v4500_v12  ;;  %v4428_v21 = vor.u32 %v6406_v19, %v4427_v18  ;;  %v6422_v22 = vld [vmem:[#allocation5 + $0x1e4] sm:$0xf0]  ;;  %v4355_v26 = vld [vmem:[#allocation5 + $0xd0] sm:$0xf]  ;;  %v6388_v27 = vld [vmem:[#allocation5 + $0xd4] sm:$0xf0]  ;;  %v4292_v29 = vor.u32 %v6372_v24, %v4291_v23 }
  0x1e   :  { %v4492_v25 = vor.u32 %v6422_v22, %v4491_v20  ;;  %v4419_v28 = vld [vmem:[#allocation5 + $0x150] sm:$0xf]  ;;  %3236 = vmatpush.bf16.msra.mxu0 %v4300_v16  ;;  %v6404_v30 = vld [vmem:[#allocation5 + $0x154] sm:$0xf0]  ;;  %v4356_v33 = vor.u32 %v6388_v27, %v4355_v26  ;;  %v4283_v35 = vld [vmem:[#allocation5 + $0x40] sm:$0xf] }
  0x1f   :  { %v4483_v31 = vld [vmem:[#allocation5 + $0x1d0] sm:$0xf]  ;;  %v6420_v32 = vld [vmem:[#allocation5 + $0x1d4] sm:$0xf0]  ;;  %3249 = vmatpush.bf16.msra.mxu1 %v4364_v17  ;;  %v4420_v34 = vor.u32 %v6404_v30, %v4419_v28  ;;  %v6370_v36 = vld [vmem:[#allocation5 + $0x44] sm:$0xf0] }
  0x20   :  { %3262 = vmatpush.bf16.msra.mxu2 %v4428_v21  ;;  %v4347_v37 = vld [vmem:[#allocation5 + $0xc0] sm:$0xf]  ;;  %v4484_v38 = vor.u32 %v6420_v32, %v4483_v31  ;;  %v6386_v39 = vld [vmem:[#allocation5 + $0xc4] sm:$0xf0]  ;;  %v4284_v44 = vor.u32 %v6370_v36, %v4283_v35  ;;  %v4275_v47 = vld [vmem:[#allocation5 + $0x30] sm:$0xf] }
  0x21   :  { %3275 = vmatpush.bf16.msra.mxu3 %v4492_v25  ;;  %v4411_v40 = vld [vmem:[#allocation5 + $0x140] sm:$0xf]  ;;  %v6402_v41 = vld [vmem:[#allocation5 + $0x144] sm:$0xf0]  ;;  %v4348_v45 = vor.u32 %v6386_v39, %v4347_v37  ;;  %v6368_v48 = vld [vmem:[#allocation5 + $0x34] sm:$0xf0] }
  0x22   :  { %v4475_v42 = vld [vmem:[#allocation5 + $0x1c0] sm:$0xf]  ;;  %v6418_v43 = vld [vmem:[#allocation5 + $0x1c4] sm:$0xf0]  ;;  %3237 = vmatpush.bf16.msra.mxu0 %v4292_v29  ;;  %v4412_v46 = vor.u32 %v6402_v41, %v4411_v40  ;;  %v4339_v49 = vld [vmem:[#allocation5 + $0xb0] sm:$0xf]  ;;  %v4276_v56 = vor.u32 %v6368_v48, %v4275_v47 }
  0x23   :  { %3250 = vmatpush.bf16.msra.mxu1 %v4356_v33  ;;  %v4476_v50 = vor.u32 %v6418_v43, %v4475_v42  ;;  %v6384_v51 = vld [vmem:[#allocation5 + $0xb4] sm:$0xf0]  ;;  %v4403_v52 = vld [vmem:[#allocation5 + $0x130] sm:$0xf]  ;;  %v4267_v59 = vld [vmem:[#allocation5 + $0x20] sm:$0xf] }
  0x24   :  { %3263 = vmatpush.bf16.msra.mxu2 %v4420_v34  ;;  %v6400_v53 = vld [vmem:[#allocation5 + $0x134] sm:$0xf0]  ;;  %v4467_v54 = vld [vmem:[#allocation5 + $0x1b0] sm:$0xf]  ;;  %v4340_v57 = vor.u32 %v6384_v51, %v4339_v49  ;;  %v6366_v60 = vld [vmem:[#allocation5 + $0x24] sm:$0xf0] }
  0x25   :  { %3276 = vmatpush.bf16.msra.mxu3 %v4484_v38  ;;  %v6416_v55 = vld [vmem:[#allocation5 + $0x1b4] sm:$0xf0]  ;;  %v4404_v58 = vor.u32 %v6400_v53, %v4403_v52  ;;  %v4331_v61 = vld [vmem:[#allocation5 + $0xa0] sm:$0xf]  ;;  %v6382_v63 = vld [vmem:[#allocation5 + $0xa4] sm:$0xf0]  ;;  %v4268_v4 = vor.u32 %v6366_v60, %v4267_v59 }
  0x26   :  { %3238 = vmatpush.bf16.msra.mxu0 %v4284_v44  ;;  %v4468_v62 = vor.u32 %v6416_v55, %v4467_v54  ;;  %v4395_v0 = vld [vmem:[#allocation5 + $0x120] sm:$0xf]  ;;  %v6398_v1 = vld [vmem:[#allocation5 + $0x124] sm:$0xf0]  ;;  %v4332_v5 = vor.u32 %v6382_v63, %v4331_v61  ;;  %v4259_v7 = vld [vmem:[#allocation5 + $0x10] sm:$0xf] }
  0x27   :  { %3251 = vmatpush.bf16.msra.mxu1 %v4348_v45  ;;  %v4459_v2 = vld [vmem:[#allocation5 + $0x1a0] sm:$0xf]  ;;  %v6414_v3 = vld [vmem:[#allocation5 + $0x1a4] sm:$0xf0]  ;;  %v4396_v6 = vor.u32 %v6398_v1, %v4395_v0  ;;  %v6364_v8 = vld [vmem:[#allocation5 + $0x14] sm:$0xf0] }
  0x28   :  { %3264 = vmatpush.bf16.msra.mxu2 %v4412_v46  ;;  %v4323_v9 = vld [vmem:[#allocation5 + $0x90] sm:$0xf]  ;;  %v4460_v10 = vor.u32 %v6414_v3, %v4459_v2  ;;  %v6380_v11 = vld [vmem:[#allocation5 + $0x94] sm:$0xf0]  ;;  %v4260_v16 = vor.u32 %v6364_v8, %v4259_v7  ;;  %v4251_v17 = vld [vmem:[#allocation5] sm:$0xf] }
  0x29   :  { %3277 = vmatpush.bf16.msra.mxu3 %v4476_v50  ;;  %v4387_v12 = vld [vmem:[#allocation5 + $0x110] sm:$0xf]  ;;  %v6396_v13 = vld [vmem:[#allocation5 + $0x114] sm:$0xf0]  ;;  %v6362_v18 = vld [vmem:[#allocation5 + $0x4] sm:$0xf0]  ;;  %v4324_v19 = vor.u32 %v6380_v11, %v4323_v9 }
  0x2a   :  { %3239 = vmatpush.bf16.msra.mxu0 %v4276_v56  ;;  %v4451_v14 = vld [vmem:[#allocation5 + $0x190] sm:$0xf]  ;;  %v6412_v15 = vld [vmem:[#allocation5 + $0x194] sm:$0xf0]  ;;  %v4388_v20 = vor.u32 %v6396_v13, %v4387_v12  ;;  %v4315_v21 = vld [vmem:[#allocation5 + $0x80] sm:$0xf]  ;;  %v4252_v31 = vor.u32 %v6362_v18, %v4251_v17 }
  0x2b   :  { %3252 = vmatpush.bf16.msra.mxu1 %v4340_v57  ;;  %v6378_v22 = vld [vmem:[#allocation5 + $0x84] sm:$0xf0]  ;;  %v4379_v23 = vld [vmem:[#allocation5 + $0x100] sm:$0xf]  ;;  %v4452_v24 = vor.u32 %v6412_v15, %v4451_v14  ;;  %v4563_v28 = vld [vmem:[#allocation5 + $0x270] sm:$0xf] }
  0x2c   :  { %3265 = vmatpush.bf16.msra.mxu2 %v4404_v58  ;;  %v6394_v25 = vld [vmem:[#allocation5 + $0x104] sm:$0xf0]  ;;  %v4443_v26 = vld [vmem:[#allocation5 + $0x180] sm:$0xf]  ;;  %v6440_v29 = vld [vmem:[#allocation5 + $0x274] sm:$0xf0]  ;;  %v4316_v35 = vor.u32 %v6378_v22, %v4315_v21 }
  0x2d   :  { %3278 = vmatpush.bf16.msra.mxu3 %v4468_v62  ;;  %v6410_v27 = vld [vmem:[#allocation5 + $0x184] sm:$0xf0]  ;;  %v4627_v30 = vld [vmem:[#allocation5 + $0x2f0] sm:$0xf]  ;;  %v6456_v32 = vld [vmem:[#allocation5 + $0x2f4] sm:$0xf0]  ;;  %v4380_v36 = vor.u32 %v6394_v25, %v4379_v23  ;;  %v4564_v40 = vor.u32 %v6440_v29, %v4563_v28 }
  0x2e   :  { %3240 = vmatpush.bf16.msra.mxu0 %v4268_v4  ;;  %v4691_v33 = vld [vmem:[#allocation5 + $0x370] sm:$0xf]  ;;  %v6472_v34 = vld [vmem:[#allocation5 + $0x374] sm:$0xf0]  ;;  %v4444_v39 = vor.u32 %v6410_v27, %v4443_v26  ;;  %v4628_v41 = vor.u32 %v6456_v32, %v4627_v30  ;;  %v4555_v43 = vld [vmem:[#allocation5 + $0x260] sm:$0xf] }
  0x2f   :  { %3253 = vmatpush.bf16.msra.mxu1 %v4332_v5  ;;  %v4755_v37 = vld [vmem:[#allocation5 + $0x3f0] sm:$0xf]  ;;  %v6488_v38 = vld [vmem:[#allocation5 + $0x3f4] sm:$0xf0]  ;;  %v4692_v42 = vor.u32 %v6472_v34, %v4691_v33  ;;  %v6438_v44 = vld [vmem:[#allocation5 + $0x264] sm:$0xf0] }
  0x30   :  { %3266 = vmatpush.bf16.msra.mxu2 %v4396_v6  ;;  %v4619_v45 = vld [vmem:[#allocation5 + $0x2e0] sm:$0xf]  ;;  %v4756_v46 = vor.u32 %v6488_v38, %v4755_v37  ;;  %v6454_v47 = vld [vmem:[#allocation5 + $0x2e4] sm:$0xf0]  ;;  %v4556_v52 = vor.u32 %v6438_v44, %v4555_v43  ;;  %v4547_v53 = vld [vmem:[#allocation5 + $0x250] sm:$0xf] }
  0x31   :  { %3279 = vmatpush.bf16.msra.mxu3 %v4460_v10  ;;  %v4683_v48 = vld [vmem:[#allocation5 + $0x360] sm:$0xf]  ;;  %v6470_v49 = vld [vmem:[#allocation5 + $0x364] sm:$0xf0]  ;;  %v4620_v54 = vor.u32 %v6454_v47, %v4619_v45  ;;  %v6436_v56 = vld [vmem:[#allocation5 + $0x254] sm:$0xf0] }
  0x32   :  { %3241 = vmatpush.bf16.msra.mxu0 %v4260_v16  ;;  %v4747_v50 = vld [vmem:[#allocation5 + $0x3e0] sm:$0xf]  ;;  %v6486_v51 = vld [vmem:[#allocation5 + $0x3e4] sm:$0xf0]  ;;  %v4684_v55 = vor.u32 %v6470_v49, %v4683_v48  ;;  %v4611_v57 = vld [vmem:[#allocation5 + $0x2d0] sm:$0xf]  ;;  %v4548_v0 = vor.u32 %v6436_v56, %v4547_v53 }
  0x33   :  { %3254 = vmatpush.bf16.msra.mxu1 %v4324_v19  ;;  %v6452_v58 = vld [vmem:[#allocation5 + $0x2d4] sm:$0xf0]  ;;  %v4748_v59 = vor.u32 %v6486_v51, %v4747_v50  ;;  %v4675_v60 = vld [vmem:[#allocation5 + $0x350] sm:$0xf]  ;;  %v4539_v2 = vld [vmem:[#allocation5 + $0x240] sm:$0xf] }
  0x34   :  { %3267 = vmatpush.bf16.msra.mxu2 %v4388_v20  ;;  %v6468_v61 = vld [vmem:[#allocation5 + $0x354] sm:$0xf0]  ;;  %v4739_v62 = vld [vmem:[#allocation5 + $0x3d0] sm:$0xf]  ;;  %v4612_v1 = vor.u32 %v6452_v58, %v4611_v57  ;;  %v93_v4 = vld [vmem:[#allocation2] sm:$0xff]  ;;  %s7062_s2 = smov [#allocation11]  }
  0x35   :  { %3280 = vmatpush.bf16.msra.mxu3 %v4452_v24  ;;  %v6484_v63 = vld [vmem:[#allocation5 + $0x3d4] sm:$0xf0]  ;;  %v95_v3 = vld [vmem:[#allocation2 + $0x10] sm:$0xff]  ;;  %v4676_v5 = vor.u32 %v6468_v61, %v4675_v60  ;;  %v6434_v6 = vld [vmem:[#allocation5 + $0x244] sm:$0xf0]  ;;  %v7110_v9 = vpack.c.bf16 %v93_v4, %v93_v4  ;;  %s4235_s4 = sshll.u32 %s7062_s2, 4  ;;  %s4236_s4 = int_to_ptr.vmem [resolvable:$true] %s4235_s4 }
  0x36   :  { %3242 = vmatpush.bf16.msra.mxu0 %v4252_v31  ;;  %v4603_v7 = vld [vmem:[#allocation5 + $0x2c0] sm:$0xf]  ;;  %v7108_v8 = vpack.c.bf16 %v95_v3, %v95_v3  ;;  %v96_v10 = vld [vmem:[#allocation2 + $0x18] sm:$0xff]  ;;  %v4740_v11 = vor.u32 %v6484_v63, %v4739_v62  ;;  %v6450_v12 = vld [vmem:[#allocation5 + $0x2c4] sm:$0xf0]  ;;  %v4540_v18 = vor.u32 %v6434_v6, %v4539_v2  ;;  %s4237_s21 = sshll.u32 %s7274_s5, 4  ;;  %s4238_s21 = int_to_ptr.hbm [resolvable:$true] %s4237_s21 }
  0x37   :  { %3255 = vmatpush.bf16.msra.mxu1 %v4316_v35  ;;  %v4667_v13 = vld [vmem:[#allocation5 + $0x340] sm:$0xf]  ;;  %v6466_v14 = vld [vmem:[#allocation5 + $0x344] sm:$0xf0]  ;;  %v7112_v15 = vpack.c.bf16 %v96_v10, %v96_v10  ;;  %v4604_v20 = vor.u32 %v6450_v12, %v4603_v7  ;;  %v4531_v22 = vld [vmem:[#allocation5 + $0x230] sm:$0xf] }
  0x38   :  { %3268 = vmatpush.bf16.msra.mxu2 %v4380_v36  ;;  %v4731_v16 = vld [vmem:[#allocation5 + $0x3c0] sm:$0xf]  ;;  %v6482_v17 = vld [vmem:[#allocation5 + $0x3c4] sm:$0xf0]  ;;  %v4668_v21 = vor.u32 %v6466_v14, %v4667_v13  ;;  %v6432_v23 = vld [vmem:[#allocation5 + $0x234] sm:$0xf0] }
  0x39   :  { %3281 = vmatpush.bf16.msra.mxu3 %v4444_v39  ;;  %3243 = vmatmul.bf16.vlgmr.msra.gmra.mxu0 %v7110_v9  ;;  %v94_v19 = vld [vmem:[#allocation2 + $0x8] sm:$0xff]  ;;  %v4595_v24 = vld [vmem:[#allocation5 + $0x2b0] sm:$0xf]  ;;  %v4732_v26 = vor.u32 %v6482_v17, %v4731_v16  ;;  %v6448_v27 = vld [vmem:[#allocation5 + $0x2b4] sm:$0xf0]  ;;  %v4532_v32 = vor.u32 %v6432_v23, %v4531_v22 }
  0x3a   :  { %3287 = vmatpush.bf16.msrb.mxu0 %v4564_v40  ;;  %v7117_v25 = vpack.c.bf16 %v94_v19, %v94_v19  ;;  %v4659_v28 = vld [vmem:[#allocation5 + $0x330] sm:$0xf]  ;;  %v6464_v29 = vld [vmem:[#allocation5 + $0x334] sm:$0xf0]  ;;  %v4596_v33 = vor.u32 %v6448_v27, %v4595_v24  ;;  %v4523_v35 = vld [vmem:[#allocation5 + $0x220] sm:$0xf] }
  0x3b   :  { %3300 = vmatpush.bf16.msrb.mxu1 %v4628_v41  ;;  %3269 = vmatmul.bf16.vlgmr.msra.gmra.mxu2 %v7108_v8  ;;  %v4723_v30 = vld [vmem:[#allocation5 + $0x3b0] sm:$0xf]  ;;  %v6480_v31 = vld [vmem:[#allocation5 + $0x3b4] sm:$0xf0]  ;;  %v4660_v34 = vor.u32 %v6464_v29, %v4659_v28  ;;  %v6430_v36 = vld [vmem:[#allocation5 + $0x224] sm:$0xf0] }
  0x3c   :  { %3313 = vmatpush.bf16.msrb.mxu2 %v4692_v42  ;;  %3282 = vmatmul.bf16.vlgmr.msra.gmra.mxu3 %v7112_v15  ;;  %v4587_v37 = vld [vmem:[#allocation5 + $0x2a0] sm:$0xf]  ;;  %v4724_v38 = vor.u32 %v6480_v31, %v4723_v30  ;;  %v6446_v39 = vld [vmem:[#allocation5 + $0x2a4] sm:$0xf0]  ;;  %v4524_v44 = vor.u32 %v6430_v36, %v4523_v35  ;;  %v4515_v47 = vld [vmem:[#allocation5 + $0x210] sm:$0xf] }
  0x3d   :  { %3326 = vmatpush.bf16.msrb.mxu3 %v4756_v46  ;;  %3256 = vmatmul.bf16.vlgmr.msra.gmra.mxu1 %v7117_v25  ;;  %v4651_v40 = vld [vmem:[#allocation5 + $0x320] sm:$0xf]  ;;  %v6462_v41 = vld [vmem:[#allocation5 + $0x324] sm:$0xf0]  ;;  %v4588_v45 = vor.u32 %v6446_v39, %v4587_v37  ;;  %v6428_v48 = vld [vmem:[#allocation5 + $0x214] sm:$0xf0] }
  0x3e   :  { %3288 = vmatpush.bf16.msrb.mxu0 %v4556_v52  ;;  %v4715_v42 = vld [vmem:[#allocation5 + $0x3a0] sm:$0xf]  ;;  %v6478_v43 = vld [vmem:[#allocation5 + $0x3a4] sm:$0xf0]  ;;  %v4652_v46 = vor.u32 %v6462_v41, %v4651_v40  ;;  %v4579_v49 = vld [vmem:[#allocation5 + $0x290] sm:$0xf]  ;;  %v4516_v56 = vor.u32 %v6428_v48, %v4515_v47 }
  0x3f   :  { %3301 = vmatpush.bf16.msrb.mxu1 %v4620_v54  ;;  %v4716_v50 = vor.u32 %v6478_v43, %v4715_v42  ;;  %v6444_v51 = vld [vmem:[#allocation5 + $0x294] sm:$0xf0]  ;;  %v4643_v52 = vld [vmem:[#allocation5 + $0x310] sm:$0xf]  ;;  %v4507_v57 = vld [vmem:[#allocation5 + $0x200] sm:$0xf] }
  0x40   :  { %3314 = vmatpush.bf16.msrb.mxu2 %v4684_v55  ;;  %v6460_v53 = vld [vmem:[#allocation5 + $0x314] sm:$0xf0]  ;;  %v4707_v54 = vld [vmem:[#allocation5 + $0x390] sm:$0xf]  ;;  %v6426_v58 = vld [vmem:[#allocation5 + $0x204] sm:$0xf0] }
  0x41   :  { %3327 = vmatpush.bf16.msrb.mxu3 %v4748_v59  ;;  %v6476_v55 = vld [vmem:[#allocation5 + $0x394] sm:$0xf0]  ;;  %v4580_v59 = vor.u32 %v6444_v51, %v4579_v49  ;;  %v4644_v60 = vor.u32 %v6460_v53, %v4643_v52  ;;  %v4571_v61 = vld [vmem:[#allocation5 + $0x280] sm:$0xf]  ;;  %v6442_v62 = vld [vmem:[#allocation5 + $0x284] sm:$0xf0]  ;;  %v4508_v7 = vor.u32 %v6426_v58, %v4507_v57 }
  0x42   :  { %3289 = vmatpush.bf16.msrb.mxu0 %v4548_v0  ;;  %v4635_v63 = vld [vmem:[#allocation5 + $0x300] sm:$0xf]  ;;  %v4708_v0 = vor.u32 %v6476_v55, %v4707_v54  ;;  %v6474_v3 = vld [vmem:[#allocation5 + $0x384] sm:$0xf0]  ;;  %v4819_v4 = vld [vmem:[#allocation5 + $0x470] sm:$0xf]  ;;  %v4572_v13 = vor.u32 %v6442_v62, %v4571_v61 }
  0x43   :  { %3302 = vmatpush.bf16.msrb.mxu1 %v4612_v1  ;;  %v6458_v1 = vld [vmem:[#allocation5 + $0x304] sm:$0xf0]  ;;  %v4699_v2 = vld [vmem:[#allocation5 + $0x380] sm:$0xf]  ;;  %v4883_v6 = vld [vmem:[#allocation5 + $0x4f0] sm:$0xf] }
  0x44   :  { %3315 = vmatpush.bf16.msrb.mxu2 %v4676_v5  ;;  %v6504_v5 = vld [vmem:[#allocation5 + $0x474] sm:$0xf0]  ;;  %v4636_v14 = vor.u32 %v6458_v1, %v4635_v63  ;;  %v5011_v16 = vld [vmem:[#allocation5 + $0x5f0] sm:$0xf]  ;;  %v4700_v19 = vor.u32 %v6474_v3, %v4699_v2  ;;  %v97_v22 = vld [vmem:[#allocation2 + $0x20] sm:$0xff] }
  0x45   :  { %3328 = vmatpush.bf16.msrb.mxu3 %v4740_v11  ;;  %v6520_v10 = vld [vmem:[#allocation5 + $0x4f4] sm:$0xf0]  ;;  %v4947_v11 = vld [vmem:[#allocation5 + $0x570] sm:$0xf]  ;;  %v6502_v27 = vld [vmem:[#allocation5 + $0x464] sm:$0xf0]  ;;  %v7122_v37 = vpack.c.bf16 %v97_v22, %v97_v22 }
  0x46   :  { %3290 = vmatpush.bf16.msrb.mxu0 %v4540_v18  ;;  %v6536_v12 = vld [vmem:[#allocation5 + $0x574] sm:$0xf0]  ;;  %v99_v18 = vld [vmem:[#allocation2 + $0x30] sm:$0xff]  ;;  %v4884_v24 = vor.u32 %v6520_v10, %v4883_v6  ;;  %v4875_v28 = vld [vmem:[#allocation5 + $0x4e0] sm:$0xf] }
  0x47   :  { %3303 = vmatpush.bf16.msrb.mxu1 %v4604_v20  ;;  %v6552_v17 = vld [vmem:[#allocation5 + $0x5f4] sm:$0xf0]  ;;  %v4820_v20 = vor.u32 %v6504_v5, %v4819_v4  ;;  %v98_v29 = vld [vmem:[#allocation2 + $0x28] sm:$0xff]  ;;  %v5003_v35 = vld [vmem:[#allocation5 + $0x5e0] sm:$0xf] }
  0x48   :  { %3316 = vmatpush.bf16.msrb.mxu2 %v4668_v21  ;;  %v4811_v21 = vld [vmem:[#allocation5 + $0x460] sm:$0xf]  ;;  %v100_v23 = vld [vmem:[#allocation2 + $0x38] sm:$0xff]  ;;  %v5012_v30 = vor.u32 %v6552_v17, %v5011_v16  ;;  %v6518_v31 = vld [vmem:[#allocation5 + $0x4e4] sm:$0xf0]  ;;  %v7126_v40 = vpack.c.bf16 %v98_v29, %v98_v29 }
  0x49   :  { %3329 = vmatpush.bf16.msrb.mxu3 %v4732_v26  ;;  %v4948_v26 = vor.u32 %v6536_v12, %v4947_v11  ;;  %v6550_v36 = vld [vmem:[#allocation5 + $0x5e4] sm:$0xf0]  ;;  %v4812_v39 = vor.u32 %v6502_v27, %v4811_v21  ;;  %v4876_v41 = vor.u32 %v6518_v31, %v4875_v28  ;;  %v4803_v43 = vld [vmem:[#allocation5 + $0x450] sm:$0xf]  ;;  %v6516_v47 = vld [vmem:[#allocation5 + $0x4d4] sm:$0xf0] }
  0x4a   :  { %3291 = vmatpush.bf16.msrb.mxu0 %v4532_v32  ;;  %v4939_v32 = vld [vmem:[#allocation5 + $0x560] sm:$0xf]  ;;  %v4931_v48 = vld [vmem:[#allocation5 + $0x550] sm:$0xf]  ;;  %v6532_v49 = vld [vmem:[#allocation5 + $0x554] sm:$0xf0] }
  0x4b   :  { %3304 = vmatpush.bf16.msrb.mxu1 %v4596_v33  ;;  %v6534_v33 = vld [vmem:[#allocation5 + $0x564] sm:$0xf0]  ;;  %v6548_v51 = vld [vmem:[#allocation5 + $0x5d4] sm:$0xf0]  ;;  %v4932_v54 = vor.u32 %v6532_v49, %v4931_v48  ;;  %v4795_v55 = vld [vmem:[#allocation5 + $0x440] sm:$0xf] }
  0x4c   :  { %3317 = vmatpush.bf16.msrb.mxu2 %v4660_v34  ;;  %v7120_v34 = vpack.c.bf16 %v99_v18, %v99_v18  ;;  %v4940_v42 = vor.u32 %v6534_v33, %v4939_v32  ;;  %v4859_v57 = vld [vmem:[#allocation5 + $0x4c0] sm:$0xf]  ;;  %v6530_v61 = vld [vmem:[#allocation5 + $0x544] sm:$0xf0]  ;;  %v4787_v3 = vld [vmem:[#allocation5 + $0x430] sm:$0xf] }
  0x4d   :  { %3330 = vmatpush.bf16.msrb.mxu3 %v4724_v38  ;;  %v7124_v38 = vpack.c.bf16 %v100_v23, %v100_v23  ;;  %v4987_v62 = vld [vmem:[#allocation5 + $0x5c0] sm:$0xf]  ;;  %v6546_v63 = vld [vmem:[#allocation5 + $0x5c4] sm:$0xf0]  ;;  %v6496_v4 = vld [vmem:[#allocation5 + $0x434] sm:$0xf0] }
  0x4e   :  { %3292 = vmatpush.bf16.msrb.mxu0 %v4524_v44  ;;  %v6500_v44 = vld [vmem:[#allocation5 + $0x454] sm:$0xf0]  ;;  %v4851_v5 = vld [vmem:[#allocation5 + $0x4b0] sm:$0xf]  ;;  %v4988_v6 = vor.u32 %v6546_v63, %v4987_v62  ;;  %v4779_v18 = vld [vmem:[#allocation5 + $0x420] sm:$0xf] }
  0x4f   :  { %3305 = vmatpush.bf16.msrb.mxu1 %v4588_v45  ;;  %v4867_v45 = vld [vmem:[#allocation5 + $0x4d0] sm:$0xf]  ;;  %v4804_v52 = vor.u32 %v6500_v44, %v4803_v43  ;;  %v6528_v11 = vld [vmem:[#allocation5 + $0x534] sm:$0xf0]  ;;  %v6510_v22 = vld [vmem:[#allocation5 + $0x4a4] sm:$0xf0] }
  0x50   :  { %3318 = vmatpush.bf16.msrb.mxu2 %v4652_v46  ;;  %v5004_v46 = vor.u32 %v6550_v36, %v5003_v35  ;;  %v4868_v53 = vor.u32 %v6516_v47, %v4867_v45  ;;  %v4915_v10 = vld [vmem:[#allocation5 + $0x530] sm:$0xf]  ;;  %v4907_v23 = vld [vmem:[#allocation5 + $0x520] sm:$0xf]  ;;  %v6542_v27 = vld [vmem:[#allocation5 + $0x5a4] sm:$0xf0] }
  0x51   :  { %3331 = vmatpush.bf16.msrb.mxu3 %v4716_v50  ;;  %v4995_v50 = vld [vmem:[#allocation5 + $0x5d0] sm:$0xf]  ;;  %v4916_v17 = vor.u32 %v6528_v11, %v4915_v10  ;;  %v6492_v32 = vld [vmem:[#allocation5 + $0x414] sm:$0xf0]  ;;  %v4763_v45 = vld [vmem:[#allocation5 + $0x400] sm:$0xf] }
  0x52   :  { %3293 = vmatpush.bf16.msrb.mxu0 %v4516_v56  ;;  %v6498_v56 = vld [vmem:[#allocation5 + $0x444] sm:$0xf0]  ;;  %v4996_v58 = vor.u32 %v6548_v51, %v4995_v50  ;;  %v4979_v12 = vld [vmem:[#allocation5 + $0x5b0] sm:$0xf]  ;;  %v6508_v36 = vld [vmem:[#allocation5 + $0x494] sm:$0xf0] }
  0x53   :  { %3306 = vmatpush.bf16.msrb.mxu1 %v4580_v59  ;;  %v6514_v59 = vld [vmem:[#allocation5 + $0x4c4] sm:$0xf0]  ;;  %v4771_v31 = vld [vmem:[#allocation5 + $0x410] sm:$0xf]  ;;  %v6540_v43 = vld [vmem:[#allocation5 + $0x594] sm:$0xf0] }
  0x54   :  { %3319 = vmatpush.bf16.msrb.mxu2 %v4644_v60  ;;  %v4923_v60 = vld [vmem:[#allocation5 + $0x540] sm:$0xf]  ;;  %v4860_v1 = vor.u32 %v6514_v59, %v4859_v57  ;;  %v4835_v33 = vld [vmem:[#allocation5 + $0x490] sm:$0xf]  ;;  %v4772_v44 = vor.u32 %v6492_v32, %v4771_v31  ;;  %v6506_v50 = vld [vmem:[#allocation5 + $0x484] sm:$0xf0] }
  0x55   :  { %3332 = vmatpush.bf16.msrb.mxu3 %v4708_v0  ;;  %v4796_v0 = vor.u32 %v6498_v56, %v4795_v55  ;;  %v4924_v2 = vor.u32 %v6530_v61, %v4923_v60  ;;  %v4827_v47 = vld [vmem:[#allocation5 + $0x480] sm:$0xf]  ;;  %v4836_v48 = vor.u32 %v6508_v36, %v4835_v33  ;;  %v6538_v55 = vld [vmem:[#allocation5 + $0x584] sm:$0xf0]  ;;  %v5075_v56 = vld [vmem:[#allocation5 + $0x670] sm:$0xf] }
  0x56   :  { %3294 = vmatpush.bf16.msrb.mxu0 %v4508_v7  ;;  %v6512_v7 = vld [vmem:[#allocation5 + $0x4b4] sm:$0xf0]  ;;  %v4891_v51 = vld [vmem:[#allocation5 + $0x500] sm:$0xf]  ;;  %v5203_v61 = vld [vmem:[#allocation5 + $0x770] sm:$0xf]  ;;  %v4828_v63 = vor.u32 %v6506_v50, %v4827_v47 }
  0x57   :  { %3307 = vmatpush.bf16.msrb.mxu1 %v4572_v13  ;;  %v6544_v13 = vld [vmem:[#allocation5 + $0x5b4] sm:$0xf0]  ;;  %v4852_v16 = vor.u32 %v6512_v7, %v4851_v5  ;;  %v102_v7 = vld [vmem:[#allocation2 + $0x48] sm:$0xff]  ;;  %v5059_v31 = vld [vmem:[#allocation5 + $0x650] sm:$0xf] }
  0x58   :  { %3320 = vmatpush.bf16.msrb.mxu2 %v4636_v14  ;;  %v4788_v14 = vor.u32 %v6496_v4, %v4787_v3  ;;  %v4980_v21 = vor.u32 %v6544_v13, %v4979_v12  ;;  %v6568_v57 = vld [vmem:[#allocation5 + $0x674] sm:$0xf0]  ;;  %v101_v3 = vld [vmem:[#allocation2 + $0x40] sm:$0xff]  ;;  %v5123_v33 = vld [vmem:[#allocation5 + $0x6d0] sm:$0xf] }
  0x59   :  { %3333 = vmatpush.bf16.msrb.mxu3 %v4700_v19  ;;  %3295 = vmatmul.bf16.vlgmr.msrb.gmra.mxu0 %v7122_v37  ;;  %v6494_v19 = vld [vmem:[#allocation5 + $0x424] sm:$0xf0]  ;;  %v6584_v60 = vld [vmem:[#allocation5 + $0x6f4] sm:$0xf0]  ;;  %v5076_v5 = vor.u32 %v6568_v57, %v5075_v56  ;;  %v5067_v13 = vld [vmem:[#allocation5 + $0x660] sm:$0xf] }
  0x5a   :  { %3339 = vmatpush.bf16.msra.mxu0 %v4820_v20  ;;  %3308 = vmatmul.bf16.vlgmr.msrb.gmra.mxu1 %v7126_v40  ;;  %v4843_v20 = vld [vmem:[#allocation5 + $0x4a0] sm:$0xf]  ;;  %v4780_v28 = vor.u32 %v6494_v19, %v4779_v18  ;;  %v6600_v62 = vld [vmem:[#allocation5 + $0x774] sm:$0xf0]  ;;  %v7132_v18 = vpack.c.bf16 %v101_v3, %v101_v3  ;;  %v6582_v19 = vld [vmem:[#allocation5 + $0x6e4] sm:$0xf0] }
  0x5b   :  { %3352 = vmatpush.bf16.msra.mxu1 %v4884_v24  ;;  %3321 = vmatmul.bf16.vlgmr.msrb.gmra.mxu2 %v7120_v34  ;;  %v6526_v24 = vld [vmem:[#allocation5 + $0x524] sm:$0xf0]  ;;  %v4844_v29 = vor.u32 %v6510_v22, %v4843_v20  ;;  %v104_v10 = vld [vmem:[#allocation2 + $0x58] sm:$0xff]  ;;  %v5204_v12 = vor.u32 %v6600_v62, %v5203_v61  ;;  %v5195_v20 = vld [vmem:[#allocation5 + $0x760] sm:$0xf] }
  0x5c   :  { %3365 = vmatpush.bf16.msra.mxu2 %v4948_v26  ;;  %3334 = vmatmul.bf16.vlgmr.msrb.gmra.mxu3 %v7124_v38  ;;  %v4971_v26 = vld [vmem:[#allocation5 + $0x5a0] sm:$0xf]  ;;  %v6564_v32 = vld [vmem:[#allocation5 + $0x654] sm:$0xf0]  ;;  %v5107_v61 = vld [vmem:[#allocation5 + $0x6b0] sm:$0xf] }
  0x5d   :  { %3378 = vmatpush.bf16.msra.mxu3 %v5012_v30  ;;  %v4908_v30 = vor.u32 %v6526_v24, %v4907_v23  ;;  %v4972_v35 = vor.u32 %v6542_v27, %v4971_v26  ;;  %v7136_v23 = vpack.c.bf16 %v102_v7, %v102_v7  ;;  %v5259_v24 = vld [vmem:[#allocation5 + $0x7e0] sm:$0xf]  ;;  %v6614_v26 = vld [vmem:[#allocation5 + $0x7e4] sm:$0xf0]  ;;  %v7138_v27 = vpack.c.bf16 %v104_v10, %v104_v10  ;;  %v6580_v36 = vld [vmem:[#allocation5 + $0x6d4] sm:$0xf0] }
  0x5e   :  { %3340 = vmatpush.bf16.msra.mxu0 %v4812_v39  ;;  %v4899_v39 = vld [vmem:[#allocation5 + $0x510] sm:$0xf]  ;;  %v5051_v47 = vld [vmem:[#allocation5 + $0x640] sm:$0xf]  ;;  %v6608_v3 = vld [vmem:[#allocation5 + $0x7b4] sm:$0xf0] }
  0x5f   :  { %3353 = vmatpush.bf16.msra.mxu1 %v4876_v41  ;;  %v6524_v41 = vld [vmem:[#allocation5 + $0x514] sm:$0xf0]  ;;  %v5035_v7 = vld [vmem:[#allocation5 + $0x620] sm:$0xf]  ;;  %v6558_v10 = vld [vmem:[#allocation5 + $0x624] sm:$0xf0] }
  0x60   :  { %3366 = vmatpush.bf16.msra.mxu2 %v4940_v42  ;;  %v4963_v42 = vld [vmem:[#allocation5 + $0x590] sm:$0xf]  ;;  %v4900_v49 = vor.u32 %v6524_v41, %v4899_v39  ;;  %v6596_v41 = vld [vmem:[#allocation5 + $0x754] sm:$0xf0] }
  0x61   :  { %3379 = vmatpush.bf16.msra.mxu3 %v5004_v46  ;;  %v6490_v46 = vld [vmem:[#allocation5 + $0x404] sm:$0xf0]  ;;  %v5187_v39 = vld [vmem:[#allocation5 + $0x750] sm:$0xf] }
  0x62   :  { %3341 = vmatpush.bf16.msra.mxu0 %v4804_v52  ;;  %v6522_v52 = vld [vmem:[#allocation5 + $0x504] sm:$0xf0]  ;;  %v4764_v59 = vor.u32 %v6490_v46, %v4763_v45  ;;  %v5124_v45 = vor.u32 %v6580_v36, %v5123_v33  ;;  %v5188_v46 = vor.u32 %v6596_v41, %v5187_v39  ;;  %v6588_v33 = vld [vmem:[#allocation5 + $0x714] sm:$0xf0]  ;;  %v5019_v41 = vld [vmem:[#allocation5 + $0x600] sm:$0xf] }
  0x63   :  { %3354 = vmatpush.bf16.msra.mxu1 %v4868_v53  ;;  %v4964_v53 = vor.u32 %v6540_v43, %v4963_v42  ;;  %v5251_v42 = vld [vmem:[#allocation5 + $0x7d0] sm:$0xf]  ;;  %v6612_v43 = vld [vmem:[#allocation5 + $0x7d4] sm:$0xf0] }
  0x64   :  { %3367 = vmatpush.bf16.msra.mxu2 %v4932_v54  ;;  %v4955_v54 = vld [vmem:[#allocation5 + $0x580] sm:$0xf]  ;;  %v5252_v50 = vor.u32 %v6612_v43, %v5251_v42  ;;  %v6604_v36 = vld [vmem:[#allocation5 + $0x794] sm:$0xf0]  ;;  %v6554_v42 = vld [vmem:[#allocation5 + $0x604] sm:$0xf0] }
  0x65   :  { %3380 = vmatpush.bf16.msra.mxu3 %v4996_v58  ;;  %v5139_v58 = vld [vmem:[#allocation5 + $0x6f0] sm:$0xf]  ;;  %v4956_v4 = vor.u32 %v6538_v55, %v4955_v54  ;;  %v5243_v54 = vld [vmem:[#allocation5 + $0x7c0] sm:$0xf]  ;;  %v6610_v55 = vld [vmem:[#allocation5 + $0x7c4] sm:$0xf0] }
  0x66   :  { %3342 = vmatpush.bf16.msra.mxu0 %v4796_v0  ;;  %v4892_v0 = vor.u32 %v6522_v52, %v4891_v51  ;;  %v5140_v11 = vor.u32 %v6584_v60, %v5139_v58  ;;  %v6578_v51 = vld [vmem:[#allocation5 + $0x6c4] sm:$0xf0]  ;;  %v5179_v52 = vld [vmem:[#allocation5 + $0x740] sm:$0xf]  ;;  %v6560_v60 = vld [vmem:[#allocation5 + $0x634] sm:$0xf0]  ;;  %v5244_v62 = vor.u32 %v6610_v55, %v5243_v54  ;;  %v5020_v55 = vor.u32 %v6554_v42, %v5019_v41 }
  0x67   :  { %3355 = vmatpush.bf16.msra.mxu1 %v4860_v1  ;;  %v5267_v1 = vld [vmem:[#allocation5 + $0x7f0] sm:$0xf]  ;;  %v6660_v41 = vld [vmem:[#allocation5 + $0x954] sm:$0xf0] }
  0x68   :  { %3368 = vmatpush.bf16.msra.mxu2 %v4924_v2  ;;  %v6616_v2 = vld [vmem:[#allocation5 + $0x7f4] sm:$0xf0]  ;;  %v5395_v54 = vld [vmem:[#allocation5 + $0x8f0] sm:$0xf] }
  0x69   :  { %3381 = vmatpush.bf16.msra.mxu3 %v4988_v6  ;;  %v103_v6 = vld [vmem:[#allocation2 + $0x50] sm:$0xff] }
  0x6a   :  { %3343 = vmatpush.bf16.msra.mxu0 %v4788_v14  ;;  %v6566_v14 = vld [vmem:[#allocation5 + $0x664] sm:$0xf0]  ;;  %v7134_v22 = vpack.c.bf16 %v103_v6, %v103_v6  ;;  %v5507_v42 = vld [vmem:[#allocation5 + $0x9d0] sm:$0xf] }
  0x6b   :  { %3356 = vmatpush.bf16.msra.mxu1 %v4852_v16  ;;  %v5131_v16 = vld [vmem:[#allocation5 + $0x6e0] sm:$0xf] }
  0x6c   :  { %3369 = vmatpush.bf16.msra.mxu2 %v4916_v17  ;;  %v5268_v17 = vor.u32 %v6616_v2, %v5267_v1  ;;  %v6592_v1 = vld [vmem:[#allocation5 + $0x734] sm:$0xf0]  ;;  %v5235_v2 = vld [vmem:[#allocation5 + $0x7b0] sm:$0xf] }
  0x6d   :  { %3382 = vmatpush.bf16.msra.mxu3 %v4980_v21  ;;  %v6598_v21 = vld [vmem:[#allocation5 + $0x764] sm:$0xf0] }
  0x6e   :  { %3344 = vmatpush.bf16.msra.mxu0 %v4780_v28  ;;  %v5068_v28 = vor.u32 %v6566_v14, %v5067_v13  ;;  %v6574_v13 = vld [vmem:[#allocation5 + $0x6a4] sm:$0xf0]  ;;  %v5163_v14 = vld [vmem:[#allocation5 + $0x720] sm:$0xf] }
  0x6f   :  { %3357 = vmatpush.bf16.msra.mxu1 %v4844_v29  ;;  %v5132_v29 = vor.u32 %v6582_v19, %v5131_v16  ;;  %v6590_v16 = vld [vmem:[#allocation5 + $0x724] sm:$0xf0] }
  0x70   :  { %3370 = vmatpush.bf16.msra.mxu2 %v4908_v30  ;;  %v5196_v30 = vor.u32 %v6598_v21, %v5195_v20  ;;  %v6606_v19 = vld [vmem:[#allocation5 + $0x7a4] sm:$0xf0]  ;;  %v5036_v20 = vor.u32 %v6558_v10, %v5035_v7  ;;  %v5323_v7 = vld [vmem:[#allocation5 + $0x860] sm:$0xf] }
  0x71   :  { %3383 = vmatpush.bf16.msra.mxu3 %v4972_v35  ;;  %v5260_v35 = vor.u32 %v6614_v26, %v5259_v24  ;;  %v5164_v24 = vor.u32 %v6590_v16, %v5163_v14  ;;  %v5027_v26 = vld [vmem:[#allocation5 + $0x610] sm:$0xf]  ;;  %v6630_v10 = vld [vmem:[#allocation5 + $0x864] sm:$0xf0]  ;;  %v5451_v16 = vld [vmem:[#allocation5 + $0x960] sm:$0xf] }
  0x72   :  { %3345 = vmatpush.bf16.msra.mxu0 %v4772_v44  ;;  %v5060_v44 = vor.u32 %v6564_v32, %v5059_v31  ;;  %v6572_v31 = vld [vmem:[#allocation5 + $0x694] sm:$0xf0]  ;;  %v5155_v32 = vld [vmem:[#allocation5 + $0x710] sm:$0xf]  ;;  %v6646_v14 = vld [vmem:[#allocation5 + $0x8e4] sm:$0xf0] }
  0x73   :  { %3358 = vmatpush.bf16.msra.mxu1 %v4836_v48  ;;  %v6562_v48 = vld [vmem:[#allocation5 + $0x644] sm:$0xf0] }
  0x74   :  { %3371 = vmatpush.bf16.msra.mxu2 %v4900_v49  ;;  %v5115_v49 = vld [vmem:[#allocation5 + $0x6c0] sm:$0xf]  ;;  %v5052_v56 = vor.u32 %v6562_v48, %v5051_v47 }
  0x75   :  { %3384 = vmatpush.bf16.msra.mxu3 %v4964_v53  ;;  %v6594_v53 = vld [vmem:[#allocation5 + $0x744] sm:$0xf0]  ;;  %v5116_v57 = vor.u32 %v6578_v51, %v5115_v49  ;;  %v5147_v47 = vld [vmem:[#allocation5 + $0x700] sm:$0xf] }
  0x76   :  { %3346 = vmatpush.bf16.msra.mxu0 %v4764_v59  ;;  %v5180_v58 = vor.u32 %v6594_v53, %v5179_v52  ;;  %v5043_v59 = vld [vmem:[#allocation5 + $0x630] sm:$0xf]  ;;  %v6586_v49 = vld [vmem:[#allocation5 + $0x704] sm:$0xf0]  ;;  %v6632_v53 = vld [vmem:[#allocation5 + $0x874] sm:$0xf0] }
  0x77   :  { %3359 = vmatpush.bf16.msra.mxu1 %v4828_v63  ;;  %v6576_v63 = vld [vmem:[#allocation5 + $0x6b4] sm:$0xf0]  ;;  %v6602_v51 = vld [vmem:[#allocation5 + $0x784] sm:$0xf0]  ;;  %v5331_v52 = vld [vmem:[#allocation5 + $0x870] sm:$0xf] }
  0x78   :  { %3372 = vmatpush.bf16.msra.mxu2 %v4892_v0  ;;  %v5171_v0 = vld [vmem:[#allocation5 + $0x730] sm:$0xf] }
  0x79   :  { %3385 = vmatpush.bf16.msra.mxu3 %v4956_v4  ;;  %3347 = vmatmul.bf16.vlgmr.msra.gmra.mxu0 %v7132_v18  ;;  %v5044_v4 = vor.u32 %v6560_v60, %v5043_v59  ;;  %v5172_v6 = vor.u32 %v6592_v1, %v5171_v0  ;;  %v5148_v60 = vor.u32 %v6586_v49, %v5147_v47  ;;  %v5307_v47 = vld [vmem:[#allocation5 + $0x840] sm:$0xf] }
  0x7a   :  { %3391 = vmatpush.bf16.msrb.mxu0 %v5076_v5  ;;  %3360 = vmatmul.bf16.vlgmr.msra.gmra.mxu1 %v7136_v23  ;;  %v5108_v5 = vor.u32 %v6576_v63, %v5107_v61  ;;  %v5523_v61 = vld [vmem:[#allocation5 + $0x9f0] sm:$0xf]  ;;  %v105_v63 = vld [vmem:[#allocation2 + $0x60] sm:$0xff]  ;;  %v5332_v1 = vor.u32 %v6632_v53, %v5331_v52  ;;  %v6658_v53 = vld [vmem:[#allocation5 + $0x944] sm:$0xf0] }
  0x7b   :  { %3404 = vmatpush.bf16.msrb.mxu1 %v5140_v11  ;;  %3373 = vmatmul.bf16.vlgmr.msra.gmra.mxu2 %v7134_v22  ;;  %v5099_v11 = vld [vmem:[#allocation5 + $0x6a0] sm:$0xf] }
  0x7c   :  { %3417 = vmatpush.bf16.msrb.mxu2 %v5204_v12  ;;  %3386 = vmatmul.bf16.vlgmr.msra.gmra.mxu3 %v7138_v27  ;;  %v5236_v12 = vor.u32 %v6608_v3, %v5235_v2  ;;  %v5100_v21 = vor.u32 %v6574_v13, %v5099_v11  ;;  %v107_v2 = vld [vmem:[#allocation2 + $0x70] sm:$0xff]  ;;  %v106_v3 = vld [vmem:[#allocation2 + $0x68] sm:$0xff]  ;;  %v5387_v11 = vld [vmem:[#allocation5 + $0x8e0] sm:$0xf]  ;;  %v7144_v13 = vpack.c.bf16 %v105_v63, %v105_v63 }
  0x7d   :  { %3430 = vmatpush.bf16.msrb.mxu3 %v5268_v17  ;;  %v5227_v17 = vld [vmem:[#allocation5 + $0x7a0] sm:$0xf]  ;;  %v6640_v63 = vld [vmem:[#allocation5 + $0x8b4] sm:$0xf0] }
  0x7e   :  { %3392 = vmatpush.bf16.msrb.mxu0 %v5068_v28  ;;  %v6556_v28 = vld [vmem:[#allocation5 + $0x614] sm:$0xf0]  ;;  %v5371_v49 = vld [vmem:[#allocation5 + $0x8c0] sm:$0xf] }
  0x7f   :  { %3405 = vmatpush.bf16.msrb.mxu1 %v5132_v29  ;;  %v5091_v29 = vld [vmem:[#allocation5 + $0x690] sm:$0xf]  ;;  %v5028_v39 = vor.u32 %v6556_v28, %v5027_v26  ;;  %v5324_v28 = vor.u32 %v6630_v10, %v5323_v7  ;;  %v5435_v52 = vld [vmem:[#allocation5 + $0x940] sm:$0xf]  ;;  %v6622_v10 = vld [vmem:[#allocation5 + $0x824] sm:$0xf0] }
  0x80   :  { %3418 = vmatpush.bf16.msrb.mxu2 %v5196_v30  ;;  %v5228_v30 = vor.u32 %v6606_v19, %v5227_v17  ;;  %v5092_v43 = vor.u32 %v6572_v31, %v5091_v29  ;;  %v6662_v17 = vld [vmem:[#allocation5 + $0x964] sm:$0xf0]  ;;  %v7146_v19 = vpack.c.bf16 %v107_v2, %v107_v2  ;;  %v5388_v29 = vor.u32 %v6646_v14, %v5387_v11  ;;  %v5315_v31 = vld [vmem:[#allocation5 + $0x850] sm:$0xf]  ;;  %v5291_v7 = vld [vmem:[#allocation5 + $0x820] sm:$0xf] }
  0x81   :  { %3431 = vmatpush.bf16.msrb.mxu3 %v5260_v35  ;;  %v5219_v35 = vld [vmem:[#allocation5 + $0x790] sm:$0xf]  ;;  %v5355_v11 = vld [vmem:[#allocation5 + $0x8a0] sm:$0xf]  ;;  %v6638_v14 = vld [vmem:[#allocation5 + $0x8a4] sm:$0xf0] }
  0x82   :  { %3393 = vmatpush.bf16.msrb.mxu0 %v5060_v44  ;;  %v5156_v44 = vor.u32 %v6588_v33, %v5155_v32  ;;  %v5220_v48 = vor.u32 %v6604_v36, %v5219_v35  ;;  %v6628_v32 = vld [vmem:[#allocation5 + $0x854] sm:$0xf0]  ;;  %v5379_v33 = vld [vmem:[#allocation5 + $0x8d0] sm:$0xf] }
  0x83   :  { %3406 = vmatpush.bf16.msrb.mxu1 %v5124_v45  ;;  %v5083_v45 = vld [vmem:[#allocation5 + $0x680] sm:$0xf]  ;;  %v6644_v36 = vld [vmem:[#allocation5 + $0x8d4] sm:$0xf0]  ;;  %v5491_v2 = vld [vmem:[#allocation5 + $0x9b0] sm:$0xf] }
  0x84   :  { %3419 = vmatpush.bf16.msrb.mxu2 %v5188_v46  ;;  %v6570_v46 = vld [vmem:[#allocation5 + $0x684] sm:$0xf0] }
  0x85   :  { %3432 = vmatpush.bf16.msrb.mxu3 %v5252_v50  ;;  %v5211_v50 = vld [vmem:[#allocation5 + $0x780] sm:$0xf]  ;;  %v5084_v59 = vor.u32 %v6570_v46, %v5083_v45  ;;  %v5380_v45 = vor.u32 %v6644_v36, %v5379_v33  ;;  %v5347_v33 = vld [vmem:[#allocation5 + $0x890] sm:$0xf]  ;;  %v6636_v36 = vld [vmem:[#allocation5 + $0x894] sm:$0xf0] }
  0x86   :  { %3394 = vmatpush.bf16.msrb.mxu0 %v5052_v56  ;;  %v6648_v56 = vld [vmem:[#allocation5 + $0x8f4] sm:$0xf0]  ;;  %v5212_v0 = vor.u32 %v6602_v51, %v5211_v50  ;;  %v6642_v51 = vld [vmem:[#allocation5 + $0x8c4] sm:$0xf0] }
  0x87   :  { %3407 = vmatpush.bf16.msrb.mxu1 %v5116_v57  ;;  %v5459_v57 = vld [vmem:[#allocation5 + $0x970] sm:$0xf] }
  0x88   :  { %3420 = vmatpush.bf16.msrb.mxu2 %v5180_v58  ;;  %v6664_v58 = vld [vmem:[#allocation5 + $0x974] sm:$0xf0] }
  0x89   :  { %3433 = vmatpush.bf16.msrb.mxu3 %v5244_v62  ;;  %v6680_v62 = vld [vmem:[#allocation5 + $0x9f4] sm:$0xf0] }
  0x8a   :  { %3395 = vmatpush.bf16.msrb.mxu0 %v5044_v4  ;;  %v108_v4 = vld [vmem:[#allocation2 + $0x78] sm:$0xff] }
  0x8b   :  { %3408 = vmatpush.bf16.msrb.mxu1 %v5108_v5  ;;  %v5396_v5 = vor.u32 %v6648_v56, %v5395_v54  ;;  %v7150_v26 = vpack.c.bf16 %v108_v4, %v108_v4  ;;  %v5499_v54 = vld [vmem:[#allocation5 + $0x9c0] sm:$0xf] }
  0x8c   :  { %3421 = vmatpush.bf16.msrb.mxu2 %v5172_v6  ;;  %v5460_v6 = vor.u32 %v6664_v58, %v5459_v57  ;;  %v5372_v57 = vor.u32 %v6642_v51, %v5371_v49  ;;  %v5436_v58 = vor.u32 %v6658_v53, %v5435_v52  ;;  %v5339_v49 = vld [vmem:[#allocation5 + $0x880] sm:$0xf]  ;;  %v6650_v53 = vld [vmem:[#allocation5 + $0x904] sm:$0xf0] }
  0x8d   :  { %3434 = vmatpush.bf16.msrb.mxu3 %v5236_v12  ;;  %v5524_v12 = vor.u32 %v6680_v62, %v5523_v61  ;;  %v5363_v61 = vld [vmem:[#allocation5 + $0x8b0] sm:$0xf]  ;;  %v5403_v51 = vld [vmem:[#allocation5 + $0x900] sm:$0xf] }
  0x8e   :  { %3396 = vmatpush.bf16.msrb.mxu0 %v5036_v20  ;;  %v7148_v20 = vpack.c.bf16 %v106_v3, %v106_v3  ;;  %v6672_v3 = vld [vmem:[#allocation5 + $0x9b4] sm:$0xf0] }
  0x8f   :  { %3409 = vmatpush.bf16.msrb.mxu1 %v5100_v21  ;;  %v5515_v21 = vld [vmem:[#allocation5 + $0x9e0] sm:$0xf] }
  0x90   :  { %3422 = vmatpush.bf16.msrb.mxu2 %v5164_v24  ;;  %v6678_v24 = vld [vmem:[#allocation5 + $0x9e4] sm:$0xf0] }
  0x91   :  { %3435 = vmatpush.bf16.msrb.mxu3 %v5228_v30  ;;  %v5452_v30 = vor.u32 %v6662_v17, %v5451_v16  ;;  %v5516_v35 = vor.u32 %v6678_v24, %v5515_v21  ;;  %v5419_v16 = vld [vmem:[#allocation5 + $0x920] sm:$0xf]  ;;  %v6654_v17 = vld [vmem:[#allocation5 + $0x924] sm:$0xf0] }
  0x92   :  { %3397 = vmatpush.bf16.msrb.mxu0 %v5028_v39  ;;  %v5443_v39 = vld [vmem:[#allocation5 + $0x950] sm:$0xf]  ;;  %v5483_v21 = vld [vmem:[#allocation5 + $0x9a0] sm:$0xf]  ;;  %v6670_v24 = vld [vmem:[#allocation5 + $0x9a4] sm:$0xf0] }
  0x93   :  { %3410 = vmatpush.bf16.msrb.mxu1 %v5092_v43  ;;  %v6676_v43 = vld [vmem:[#allocation5 + $0x9d4] sm:$0xf0]  ;;  %v5444_v46 = vor.u32 %v6660_v41, %v5443_v39  ;;  %v5411_v39 = vld [vmem:[#allocation5 + $0x910] sm:$0xf] }
  0x94   :  { %3423 = vmatpush.bf16.msrb.mxu2 %v5156_v44  ;;  %v5316_v44 = vor.u32 %v6628_v32, %v5315_v31  ;;  %v5508_v50 = vor.u32 %v6676_v43, %v5507_v42  ;;  %v5283_v31 = vld [vmem:[#allocation5 + $0x810] sm:$0xf]  ;;  %v6620_v32 = vld [vmem:[#allocation5 + $0x814] sm:$0xf0] }
  0x95   :  { %3436 = vmatpush.bf16.msrb.mxu3 %v5220_v48  ;;  %v6626_v48 = vld [vmem:[#allocation5 + $0x844] sm:$0xf0]  ;;  %v6652_v41 = vld [vmem:[#allocation5 + $0x914] sm:$0xf0]  ;;  %v5475_v42 = vld [vmem:[#allocation5 + $0x990] sm:$0xf] }
  0x96   :  { %3398 = vmatpush.bf16.msrb.mxu0 %v5020_v55  ;;  %v6674_v55 = vld [vmem:[#allocation5 + $0x9c4] sm:$0xf0]  ;;  %v5308_v56 = vor.u32 %v6626_v48, %v5307_v47  ;;  %v6668_v43 = vld [vmem:[#allocation5 + $0x994] sm:$0xf0]  ;;  %v5348_v47 = vor.u32 %v6636_v36, %v5347_v33  ;;  %v5412_v48 = vor.u32 %v6652_v41, %v5411_v39  ;;  %v5771_v33 = vld [vmem:[#allocation5 + $0xbe0] sm:$0xf] }
  0x97   :  { %3411 = vmatpush.bf16.msrb.mxu1 %v5084_v59  ;;  %v5299_v59 = vld [vmem:[#allocation5 + $0x830] sm:$0xf]  ;;  %v5500_v62 = vor.u32 %v6674_v55, %v5499_v54  ;;  %v5476_v52 = vor.u32 %v6668_v43, %v5475_v42  ;;  %v5467_v54 = vld [vmem:[#allocation5 + $0x980] sm:$0xf]  ;;  %v6666_v55 = vld [vmem:[#allocation5 + $0x984] sm:$0xf0] }
  0x98   :  { %3424 = vmatpush.bf16.msrb.mxu2 %v5148_v60  ;;  %v6624_v60 = vld [vmem:[#allocation5 + $0x834] sm:$0xf0]  ;;  %v5571_v43 = vld [vmem:[#allocation5 + $0xa50] sm:$0xf] }
  0x99   :  { %3437 = vmatpush.bf16.msrb.mxu3 %v5212_v0  ;;  %3399 = vmatmul.bf16.vlgmr.msrb.gmra.mxu0 %v7144_v13  ;;  %v5427_v0 = vld [vmem:[#allocation5 + $0x930] sm:$0xf]  ;;  %v5300_v4 = vor.u32 %v6624_v60, %v5299_v59  ;;  %v6712_v60 = vld [vmem:[#allocation5 + $0xaf4] sm:$0xf0] }
  0x9a   :  { %3443 = vmatpush.bf16.msra.mxu0 %v5332_v1  ;;  %3412 = vmatmul.bf16.vlgmr.msrb.gmra.mxu1 %v7148_v20  ;;  %v6656_v1 = vld [vmem:[#allocation5 + $0x934] sm:$0xf0] }
  0x9b   :  { %3456 = vmatpush.bf16.msra.mxu1 %v5396_v5  ;;  %3425 = vmatmul.bf16.vlgmr.msrb.gmra.mxu2 %v7146_v19  ;;  %v5364_v5 = vor.u32 %v6640_v63, %v5363_v61  ;;  %v5715_v61 = vld [vmem:[#allocation5 + $0xb70] sm:$0xf] }
  0x9c   :  { %3469 = vmatpush.bf16.msra.mxu2 %v5460_v6  ;;  %3438 = vmatmul.bf16.vlgmr.msrb.gmra.mxu3 %v7150_v26  ;;  %v5428_v6 = vor.u32 %v6656_v1, %v5427_v0  ;;  %v5404_v0 = vor.u32 %v6650_v53, %v5403_v51  ;;  %v5779_v1 = vld [vmem:[#allocation5 + $0xbf0] sm:$0xf]  ;;  %v6740_v51 = vld [vmem:[#allocation5 + $0xbd4] sm:$0xf0]  ;;  %v5563_v53 = vld [vmem:[#allocation5 + $0xa40] sm:$0xf] }
  0x9d   :  { %3482 = vmatpush.bf16.msra.mxu3 %v5524_v12  ;;  %v5492_v12 = vor.u32 %v6672_v3, %v5491_v2  ;;  %v6744_v2 = vld [vmem:[#allocation5 + $0xbf4] sm:$0xf0]  ;;  %v109_v3 = vld [vmem:[#allocation2 + $0x80] sm:$0xff] }
  0x9e   :  { %3444 = vmatpush.bf16.msra.mxu0 %v5324_v28  ;;  %v5292_v28 = vor.u32 %v6622_v10, %v5291_v7  ;;  %v110_v7 = vld [vmem:[#allocation2 + $0x88] sm:$0xff]  ;;  %v112_v10 = vld [vmem:[#allocation2 + $0x98] sm:$0xff] }
  0x9f   :  { %3457 = vmatpush.bf16.msra.mxu1 %v5388_v29  ;;  %v5356_v29 = vor.u32 %v6638_v14, %v5355_v11  ;;  %v5579_v14 = vld [vmem:[#allocation5 + $0xa60] sm:$0xf]  ;;  %v7162_v36 = vpack.c.bf16 %v112_v10, %v112_v10 }
  0xa0   :  { %3470 = vmatpush.bf16.msra.mxu2 %v5452_v30  ;;  %v5420_v30 = vor.u32 %v6654_v17, %v5419_v16  ;;  %v6694_v16 = vld [vmem:[#allocation5 + $0xa64] sm:$0xf0]  ;;  %v5643_v17 = vld [vmem:[#allocation5 + $0xae0] sm:$0xf] }
  0xa1   :  { %3483 = vmatpush.bf16.msra.mxu3 %v5516_v35  ;;  %v5484_v35 = vor.u32 %v6670_v24, %v5483_v21  ;;  %v5780_v21 = vor.u32 %v6744_v2, %v5779_v1  ;;  %v7156_v24 = vpack.c.bf16 %v109_v3, %v109_v3  ;;  %v5580_v39 = vor.u32 %v6694_v16, %v5579_v14  ;;  %v5555_v2 = vld [vmem:[#allocation5 + $0xa30] sm:$0xf]  ;;  %v6720_v14 = vld [vmem:[#allocation5 + $0xb34] sm:$0xf0] }
  0xa2   :  { %3445 = vmatpush.bf16.msra.mxu0 %v5316_v44  ;;  %v5284_v44 = vor.u32 %v6620_v32, %v5283_v31  ;;  %v7160_v32 = vpack.c.bf16 %v110_v7, %v110_v7  ;;  %v5747_v16 = vld [vmem:[#allocation5 + $0xbb0] sm:$0xf] }
  0xa3   :  { %3458 = vmatpush.bf16.msra.mxu1 %v5380_v45  ;;  %v5275_v45 = vld [vmem:[#allocation5 + $0x800] sm:$0xf] }
  0xa4   :  { %3471 = vmatpush.bf16.msra.mxu2 %v5444_v46  ;;  %v6618_v46 = vld [vmem:[#allocation5 + $0x804] sm:$0xf0] }
  0xa5   :  { %3484 = vmatpush.bf16.msra.mxu3 %v5508_v50  ;;  %v6634_v50 = vld [vmem:[#allocation5 + $0x884] sm:$0xf0]  ;;  %v5276_v59 = vor.u32 %v6618_v46, %v5275_v45  ;;  %v5635_v45 = vld [vmem:[#allocation5 + $0xad0] sm:$0xf] }
  0xa6   :  { %3446 = vmatpush.bf16.msra.mxu0 %v5308_v56  ;;  %v5587_v56 = vld [vmem:[#allocation5 + $0xa70] sm:$0xf]  ;;  %v5340_v63 = vor.u32 %v6634_v50, %v5339_v49  ;;  %v6724_v49 = vld [vmem:[#allocation5 + $0xb54] sm:$0xf0] }
  0xa7   :  { %3459 = vmatpush.bf16.msra.mxu1 %v5372_v57  ;;  %v6696_v57 = vld [vmem:[#allocation5 + $0xa74] sm:$0xf0]  ;;  %v5763_v50 = vld [vmem:[#allocation5 + $0xbd0] sm:$0xf] }
  0xa8   :  { %3472 = vmatpush.bf16.msra.mxu2 %v5436_v58  ;;  %v5651_v58 = vld [vmem:[#allocation5 + $0xaf0] sm:$0xf] }
  0xa9   :  { %3485 = vmatpush.bf16.msra.mxu3 %v5500_v62  ;;  %v6728_v62 = vld [vmem:[#allocation5 + $0xb74] sm:$0xf0]  ;;  %v5652_v11 = vor.u32 %v6712_v60, %v5651_v58  ;;  %v6706_v58 = vld [vmem:[#allocation5 + $0xac4] sm:$0xf0]  ;;  %v5691_v60 = vld [vmem:[#allocation5 + $0xb40] sm:$0xf] }
  0xaa   :  { %3447 = vmatpush.bf16.msra.mxu0 %v5300_v4  ;;  %v5468_v4 = vor.u32 %v6666_v55, %v5467_v54 }
  0xab   :  { %3460 = vmatpush.bf16.msra.mxu1 %v5364_v5  ;;  %v5588_v5 = vor.u32 %v6696_v57, %v5587_v56  ;;  %v6690_v56 = vld [vmem:[#allocation5 + $0xa44] sm:$0xf0]  ;;  %v5627_v57 = vld [vmem:[#allocation5 + $0xac0] sm:$0xf] }
  0xac   :  { %3473 = vmatpush.bf16.msra.mxu2 %v5428_v6  ;;  %v111_v6 = vld [vmem:[#allocation2 + $0x90] sm:$0xff]  ;;  %v5564_v1 = vor.u32 %v6690_v56, %v5563_v53  ;;  %v5628_v3 = vor.u32 %v6706_v58, %v5627_v57  ;;  %v6684_v53 = vld [vmem:[#allocation5 + $0xa14] sm:$0xf0] }
  0xad   :  { %3486 = vmatpush.bf16.msra.mxu3 %v5492_v12  ;;  %v5716_v12 = vor.u32 %v6728_v62, %v5715_v61  ;;  %v7158_v31 = vpack.c.bf16 %v111_v6, %v111_v6  ;;  %v6722_v61 = vld [vmem:[#allocation5 + $0xb44] sm:$0xf0]  ;;  %v669_v62 = vld [vmem:[#allocation7] sm:$0x3]  ;;  %v5619_v6 = vld [vmem:[#allocation5 + $0xab0] sm:$0xf] }
  0xae   :  { %3448 = vmatpush.bf16.msra.mxu0 %v5292_v28  ;;  %v6710_v28 = vld [vmem:[#allocation5 + $0xae4] sm:$0xf0]  ;;  %v671_v7 = vperm.slane %v669_v62, 0  ;;  %v6700_v57 = vld [vmem:[#allocation5 + $0xa94] sm:$0xf0] }
  0xaf   :  { %3461 = vmatpush.bf16.msra.mxu1 %v5356_v29  ;;  %v5707_v29 = vld [vmem:[#allocation5 + $0xb60] sm:$0xf]  ;;  %v5644_v41 = vor.u32 %v6710_v28, %v5643_v17  ;;  %v6736_v17 = vld [vmem:[#allocation5 + $0xbb4] sm:$0xf0]  ;;  %v5667_v58 = vld [vmem:[#allocation5 + $0xb10] sm:$0xf] }
  0xb0   :  { %3474 = vmatpush.bf16.msra.mxu2 %v5420_v30  ;;  %v6726_v30 = vld [vmem:[#allocation5 + $0xb64] sm:$0xf0]  ;;  %v6732_v62 = vld [vmem:[#allocation5 + $0xb94] sm:$0xf0] }
  0xb1   :  { %3487 = vmatpush.bf16.msra.mxu3 %v5484_v35  ;;  %v6742_v35 = vld [vmem:[#allocation5 + $0xbe4] sm:$0xf0]  ;;  %v5708_v42 = vor.u32 %v6726_v30, %v5707_v29 }
  0xb2   :  { %3449 = vmatpush.bf16.msra.mxu0 %v5284_v44  ;;  %v6692_v44 = vld [vmem:[#allocation5 + $0xa54] sm:$0xf0]  ;;  %v5772_v46 = vor.u32 %v6742_v35, %v5771_v33  ;;  %v5547_v33 = vld [vmem:[#allocation5 + $0xa20] sm:$0xf]  ;;  %v6686_v35 = vld [vmem:[#allocation5 + $0xa24] sm:$0xf0] }
  0xb3   :  { %3462 = vmatpush.bf16.msra.mxu1 %v5348_v47  ;;  %v6708_v47 = vld [vmem:[#allocation5 + $0xad4] sm:$0xf0] }
  0xb4   :  { %3475 = vmatpush.bf16.msra.mxu2 %v5412_v48  ;;  %v5699_v48 = vld [vmem:[#allocation5 + $0xb50] sm:$0xf]  ;;  %v5636_v54 = vor.u32 %v6708_v47, %v5635_v45  ;;  %v6718_v45 = vld [vmem:[#allocation5 + $0xb24] sm:$0xf0] }
  0xb5   :  { %3488 = vmatpush.bf16.msra.mxu3 %v5476_v52  ;;  %v5572_v52 = vor.u32 %v6692_v44, %v5571_v43  ;;  %v5700_v55 = vor.u32 %v6724_v49, %v5699_v48  ;;  %v6702_v43 = vld [vmem:[#allocation5 + $0xaa4] sm:$0xf0]  ;;  %v5675_v44 = vld [vmem:[#allocation5 + $0xb20] sm:$0xf]  ;;  %v5548_v48 = vor.u32 %v6686_v35, %v5547_v33  ;;  %v6776_v35 = vld [vmem:[#allocation5 + $0xcf4] sm:$0xf0] }
  0xb6   :  { %3450 = vmatpush.bf16.msra.mxu0 %v5276_v59  ;;  %v5764_v59 = vor.u32 %v6740_v51, %v5763_v50  ;;  %v3244_v28 = vpop.f32.mrf.mxu0  ;;  %v6734_v47 = vld [vmem:[#allocation5 + $0xba4] sm:$0xf0]  ;;  %v5676_v51 = vor.u32 %v6718_v45, %v5675_v44  ;;  %v6035_v45 = vld [vmem:[#allocation5 + $0xdf0] sm:$0xf] }
  0xb7   :  { %3463 = vmatpush.bf16.msra.mxu1 %v5340_v63  ;;  %v5755_v63 = vld [vmem:[#allocation5 + $0xbc0] sm:$0xf] }
  0xb8   :  { %3476 = vmatpush.bf16.msra.mxu2 %v5404_v0  ;;  %v6738_v0 = vld [vmem:[#allocation5 + $0xbc4] sm:$0xf0] }
  0xb9   :  { %3489 = vmatpush.bf16.msra.mxu3 %v5468_v4  ;;  %3451 = vmatmul.bf16.vlgmr.msra.gmra.mxu0 %v7156_v24  ;;  %v5692_v4 = vor.u32 %v6722_v61, %v5691_v60  ;;  %v5756_v10 = vor.u32 %v6738_v0, %v5755_v63  ;;  %v5731_v61 = vld [vmem:[#allocation5 + $0xb90] sm:$0xf] }
  0xba   :  { %3495 = vmatpush.bf16.msrb.mxu0 %v5588_v5  ;;  %3464 = vmatmul.bf16.vlgmr.msra.gmra.mxu1 %v7160_v32  ;;  %v6688_v5 = vld [vmem:[#allocation5 + $0xa34] sm:$0xf0]  ;;  %v3257_v49 = vpop.f32.mrf.mxu1 }
  0xbb   :  { %3508 = vmatpush.bf16.msrb.mxu1 %v5652_v11  ;;  %3477 = vmatmul.bf16.vlgmr.msra.gmra.mxu2 %v7158_v31  ;;  %v6704_v11 = vld [vmem:[#allocation5 + $0xab4] sm:$0xf0] }
  0xbc   :  { %3521 = vmatpush.bf16.msrb.mxu2 %v5716_v12  ;;  %3490 = vmatmul.bf16.vlgmr.msra.gmra.mxu3 %v7162_v36  ;;  %v5683_v12 = vld [vmem:[#allocation5 + $0xb30] sm:$0xf]  ;;  %v5620_v29 = vor.u32 %v6704_v11, %v5619_v6  ;;  %v5659_v11 = vld [vmem:[#allocation5 + $0xb00] sm:$0xf] }
  0xbd   :  { %3534 = vmatpush.bf16.msrb.mxu3 %v5780_v21  ;;  %v5556_v21 = vor.u32 %v6688_v5, %v5555_v2  ;;  %v5684_v30 = vor.u32 %v6720_v14, %v5683_v12  ;;  %v5531_v2 = vld [vmem:[#allocation5 + $0xa00] sm:$0xf]  ;;  %v5732_v14 = vor.u32 %v6732_v62, %v5731_v61  ;;  %v6774_v62 = vld [vmem:[#allocation5 + $0xce4] sm:$0xf0] }
  0xbe   :  { %3496 = vmatpush.bf16.msrb.mxu0 %v5580_v39  ;;  %v5611_v39 = vld [vmem:[#allocation5 + $0xaa0] sm:$0xf]  ;;  %v3270_v60 = vpop.f32.mrf.mxu2 }
  0xbf   :  { %3509 = vmatpush.bf16.msrb.mxu1 %v5644_v41  ;;  %v3245_v41 = vadd.f32 %v3244_v28, %v671_v7  ;;  %v5612_v50 = vor.u32 %v6702_v43, %v5611_v39  ;;  %v3283_v0 = vpop.f32.mrf.mxu3  ;;  %v5595_v7 = vld [vmem:[#allocation5 + $0xa80] sm:$0xf]  ;;  %v5843_v28 = vld [vmem:[#allocation5 + $0xc70] sm:$0xf] }
  0xc0   :  { %3522 = vmatpush.bf16.msrb.mxu2 %v5708_v42  ;;  %v5748_v42 = vor.u32 %v6736_v17, %v5747_v16  ;;  %v6714_v16 = vld [vmem:[#allocation5 + $0xb04] sm:$0xf0]  ;;  %v5723_v17 = vld [vmem:[#allocation5 + $0xb80] sm:$0xf]  ;;  %v5971_v39 = vld [vmem:[#allocation5 + $0xd70] sm:$0xf] }
  0xc1   :  { %3535 = vmatpush.bf16.msrb.mxu3 %v5772_v46  ;;  %v5739_v46 = vld [vmem:[#allocation5 + $0xba0] sm:$0xf]  ;;  %v5660_v44 = vor.u32 %v6714_v16, %v5659_v11  ;;  %v5827_v11 = vld [vmem:[#allocation5 + $0xc50] sm:$0xf] }
  0xc2   :  { %3497 = vmatpush.bf16.msrb.mxu0 %v5572_v52  ;;  %v5539_v52 = vld [vmem:[#allocation5 + $0xa10] sm:$0xf]  ;;  %v5740_v56 = vor.u32 %v6734_v47, %v5739_v46  ;;  %v6808_v46 = vld [vmem:[#allocation5 + $0xdf4] sm:$0xf0]  ;;  %v113_v47 = vld [vmem:[#allocation2 + $0xa0] sm:$0xff] }
  0xc3   :  { %3510 = vmatpush.bf16.msrb.mxu1 %v5636_v54  ;;  %v5603_v54 = vld [vmem:[#allocation5 + $0xa90] sm:$0xf]  ;;  %v7170_v61 = vpack.c.bf16 %v113_v47, %v113_v47  ;;  %v5947_v47 = vld [vmem:[#allocation5 + $0xd40] sm:$0xf] }
  0xc4   :  { %3523 = vmatpush.bf16.msrb.mxu2 %v5700_v55  ;;  %v3258_v55 = vadd.f32 %v3257_v49, %v3245_v41  ;;  %v5604_v5 = vor.u32 %v6700_v57, %v5603_v54  ;;  %v6792_v41 = vld [vmem:[#allocation5 + $0xd74] sm:$0xf0]  ;;  %v6758_v57 = vld [vmem:[#allocation5 + $0xc64] sm:$0xf0]  ;;  %v5891_v16 = vld [vmem:[#allocation5 + $0xcd0] sm:$0xf] }
  0xc5   :  { %3536 = vmatpush.bf16.msrb.mxu3 %v5764_v59  ;;  %v6716_v59 = vld [vmem:[#allocation5 + $0xb14] sm:$0xf0] }
  0xc6   :  { %3498 = vmatpush.bf16.msrb.mxu0 %v5564_v1  ;;  %v3271_v63 = vadd.f32 %v3270_v60, %v3258_v55  ;;  %v5540_v1 = vor.u32 %v6684_v53, %v5539_v52  ;;  %v5668_v6 = vor.u32 %v6716_v59, %v5667_v58  ;;  %v116_v52 = vld [vmem:[#allocation2 + $0xb8] sm:$0xff]  ;;  %v3272_v53 = vpop.f32.mrf.mxu2  ;;  %v5972_v55 = vor.u32 %v6792_v41, %v5971_v39  ;;  %v5899_v58 = vld [vmem:[#allocation5 + $0xce0] sm:$0xf] }
  0xc7   :  { %3511 = vmatpush.bf16.msrb.mxu1 %v5628_v3  ;;  %v6682_v3 = vld [vmem:[#allocation5 + $0xa04] sm:$0xf0]  ;;  %v3285_v59 = vpop.f32.mrf.mxu3  ;;  %v6036_v60 = vor.u32 %v6808_v46, %v6035_v45 }
  0xc8   :  { %3524 = vmatpush.bf16.msrb.mxu2 %v5692_v4  ;;  %v3246_v4 = vpop.f32.mrf.mxu0  ;;  %v7168_v12 = vadd.f32 %v3283_v0, %v3271_v63  ;;  %v5532_v33 = vor.u32 %v6682_v3, %v5531_v2  ;;  %v5963_v63 = vld [vmem:[#allocation5 + $0xd60] sm:$0xf]  ;;  %v6790_v0 = vld [vmem:[#allocation5 + $0xd64] sm:$0xf0] }
  0xc9   :  { %3537 = vmatpush.bf16.msrb.mxu3 %v5756_v10  ;;  %v6698_v10 = vld [vmem:[#allocation5 + $0xa84] sm:$0xf0]  ;;  %v6027_v3 = vld [vmem:[#allocation5 + $0xde0] sm:$0xf] }
  0xca   :  { %3499 = vmatpush.bf16.msrb.mxu0 %v5556_v21  ;;  %v6730_v21 = vld [vmem:[#allocation5 + $0xb84] sm:$0xf0]  ;;  %v5596_v43 = vor.u32 %v6698_v10, %v5595_v7  ;;  %v5900_v7 = vor.u32 %v6774_v62, %v5899_v58  ;;  %v5964_v10 = vor.u32 %v6790_v0, %v5963_v63  ;;  %v6768_v62 = vld [vmem:[#allocation5 + $0xcb4] sm:$0xf0]  ;;  %v5939_v63 = vld [vmem:[#allocation5 + $0xd30] sm:$0xf] }
  0xcb   :  { %3512 = vmatpush.bf16.msrb.mxu1 %v5620_v29  ;;  %v6760_v29 = vld [vmem:[#allocation5 + $0xc74] sm:$0xf0]  ;;  %v6806_v4 = vld [vmem:[#allocation5 + $0xde4] sm:$0xf0] }
  0xcc   :  { %3525 = vmatpush.bf16.msrb.mxu2 %v5684_v30  ;;  %v5907_v30 = vld [vmem:[#allocation5 + $0xcf0] sm:$0xf]  ;;  %v5844_v49 = vor.u32 %v6760_v29, %v5843_v28  ;;  %v6788_v29 = vld [vmem:[#allocation5 + $0xd54] sm:$0xf0]  ;;  %v6770_v46 = vld [vmem:[#allocation5 + $0xcc4] sm:$0xf0] }
  0xcd   :  { %3538 = vmatpush.bf16.msrb.mxu3 %v5748_v42  ;;  %v3259_v42 = vpop.f32.mrf.mxu1  ;;  %v5908_v54 = vor.u32 %v6776_v35, %v5907_v30  ;;  %v5955_v28 = vld [vmem:[#allocation5 + $0xd50] sm:$0xf]  ;;  %v6784_v0 = vld [vmem:[#allocation5 + $0xd34] sm:$0xf0] }
  0xce   :  { %3500 = vmatpush.bf16.msrb.mxu0 %v5548_v48  ;;  %v5724_v48 = vor.u32 %v6730_v21, %v5723_v17  ;;  %v6028_v17 = vor.u32 %v6806_v4, %v6027_v3  ;;  %v6772_v21 = vld [vmem:[#allocation5 + $0xcd4] sm:$0xf0]  ;;  %v6019_v30 = vld [vmem:[#allocation5 + $0xdd0] sm:$0xf]  ;;  %v5956_v41 = vor.u32 %v6788_v29, %v5955_v28  ;;  %v5819_v42 = vld [vmem:[#allocation5 + $0xc40] sm:$0xf] }
  0xcf   :  { %3513 = vmatpush.bf16.msrb.mxu1 %v5612_v50  ;;  %v115_v50 = vld [vmem:[#allocation2 + $0xb0] sm:$0xff]  ;;  %v5892_v39 = vor.u32 %v6772_v21, %v5891_v16  ;;  %v6800_v4 = vld [vmem:[#allocation5 + $0xdb4] sm:$0xf0]  ;;  %v6750_v16 = vld [vmem:[#allocation5 + $0xc24] sm:$0xf0] }
  0xd0   :  { %3526 = vmatpush.bf16.msrb.mxu2 %v5676_v51  ;;  %v114_v51 = vld [vmem:[#allocation2 + $0xa8] sm:$0xff]  ;;  %v6003_v3 = vld [vmem:[#allocation5 + $0xdb0] sm:$0xf]  ;;  %v5931_v29 = vld [vmem:[#allocation5 + $0xd20] sm:$0xf] }
  0xd1   :  { %3539 = vmatpush.bf16.msrb.mxu3 %v5740_v56  ;;  %v5835_v56 = vld [vmem:[#allocation5 + $0xc60] sm:$0xf]  ;;  %v7174_v2 = vpack.c.bf16 %v114_v51, %v114_v51  ;;  %v6766_v28 = vld [vmem:[#allocation5 + $0xca4] sm:$0xf0] }
  0xd2   :  { %3501 = vmatpush.bf16.msrb.mxu0 %v5540_v1  ;;  %v7172_v1 = vpack.c.bf16 %v115_v50, %v115_v50  ;;  %v6802_v50 = vld [vmem:[#allocation5 + $0xdc4] sm:$0xf0] }
  0xd3   :  { %3514 = vmatpush.bf16.msrb.mxu1 %v5604_v5  ;;  %v7176_v5 = vpack.c.bf16 %v116_v52, %v116_v52 }
  0xd4   :  { %3527 = vmatpush.bf16.msrb.mxu2 %v5668_v6  ;;  %v5836_v6 = vor.u32 %v6758_v57, %v5835_v56  ;;  %v6752_v56 = vld [vmem:[#allocation5 + $0xc34] sm:$0xf0]  ;;  %v5875_v57 = vld [vmem:[#allocation5 + $0xcb0] sm:$0xf] }
  0xd5   :  { %3540 = vmatpush.bf16.msrb.mxu3 %v5732_v14  ;;  %v6756_v14 = vld [vmem:[#allocation5 + $0xc54] sm:$0xf0] }
  0xd6   :  { %3502 = vmatpush.bf16.msrb.mxu0 %v5532_v33  ;;  %v6804_v33 = vld [vmem:[#allocation5 + $0xdd4] sm:$0xf0]  ;;  %v5828_v35 = vor.u32 %v6756_v14, %v5827_v11  ;;  %v3296_v52 = vpop.f32.mrf.mxu0  ;;  %v5940_v11 = vor.u32 %v6784_v0, %v5939_v63  ;;  %v5803_v14 = vld [vmem:[#allocation5 + $0xc20] sm:$0xf]  ;;  %v6762_v0 = vld [vmem:[#allocation5 + $0xc84] sm:$0xf0] }
  0xd7   :  { %3515 = vmatpush.bf16.msrb.mxu1 %v5596_v43  ;;  %v6754_v43 = vld [vmem:[#allocation5 + $0xc44] sm:$0xf0]  ;;  %v6020_v45 = vor.u32 %v6804_v33, %v6019_v30  ;;  %v3297_v58 = vadd.f32 %v3296_v52, %v7168_v12  ;;  %v3309_v59 = vpop.f32.mrf.mxu1  ;;  %v6004_v12 = vor.u32 %v6800_v4, %v6003_v3  ;;  %v6764_v52 = vld [vmem:[#allocation5 + $0xc94] sm:$0xf0]  ;;  %v5851_v63 = vld [vmem:[#allocation5 + $0xc80] sm:$0xf] }
  0xd8   :  { %3528 = vmatpush.bf16.msrb.mxu2 %v5660_v44  ;;  %v5883_v44 = vld [vmem:[#allocation5 + $0xcc0] sm:$0xf]  ;;  %v5820_v51 = vor.u32 %v6754_v43, %v5819_v42  ;;  %v6782_v30 = vld [vmem:[#allocation5 + $0xd24] sm:$0xf0]  ;;  %v5804_v42 = vor.u32 %v6750_v16, %v5803_v14  ;;  %v6099_v16 = vld [vmem:[#allocation5 + $0xe70] sm:$0xf] }
  0xd9   :  { %3541 = vmatpush.bf16.msrb.mxu3 %v5724_v48  ;;  %3503 = vmatmul.bf16.vlgmr.msrb.gmra.mxu0 %v7170_v61  ;;  %v6786_v48 = vld [vmem:[#allocation5 + $0xd44] sm:$0xf0]  ;;  %v5884_v53 = vor.u32 %v6770_v46, %v5883_v44  ;;  %v5932_v46 = vor.u32 %v6782_v30, %v5931_v29  ;;  %v5915_v3 = vld [vmem:[#allocation5 + $0xd00] sm:$0xf]  ;;  %v6227_v29 = vld [vmem:[#allocation5 + $0xf70] sm:$0xf] }
  0xda   :  { %3547 = vmatpush.bf16.msra.mxu0 %v5844_v49  ;;  %3516 = vmatmul.bf16.vlgmr.msrb.gmra.mxu1 %v7174_v2  ;;  %v6011_v49 = vld [vmem:[#allocation5 + $0xdc0] sm:$0xf]  ;;  %v6856_v30 = vld [vmem:[#allocation5 + $0xf74] sm:$0xf0] }
  0xdb   :  { %3560 = vmatpush.bf16.msra.mxu1 %v5908_v54  ;;  %3529 = vmatmul.bf16.vlgmr.msrb.gmra.mxu2 %v7172_v1  ;;  %v5948_v54 = vor.u32 %v6786_v48, %v5947_v47  ;;  %v5795_v47 = vld [vmem:[#allocation5 + $0xc10] sm:$0xf]  ;;  %v6748_v48 = vld [vmem:[#allocation5 + $0xc14] sm:$0xf0] }
  0xdc   :  { %3573 = vmatpush.bf16.msra.mxu2 %v5972_v55  ;;  %3542 = vmatmul.bf16.vlgmr.msrb.gmra.mxu3 %v7176_v5  ;;  %v5811_v55 = vld [vmem:[#allocation5 + $0xc30] sm:$0xf] }
  0xdd   :  { %3586 = vmatpush.bf16.msra.mxu3 %v6036_v60  ;;  %v6012_v60 = vor.u32 %v6802_v50, %v6011_v49  ;;  %v5859_v49 = vld [vmem:[#allocation5 + $0xc90] sm:$0xf] }
  0xde   :  { %3548 = vmatpush.bf16.msra.mxu0 %v5836_v6  ;;  %v3310_v6 = vadd.f32 %v3309_v59, %v3297_v58  ;;  %v3322_v21 = vpop.f32.mrf.mxu2  ;;  %v3298_v44 = vpop.f32.mrf.mxu0  ;;  %v5787_v58 = vld [vmem:[#allocation5 + $0xc00] sm:$0xf]  ;;  %v6746_v59 = vld [vmem:[#allocation5 + $0xc04] sm:$0xf0] }
  0xdf   :  { %3561 = vmatpush.bf16.msra.mxu1 %v5900_v7  ;;  %v5812_v7 = vor.u32 %v6752_v56, %v5811_v55  ;;  %v3311_v50 = vpop.f32.mrf.mxu1  ;;  %v5987_v55 = vld [vmem:[#allocation5 + $0xd90] sm:$0xf]  ;;  %v6796_v56 = vld [vmem:[#allocation5 + $0xd94] sm:$0xf0] }
  0xe0   :  { %3574 = vmatpush.bf16.msra.mxu2 %v5964_v10  ;;  %v5876_v10 = vor.u32 %v6768_v62, %v5875_v57  ;;  %v3323_v33 = vadd.f32 %v3322_v21, %v3310_v6  ;;  %v5796_v57 = vor.u32 %v6748_v48, %v5795_v47  ;;  %v5988_v6 = vor.u32 %v6796_v56, %v5987_v55  ;;  %v6163_v21 = vld [vmem:[#allocation5 + $0xef0] sm:$0xf]  ;;  %v118_v47 = vld [vmem:[#allocation2 + $0xc8] sm:$0xff]  ;;  %v120_v48 = vld [vmem:[#allocation2 + $0xd8] sm:$0xff] }
  0xe1   :  { %3587 = vmatpush.bf16.msra.mxu3 %v6028_v17  ;;  %v5867_v17 = vld [vmem:[#allocation5 + $0xca0] sm:$0xf]  ;;  %v6228_v50 = vor.u32 %v6856_v30, %v6227_v29  ;;  %v6838_v56 = vld [vmem:[#allocation5 + $0xee4] sm:$0xf0] }
  0xe2   :  { %3549 = vmatpush.bf16.msra.mxu0 %v5828_v35  ;;  %v3335_v35 = vpop.f32.mrf.mxu3 }
  0xe3   :  { %3562 = vmatpush.bf16.msra.mxu1 %v5892_v39  ;;  %v5995_v39 = vld [vmem:[#allocation5 + $0xda0] sm:$0xf]  ;;  %v7183_v43 = vadd.f32 %v3335_v35, %v3323_v33  ;;  %v5852_v33 = vor.u32 %v6762_v0, %v5851_v63  ;;  %v6870_v63 = vld [vmem:[#allocation5 + $0xfe4] sm:$0xf0]  ;;  %v7191_v0 = vpack.c.bf16 %v120_v48, %v120_v48 }
  0xe4   :  { %3575 = vmatpush.bf16.msra.mxu2 %v5956_v41  ;;  %v6798_v41 = vld [vmem:[#allocation5 + $0xda4] sm:$0xf0]  ;;  %v6267_v48 = vld [vmem:[#allocation5 + $0xfc0] sm:$0xf] }
  0xe5   :  { %3588 = vmatpush.bf16.msra.mxu3 %v6020_v45  ;;  %v5868_v45 = vor.u32 %v6766_v28, %v5867_v17  ;;  %v6824_v17 = vld [vmem:[#allocation5 + $0xe74] sm:$0xf0] }
  0xe6   :  { %3550 = vmatpush.bf16.msra.mxu0 %v5820_v51  ;;  %v5996_v51 = vor.u32 %v6798_v41, %v5995_v39  ;;  %v3324_v4 = vpop.f32.mrf.mxu2  ;;  %v6840_v28 = vld [vmem:[#allocation5 + $0xef4] sm:$0xf0]  ;;  %v6291_v39 = vld [vmem:[#allocation5 + $0xff0] sm:$0xf] }
  0xe7   :  { %3563 = vmatpush.bf16.msra.mxu1 %v5884_v53  ;;  %v5923_v53 = vld [vmem:[#allocation5 + $0xd10] sm:$0xf]  ;;  %v6872_v41 = vld [vmem:[#allocation5 + $0xff4] sm:$0xf0] }
  0xe8   :  { %3576 = vmatpush.bf16.msra.mxu2 %v5948_v54  ;;  %v6780_v54 = vld [vmem:[#allocation5 + $0xd14] sm:$0xf0] }
  0xe9   :  { %3589 = vmatpush.bf16.msra.mxu3 %v6012_v60  ;;  %v5860_v60 = vor.u32 %v6764_v52, %v5859_v49  ;;  %v5924_v62 = vor.u32 %v6780_v54, %v5923_v53  ;;  %v6164_v49 = vor.u32 %v6840_v28, %v6163_v21  ;;  %v6822_v52 = vld [vmem:[#allocation5 + $0xe64] sm:$0xf0]  ;;  %v6155_v53 = vld [vmem:[#allocation5 + $0xee0] sm:$0xf]  ;;  %v6292_v54 = vor.u32 %v6872_v41, %v6291_v39  ;;  %v6852_v21 = vld [vmem:[#allocation5 + $0xf54] sm:$0xf0] }
  0xea   :  { %3551 = vmatpush.bf16.msra.mxu0 %v5812_v7  ;;  %v6778_v7 = vld [vmem:[#allocation5 + $0xd04] sm:$0xf0]  ;;  %v3337_v14 = vpop.f32.mrf.mxu3  ;;  %v6156_v4 = vor.u32 %v6838_v56, %v6155_v53  ;;  %v6868_v28 = vld [vmem:[#allocation5 + $0xfd4] sm:$0xf0]  ;;  %v6139_v41 = vld [vmem:[#allocation5 + $0xec0] sm:$0xf] }
  0xeb   :  { %3564 = vmatpush.bf16.msra.mxu1 %v5876_v10  ;;  %v5979_v10 = vld [vmem:[#allocation5 + $0xd80] sm:$0xf]  ;;  %v5916_v35 = vor.u32 %v6778_v7, %v5915_v3  ;;  %v6083_v7 = vld [vmem:[#allocation5 + $0xe50] sm:$0xf]  ;;  %v6818_v39 = vld [vmem:[#allocation5 + $0xe44] sm:$0xf0] }
  0xec   :  { %3577 = vmatpush.bf16.msra.mxu2 %v5940_v11  ;;  %v6794_v11 = vld [vmem:[#allocation5 + $0xd84] sm:$0xf0]  ;;  %v6067_v56 = vld [vmem:[#allocation5 + $0xe30] sm:$0xf] }
  0xed   :  { %3590 = vmatpush.bf16.msra.mxu3 %v6004_v12  ;;  %v5788_v12 = vor.u32 %v6746_v59, %v5787_v58  ;;  %v5980_v44 = vor.u32 %v6794_v11, %v5979_v10  ;;  %v6854_v58 = vld [vmem:[#allocation5 + $0xf64] sm:$0xf0]  ;;  %v6820_v10 = vld [vmem:[#allocation5 + $0xe54] sm:$0xf0]  ;;  %v6147_v11 = vld [vmem:[#allocation5 + $0xed0] sm:$0xf] }
  0xee   :  { %3552 = vmatpush.bf16.msra.mxu0 %v5804_v42  ;;  %v117_v42 = vld [vmem:[#allocation2 + $0xc0] sm:$0xff]  ;;  %v6084_v29 = vor.u32 %v6820_v10, %v6083_v7  ;;  %v6259_v7 = vld [vmem:[#allocation5 + $0xfb0] sm:$0xf]  ;;  %v6864_v10 = vld [vmem:[#allocation5 + $0xfb4] sm:$0xf0] }
  0xef   :  { %3565 = vmatpush.bf16.msra.mxu1 %v5868_v45  ;;  %v6100_v45 = vor.u32 %v6824_v17, %v6099_v16  ;;  %v7185_v55 = vpack.c.bf16 %v117_v42, %v117_v42  ;;  %v6836_v16 = vld [vmem:[#allocation5 + $0xed4] sm:$0xf0]  ;;  %v6211_v17 = vld [vmem:[#allocation5 + $0xf50] sm:$0xf] }
  0xf0   :  { %3578 = vmatpush.bf16.msra.mxu2 %v5932_v46  ;;  %v119_v46 = vld [vmem:[#allocation2 + $0xd0] sm:$0xff]  ;;  %v6148_v30 = vor.u32 %v6836_v16, %v6147_v11  ;;  %v6059_v16 = vld [vmem:[#allocation5 + $0xe20] sm:$0xf] }
  0xf1   :  { %3591 = vmatpush.bf16.msra.mxu3 %v5996_v51  ;;  %v6091_v51 = vld [vmem:[#allocation5 + $0xe60] sm:$0xf]  ;;  %v7187_v59 = vpack.c.bf16 %v119_v46, %v119_v46  ;;  %v6850_v46 = vld [vmem:[#allocation5 + $0xf44] sm:$0xf0] }
  0xf2   :  { %3553 = vmatpush.bf16.msra.mxu0 %v5796_v57  ;;  %v6219_v57 = vld [vmem:[#allocation5 + $0xf60] sm:$0xf]  ;;  %v6092_v3 = vor.u32 %v6822_v52, %v6091_v51 }
  0xf3   :  { %3566 = vmatpush.bf16.msra.mxu1 %v5860_v60  ;;  %v7189_v60 = vpack.c.bf16 %v118_v47, %v118_v47 }
  0xf4   :  { %3579 = vmatpush.bf16.msra.mxu2 %v5924_v62  ;;  %v6283_v62 = vld [vmem:[#allocation5 + $0xfe0] sm:$0xf] }
  0xf5   :  { %3592 = vmatpush.bf16.msra.mxu3 %v5988_v6  ;;  %v6220_v6 = vor.u32 %v6854_v58, %v6219_v57  ;;  %v6284_v14 = vor.u32 %v6870_v63, %v6283_v62  ;;  %v6816_v57 = vld [vmem:[#allocation5 + $0xe34] sm:$0xf0]  ;;  %v6131_v58 = vld [vmem:[#allocation5 + $0xeb0] sm:$0xf] }
  0xf6   :  { %3554 = vmatpush.bf16.msra.mxu0 %v5788_v12  ;;  %v6275_v12 = vld [vmem:[#allocation5 + $0xfd0] sm:$0xf]  ;;  %v3348_v47 = vpop.f32.mrf.mxu0  ;;  %v6068_v11 = vor.u32 %v6816_v57, %v6067_v56  ;;  %v6844_v57 = vld [vmem:[#allocation5 + $0xf14] sm:$0xf0] }
  0xf7   :  { %3567 = vmatpush.bf16.msra.mxu1 %v5852_v33  ;;  %v6212_v33 = vor.u32 %v6852_v21, %v6211_v17  ;;  %v6276_v42 = vor.u32 %v6868_v28, %v6275_v12  ;;  %v3361_v52 = vpop.f32.mrf.mxu1  ;;  %v6814_v17 = vld [vmem:[#allocation5 + $0xe24] sm:$0xf0]  ;;  %v6123_v21 = vld [vmem:[#allocation5 + $0xea0] sm:$0xf]  ;;  %v6260_v12 = vor.u32 %v6864_v10, %v6259_v7  ;;  %v6179_v56 = vld [vmem:[#allocation5 + $0xf10] sm:$0xf] }
  0xf8   :  { %3580 = vmatpush.bf16.msra.mxu2 %v5916_v35  ;;  %v6075_v35 = vld [vmem:[#allocation5 + $0xe40] sm:$0xf]  ;;  %v6180_v7 = vor.u32 %v6844_v57, %v6179_v56 }
  0xf9   :  { %3593 = vmatpush.bf16.msra.mxu3 %v5980_v44  ;;  %3555 = vmatmul.bf16.vlgmr.msra.gmra.mxu0 %v7185_v55  ;;  %v6834_v44 = vld [vmem:[#allocation5 + $0xec4] sm:$0xf0]  ;;  %v6076_v51 = vor.u32 %v6818_v39, %v6075_v35  ;;  %v6107_v10 = vld [vmem:[#allocation5 + $0xe80] sm:$0xf] }
  0xfa   :  { %3599 = vmatpush.bf16.msrb.mxu0 %v6100_v45  ;;  %3568 = vmatmul.bf16.vlgmr.msra.gmra.mxu1 %v7189_v60  ;;  %v6203_v45 = vld [vmem:[#allocation5 + $0xf40] sm:$0xf]  ;;  %v6140_v53 = vor.u32 %v6834_v44, %v6139_v41 }
  0xfb   :  { %3612 = vmatpush.bf16.msrb.mxu1 %v6164_v49  ;;  %3581 = vmatmul.bf16.vlgmr.msra.gmra.mxu2 %v7187_v59  ;;  %v6866_v49 = vld [vmem:[#allocation5 + $0xfc4] sm:$0xf0]  ;;  %v6251_v41 = vld [vmem:[#allocation5 + $0xfa0] sm:$0xf] }
  0xfc   :  { %3625 = vmatpush.bf16.msrb.mxu2 %v6228_v50  ;;  %3594 = vmatmul.bf16.vlgmr.msra.gmra.mxu3 %v7191_v0  ;;  %v3349_v50 = vadd.f32 %v3348_v47, %v7183_v43  ;;  %v6268_v62 = vor.u32 %v6866_v49, %v6267_v48 }
  0xfd   :  { %3638 = vmatpush.bf16.msrb.mxu3 %v6292_v54  ;;  %v6204_v54 = vor.u32 %v6850_v46, %v6203_v45  ;;  %v6060_v45 = vor.u32 %v6814_v17, %v6059_v16  ;;  %v6842_v16 = vld [vmem:[#allocation5 + $0xf04] sm:$0xf0]  ;;  %v6235_v17 = vld [vmem:[#allocation5 + $0xf80] sm:$0xf] }
  0xfe   :  { %3600 = vmatpush.bf16.msrb.mxu0 %v6092_v3  ;;  %v3362_v63 = vadd.f32 %v3361_v52, %v3349_v50  ;;  %v6832_v3 = vld [vmem:[#allocation5 + $0xeb4] sm:$0xf0]  ;;  %v3374_v28 = vpop.f32.mrf.mxu2  ;;  %v3350_v44 = vpop.f32.mrf.mxu0  ;;  %v6051_v50 = vld [vmem:[#allocation5 + $0xe10] sm:$0xf] }
  0xff   :  { %3613 = vmatpush.bf16.msrb.mxu1 %v6156_v4  ;;  %v6195_v4 = vld [vmem:[#allocation5 + $0xf30] sm:$0xf]  ;;  %v6132_v43 = vor.u32 %v6832_v3, %v6131_v58  ;;  %v3387_v39 = vpop.f32.mrf.mxu3  ;;  %v3363_v46 = vpop.f32.mrf.mxu1  ;;  %v6043_v3 = vld [vmem:[#allocation5 + $0xe00] sm:$0xf] }
 0x100   :  { %3626 = vmatpush.bf16.msrb.mxu2 %v6220_v6  ;;  %v6848_v6 = vld [vmem:[#allocation5 + $0xf34] sm:$0xf0]  ;;  %v3375_v35 = vadd.f32 %v3374_v28, %v3362_v63  ;;  %v6115_v52 = vld [vmem:[#allocation5 + $0xe90] sm:$0xf]  ;;  %v6375_v28 = vld [vmem:[#allocation5 + $0x74] sm:$0xf] }
 0x101   :  { %3639 = vmatpush.bf16.msrb.mxu3 %v6284_v14  ;;  %v6196_v14 = vor.u32 %v6848_v6, %v6195_v4  ;;  %v6243_v58 = vld [vmem:[#allocation5 + $0xf90] sm:$0xf]  ;;  %v6810_v4 = vld [vmem:[#allocation5 + $0xe04] sm:$0xf0]  ;;  %v6423_v46 = vld [vmem:[#allocation5 + $0x1f4] sm:$0xf] }
 0x102   :  { %3601 = vmatpush.bf16.msrb.mxu0 %v6084_v29  ;;  %v6830_v29 = vld [vmem:[#allocation5 + $0xea4] sm:$0xf0]  ;;  %v7198_v47 = vadd.f32 %v3387_v39, %v3375_v35  ;;  %v6044_v35 = vor.u32 %v6810_v4, %v6043_v3  ;;  %v4373_v39 = vld [vmem:[#allocation5 + $0xf8] sm:$0xf0] }
 0x103   :  { %3614 = vmatpush.bf16.msrb.mxu1 %v6148_v30  ;;  %v6187_v30 = vld [vmem:[#allocation5 + $0xf20] sm:$0xf]  ;;  %v6124_v48 = vor.u32 %v6830_v29, %v6123_v21  ;;  %v6858_v21 = vld [vmem:[#allocation5 + $0xf84] sm:$0xf0]  ;;  %v4309_v29 = vld [vmem:[#allocation5 + $0x78] sm:$0xf0] }
 0x104   :  { %3627 = vmatpush.bf16.msrb.mxu2 %v6212_v33  ;;  %v6846_v33 = vld [vmem:[#allocation5 + $0xf24] sm:$0xf0] }
 0x105   :  { %3640 = vmatpush.bf16.msrb.mxu3 %v6276_v42  ;;  %v6862_v42 = vld [vmem:[#allocation5 + $0xfa4] sm:$0xf0]  ;;  %v6188_v49 = vor.u32 %v6846_v33, %v6187_v30  ;;  %v6391_v30 = vld [vmem:[#allocation5 + $0xf4] sm:$0xf] }
 0x106   :  { %3602 = vmatpush.bf16.msrb.mxu0 %v6076_v51  ;;  %v6812_v51 = vld [vmem:[#allocation5 + $0xe14] sm:$0xf0]  ;;  %v4376_v56 = vor.u32 %v6391_v30, %v4373_v39  ;;  %v4293_v30 = vld [vmem:[#allocation5 + $0x58] sm:$0xf0] }
 0x107   :  { %3615 = vmatpush.bf16.msrb.mxu1 %v6140_v53  ;;  %v6252_v53 = vor.u32 %v6862_v42, %v6251_v41  ;;  %v6052_v63 = vor.u32 %v6812_v51, %v6051_v50  ;;  %v3389_v33 = vpop.f32.mrf.mxu3  ;;  %v6407_v41 = vld [vmem:[#allocation5 + $0x174] sm:$0xf]  ;;  %v4437_v42 = vld [vmem:[#allocation5 + $0x178] sm:$0xf0]  ;;  %v6236_v50 = vor.u32 %v6858_v21, %v6235_v17  ;;  %v4312_v51 = vor.u32 %v6375_v28, %v4309_v29 }
 0x108   :  { %3628 = vmatpush.bf16.msrb.mxu2 %v6204_v54  ;;  %v6828_v54 = vld [vmem:[#allocation5 + $0xe94] sm:$0xf0]  ;;  %v4440_v57 = vor.u32 %v6407_v41, %v4437_v42  ;;  %v6371_v29 = vld [vmem:[#allocation5 + $0x54] sm:$0xf]  ;;  %v4357_v39 = vld [vmem:[#allocation5 + $0xd8] sm:$0xf0] }
 0x109   :  { %3641 = vmatpush.bf16.msrb.mxu3 %v6268_v62  ;;  %v6860_v62 = vld [vmem:[#allocation5 + $0xf94] sm:$0xf0]  ;;  %v6116_v6 = vor.u32 %v6828_v54, %v6115_v52  ;;  %v123_v52 = vld [vmem:[#allocation2 + $0xf0] sm:$0xff]  ;;  %v4421_v42 = vld [vmem:[#allocation5 + $0x158] sm:$0xf0] }
 0x10a   :  { %3603 = vmatpush.bf16.msrb.mxu0 %v6068_v11  ;;  %v6826_v11 = vld [vmem:[#allocation5 + $0xe84] sm:$0xf0]  ;;  %v124_v54 = vld [vmem:[#allocation2 + $0xf8] sm:$0xff]  ;;  %v6387_v33 = vld [vmem:[#allocation5 + $0xd4] sm:$0xf] }
 0x10b   :  { %3616 = vmatpush.bf16.msrb.mxu1 %v6132_v43  ;;  %v6171_v43 = vld [vmem:[#allocation5 + $0xf00] sm:$0xf]  ;;  %v6108_v44 = vor.u32 %v6826_v11, %v6107_v10  ;;  %v4429_v10 = vld [vmem:[#allocation5 + $0x168] sm:$0xf0]  ;;  %v7202_v11 = vpack.c.bf16 %v123_v52, %v123_v52  ;;  %v7206_v17 = vpack.c.bf16 %v124_v54, %v124_v54  ;;  %v6403_v41 = vld [vmem:[#allocation5 + $0x154] sm:$0xf] }
 0x10c   :  { %3629 = vmatpush.bf16.msrb.mxu2 %v6196_v14  ;;  %v6244_v14 = vor.u32 %v6860_v62, %v6243_v58  ;;  %v6373_v58 = vld [vmem:[#allocation5 + $0x64] sm:$0xf]  ;;  %v4301_v62 = vld [vmem:[#allocation5 + $0x68] sm:$0xf0] }
 0x10d   :  { %3642 = vmatpush.bf16.msrb.mxu3 %v6260_v12  ;;  %v3376_v12 = vpop.f32.mrf.mxu2  ;;  %v4304_v21 = vor.u32 %v6373_v58, %v4301_v62  ;;  %v6385_v52 = vld [vmem:[#allocation5 + $0xc4] sm:$0xf]  ;;  %v4349_v54 = vld [vmem:[#allocation5 + $0xc8] sm:$0xf0] }
 0x10e   :  { %3604 = vmatpush.bf16.msrb.mxu0 %v6060_v45  ;;  %v6172_v45 = vor.u32 %v6842_v16, %v6171_v43  ;;  %v4493_v16 = vld [vmem:[#allocation5 + $0x1e8] sm:$0xf0]  ;;  %v6417_v62 = vld [vmem:[#allocation5 + $0x1c4] sm:$0xf] }
 0x10f   :  { %3617 = vmatpush.bf16.msrb.mxu1 %v6124_v48  ;;  %v4501_v48 = vld [vmem:[#allocation5 + $0x1f8] sm:$0xf0] }
 0x110   :  { %3630 = vmatpush.bf16.msrb.mxu2 %v6188_v49  ;;  %v121_v49 = vld [vmem:[#allocation2 + $0xe0] sm:$0xff]  ;;  %v4504_v3 = vor.u32 %v6423_v46, %v4501_v48  ;;  %v4296_v46 = vor.u32 %v6371_v29, %v4293_v30  ;;  %v4360_v48 = vor.u32 %v6387_v33, %v4357_v39  ;;  %v4341_v30 = vld [vmem:[#allocation5 + $0xb8] sm:$0xf0]  ;;  %v6399_v33 = vld [vmem:[#allocation5 + $0x134] sm:$0xf] }
 0x111   :  { %3643 = vmatpush.bf16.msrb.mxu3 %v6252_v53  ;;  %v122_v53 = vld [vmem:[#allocation2 + $0xe8] sm:$0xff]  ;;  %v7200_v4 = vpack.c.bf16 %v121_v49, %v121_v49  ;;  %v4424_v49 = vor.u32 %v6403_v41, %v4421_v42  ;;  %v6415_v39 = vld [vmem:[#allocation5 + $0x1b4] sm:$0xf]  ;;  %v4469_v41 = vld [vmem:[#allocation5 + $0x1b8] sm:$0xf0] }
 0x112   :  { %3605 = vmatpush.bf16.msrb.mxu0 %v6052_v63  ;;  %v6389_v63 = vld [vmem:[#allocation5 + $0xe4] sm:$0xf]  ;;  %v7204_v43 = vpack.c.bf16 %v122_v53, %v122_v53 }
 0x113   :  { %3618 = vmatpush.bf16.msrb.mxu1 %v6116_v6  ;;  %v4365_v6 = vld [vmem:[#allocation5 + $0xe8] sm:$0xf0] }
 0x114   :  { %3631 = vmatpush.bf16.msrb.mxu2 %v6180_v7  ;;  %v6405_v7 = vld [vmem:[#allocation5 + $0x164] sm:$0xf]  ;;  %v4368_v12 = vor.u32 %v6389_v63, %v4365_v6  ;;  %v4477_v63 = vld [vmem:[#allocation5 + $0x1c8] sm:$0xf0] }
 0x115   :  { %3644 = vmatpush.bf16.msrb.mxu3 %v6244_v14  ;;  %v6421_v14 = vld [vmem:[#allocation5 + $0x1e4] sm:$0xf]  ;;  %v4432_v28 = vor.u32 %v6405_v7, %v4429_v10  ;;  %v4352_v10 = vor.u32 %v6385_v52, %v4349_v54 }
 0x116   :  { %3606 = vmatpush.bf16.msrb.mxu0 %v6044_v35  ;;  %v4496_v35 = vor.u32 %v6421_v14, %v4493_v16  ;;  %v3400_v58 = vpop.f32.mrf.mxu0  ;;  %v6367_v16 = vld [vmem:[#allocation5 + $0x34] sm:$0xf]  ;;  %v6397_v52 = vld [vmem:[#allocation5 + $0x124] sm:$0xf] }
 0x117   :  { %3619 = vmatpush.bf16.msrb.mxu1 %v6108_v44  ;;  %v6419_v44 = vld [vmem:[#allocation5 + $0x1d4] sm:$0xf]  ;;  %v3413_v7 = vpop.f32.mrf.mxu1 }
 0x118   :  { %3632 = vmatpush.bf16.msrb.mxu2 %v6172_v45  ;;  %v4485_v45 = vld [vmem:[#allocation5 + $0x1d8] sm:$0xf0] }
 0x119   :  { %3645 = vmatpush.bf16.msrb.mxu3 %v6236_v50  ;;  %3607 = vmatmul.bf16.vlgmr.msrb.gmra.mxu0 %v7200_v4  ;;  %v6369_v50 = vld [vmem:[#allocation5 + $0x44] sm:$0xf]  ;;  %v4488_v53 = vor.u32 %v6419_v44, %v4485_v45 }
 0x11a   :  { %3651 = vmatpush.bf16.msra.mxu0 %v4312_v51  ;;  %3620 = vmatmul.bf16.vlgmr.msrb.gmra.mxu1 %v7204_v43  ;;  %v4285_v51 = vld [vmem:[#allocation5 + $0x48] sm:$0xf0]  ;;  %v6365_v45 = vld [vmem:[#allocation5 + $0x24] sm:$0xf] }
 0x11b   :  { %3664 = vmatpush.bf16.msra.mxu1 %v4376_v56  ;;  %3633 = vmatmul.bf16.vlgmr.msrb.gmra.mxu2 %v7202_v11  ;;  %v6401_v56 = vld [vmem:[#allocation5 + $0x144] sm:$0xf]  ;;  %v4288_v6 = vor.u32 %v6369_v50, %v4285_v51  ;;  %v4333_v51 = vld [vmem:[#allocation5 + $0xa8] sm:$0xf0] }
 0x11c   :  { %3677 = vmatpush.bf16.msra.mxu2 %v4440_v57  ;;  %3646 = vmatmul.bf16.vlgmr.msrb.gmra.mxu3 %v7206_v17  ;;  %v4413_v57 = vld [vmem:[#allocation5 + $0x148] sm:$0xf0] }
 0x11d   :  { %3690 = vmatpush.bf16.msra.mxu3 %v4504_v3  ;;  %v3401_v3 = vadd.f32 %v3400_v58, %v7198_v47  ;;  %v4416_v14 = vor.u32 %v6401_v56, %v4413_v57  ;;  %v6413_v57 = vld [vmem:[#allocation5 + $0x1a4] sm:$0xf]  ;;  %v4461_v58 = vld [vmem:[#allocation5 + $0x1a8] sm:$0xf0] }
 0x11e   :  { %3652 = vmatpush.bf16.msra.mxu0 %v4304_v21  ;;  %v4277_v21 = vld [vmem:[#allocation5 + $0x38] sm:$0xf0]  ;;  %v3426_v50 = vpop.f32.mrf.mxu2 }
 0x11f   :  { %3665 = vmatpush.bf16.msra.mxu1 %v4368_v12  ;;  %v6383_v12 = vld [vmem:[#allocation5 + $0xb4] sm:$0xf]  ;;  %v3414_v29 = vadd.f32 %v3413_v7, %v3401_v3  ;;  %v4280_v42 = vor.u32 %v6367_v16, %v4277_v21  ;;  %v3439_v56 = vpop.f32.mrf.mxu3  ;;  %v3415_v3 = vpop.f32.mrf.mxu1  ;;  %v4261_v16 = vld [vmem:[#allocation5 + $0x18] sm:$0xf0] }
 0x120   :  { %3678 = vmatpush.bf16.msra.mxu2 %v4432_v28  ;;  %v4480_v28 = vor.u32 %v6417_v62, %v4477_v63  ;;  %v4344_v47 = vor.u32 %v6383_v12, %v4341_v30  ;;  %v3402_v62 = vpop.f32.mrf.mxu0  ;;  %v6379_v21 = vld [vmem:[#allocation5 + $0x94] sm:$0xf]  ;;  %v4464_v12 = vor.u32 %v6413_v57, %v4461_v58  ;;  %v4389_v30 = vld [vmem:[#allocation5 + $0x118] sm:$0xf0] }
 0x121   :  { %3691 = vmatpush.bf16.msra.mxu3 %v4496_v35  ;;  %v4405_v35 = vld [vmem:[#allocation5 + $0x138] sm:$0xf0]  ;;  %v3427_v54 = vadd.f32 %v3426_v50, %v3414_v29  ;;  %v6395_v29 = vld [vmem:[#allocation5 + $0x114] sm:$0xf] }
 0x122   :  { %3653 = vmatpush.bf16.msra.mxu0 %v4296_v46  ;;  %v4408_v44 = vor.u32 %v6399_v33, %v4405_v35  ;;  %v4269_v46 = vld [vmem:[#allocation5 + $0x28] sm:$0xf0]  ;;  %v6411_v33 = vld [vmem:[#allocation5 + $0x194] sm:$0xf]  ;;  %v4453_v35 = vld [vmem:[#allocation5 + $0x198] sm:$0xf0] }
 0x123   :  { %3666 = vmatpush.bf16.msra.mxu1 %v4360_v48  ;;  %v6381_v48 = vld [vmem:[#allocation5 + $0xa4] sm:$0xf]  ;;  %v4272_v63 = vor.u32 %v6365_v45, %v4269_v46  ;;  %v4317_v46 = vld [vmem:[#allocation5 + $0x88] sm:$0xf0]  ;;  %v4456_v50 = vor.u32 %v6411_v33, %v4453_v35  ;;  %v6455_v57 = vld [vmem:[#allocation5 + $0x2f4] sm:$0xf] }
 0x124   :  { %3679 = vmatpush.bf16.msra.mxu2 %v4424_v49  ;;  %v4472_v49 = vor.u32 %v6415_v39, %v4469_v41  ;;  %v4336_v7 = vor.u32 %v6381_v48, %v4333_v51  ;;  %v6361_v41 = vld [vmem:[#allocation5 + $0x4] sm:$0xf]  ;;  %v6471_v3 = vld [vmem:[#allocation5 + $0x374] sm:$0xf]  ;;  %v4557_v35 = vld [vmem:[#allocation5 + $0x268] sm:$0xf0] }
 0x125   :  { %3692 = vmatpush.bf16.msra.mxu3 %v4488_v53  ;;  %v4397_v53 = vld [vmem:[#allocation5 + $0x128] sm:$0xf0]  ;;  %v6377_v45 = vld [vmem:[#allocation5 + $0x84] sm:$0xf] }
 0x126   :  { %3654 = vmatpush.bf16.msra.mxu0 %v4288_v6  ;;  %v7213_v6 = vadd.f32 %v3439_v56, %v3427_v54  ;;  %v6393_v48 = vld [vmem:[#allocation5 + $0x104] sm:$0xf]  ;;  %v6439_v54 = vld [vmem:[#allocation5 + $0x274] sm:$0xf]  ;;  %v4565_v56 = vld [vmem:[#allocation5 + $0x278] sm:$0xf0] }
 0x127   :  { %3667 = vmatpush.bf16.msra.mxu1 %v4352_v10  ;;  %v4400_v10 = vor.u32 %v6397_v52, %v4397_v53  ;;  %v6409_v51 = vld [vmem:[#allocation5 + $0x184] sm:$0xf]  ;;  %v4445_v52 = vld [vmem:[#allocation5 + $0x188] sm:$0xf0]  ;;  %v3428_v53 = vpop.f32.mrf.mxu2  ;;  %v3441_v58 = vpop.f32.mrf.mxu3 }
 0x128   :  { %3680 = vmatpush.bf16.msra.mxu2 %v4416_v14  ;;  %v6363_v14 = vld [vmem:[#allocation5 + $0x14] sm:$0xf]  ;;  %v6437_v33 = vld [vmem:[#allocation5 + $0x264] sm:$0xf]  ;;  %v4685_v58 = vld [vmem:[#allocation5 + $0x368] sm:$0xf0] }
 0x129   :  { %3693 = vmatpush.bf16.msra.mxu3 %v4480_v28  ;;  %v4325_v28 = vld [vmem:[#allocation5 + $0x98] sm:$0xf0]  ;;  %v4264_v39 = vor.u32 %v6363_v14, %v4261_v16  ;;  %v6487_v16 = vld [vmem:[#allocation5 + $0x3f4] sm:$0xf]  ;;  %v6453_v53 = vld [vmem:[#allocation5 + $0x2e4] sm:$0xf] }
 0x12a   :  { %3655 = vmatpush.bf16.msra.mxu0 %v4280_v42  ;;  %v4253_v42 = vld [vmem:[#allocation5 + $0x8] sm:$0xf0] }
 0x12b   :  { %3668 = vmatpush.bf16.msra.mxu1 %v4344_v47  ;;  %v4328_v47 = vor.u32 %v6379_v21, %v4325_v28  ;;  %v4256_v62 = vor.u32 %v6361_v41, %v4253_v42  ;;  %v4757_v21 = vld [vmem:[#allocation5 + $0x3f8] sm:$0xf0]  ;;  %v4568_v28 = vor.u32 %v6439_v54, %v4565_v56  ;;  %v4621_v41 = vld [vmem:[#allocation5 + $0x2e8] sm:$0xf0]  ;;  %v6469_v42 = vld [vmem:[#allocation5 + $0x364] sm:$0xf] }
 0x12c   :  { %3681 = vmatpush.bf16.msra.mxu2 %v4408_v44  ;;  %v4392_v44 = vor.u32 %v6395_v29, %v4389_v30  ;;  %v4613_v54 = vld [vmem:[#allocation5 + $0x2d8] sm:$0xf0]  ;;  %v6467_v56 = vld [vmem:[#allocation5 + $0x354] sm:$0xf] }
 0x12d   :  { %3694 = vmatpush.bf16.msra.mxu3 %v4472_v49  ;;  %v4381_v49 = vld [vmem:[#allocation5 + $0x108] sm:$0xf0] }
 0x12e   :  { %3656 = vmatpush.bf16.msra.mxu0 %v4272_v63  ;;  %v4629_v63 = vld [vmem:[#allocation5 + $0x2f8] sm:$0xf0]  ;;  %v4384_v14 = vor.u32 %v6393_v48, %v4381_v49  ;;  %v4688_v48 = vor.u32 %v6469_v42, %v4685_v58  ;;  %v6447_v58 = vld [vmem:[#allocation5 + $0x2b4] sm:$0xf] }
 0x12f   :  { %3669 = vmatpush.bf16.msra.mxu1 %v4336_v7  ;;  %v4693_v7 = vld [vmem:[#allocation5 + $0x378] sm:$0xf0]  ;;  %v4632_v29 = vor.u32 %v6455_v57, %v4629_v63 }
 0x130   :  { %3682 = vmatpush.bf16.msra.mxu2 %v4400_v10  ;;  %v4320_v10 = vor.u32 %v6377_v45, %v4317_v46  ;;  %v4696_v30 = vor.u32 %v6471_v3, %v4693_v7  ;;  %v4560_v45 = vor.u32 %v6437_v33, %v4557_v35  ;;  %v4624_v46 = vor.u32 %v6453_v53, %v4621_v41  ;;  %v4549_v49 = vld [vmem:[#allocation5 + $0x258] sm:$0xf0]  ;;  %v4733_v33 = vld [vmem:[#allocation5 + $0x3c8] sm:$0xf0]  ;;  %v6431_v41 = vld [vmem:[#allocation5 + $0x234] sm:$0xf] }
 0x131   :  { %3695 = vmatpush.bf16.msra.mxu3 %v4464_v12  ;;  %v4448_v12 = vor.u32 %v6409_v51, %v4445_v52  ;;  %v6451_v51 = vld [vmem:[#allocation5 + $0x2d4] sm:$0xf]  ;;  %v4677_v57 = vld [vmem:[#allocation5 + $0x358] sm:$0xf0] }
 0x132   :  { %3657 = vmatpush.bf16.msra.mxu0 %v4264_v39  ;;  %v4760_v39 = vor.u32 %v6487_v16, %v4757_v21  ;;  %v4741_v63 = vld [vmem:[#allocation5 + $0x3d8] sm:$0xf0]  ;;  %v4616_v7 = vor.u32 %v6451_v51, %v4613_v54  ;;  %v4541_v16 = vld [vmem:[#allocation5 + $0x248] sm:$0xf0]  ;;  %v6449_v21 = vld [vmem:[#allocation5 + $0x2c4] sm:$0xf] }
 0x133   :  { %3670 = vmatpush.bf16.msra.mxu1 %v4328_v47  ;;  %v6485_v47 = vld [vmem:[#allocation5 + $0x3e4] sm:$0xf]  ;;  %v4533_v42 = vld [vmem:[#allocation5 + $0x238] sm:$0xf0] }
 0x134   :  { %3683 = vmatpush.bf16.msra.mxu2 %v4392_v44  ;;  %v4749_v44 = vld [vmem:[#allocation5 + $0x3e8] sm:$0xf0]  ;;  %v4536_v51 = vor.u32 %v6431_v41, %v4533_v42  ;;  %v6429_v54 = vld [vmem:[#allocation5 + $0x224] sm:$0xf]  ;;  %v6459_v41 = vld [vmem:[#allocation5 + $0x314] sm:$0xf] }
 0x135   :  { %3696 = vmatpush.bf16.msra.mxu3 %v4456_v50  ;;  %v6435_v50 = vld [vmem:[#allocation5 + $0x254] sm:$0xf]  ;;  %v4752_v52 = vor.u32 %v6485_v47, %v4749_v44  ;;  %v4645_v42 = vld [vmem:[#allocation5 + $0x318] sm:$0xf0] }
 0x136   :  { %3658 = vmatpush.bf16.msra.mxu0 %v4256_v62  ;;  %v6483_v62 = vld [vmem:[#allocation5 + $0x3d4] sm:$0xf]  ;;  %v4552_v3 = vor.u32 %v6435_v50, %v4549_v49  ;;  %v4725_v49 = vld [vmem:[#allocation5 + $0x3b8] sm:$0xf0] }
 0x137   :  { %3671 = vmatpush.bf16.msra.mxu1 %v4320_v10  ;;  %v4680_v10 = vor.u32 %v6467_v56, %v4677_v57  ;;  %v6479_v50 = vld [vmem:[#allocation5 + $0x3b4] sm:$0xf]  ;;  %v4525_v56 = vld [vmem:[#allocation5 + $0x228] sm:$0xf0]  ;;  %v6445_v57 = vld [vmem:[#allocation5 + $0x2a4] sm:$0xf] }
 0x138   :  { %3684 = vmatpush.bf16.msra.mxu2 %v4384_v14  ;;  %v6433_v14 = vld [vmem:[#allocation5 + $0x244] sm:$0xf] }
 0x139   :  { %3697 = vmatpush.bf16.msra.mxu3 %v4448_v12  ;;  %3659 = vmatmul.bf16.vlgmr.msra.gmra.mxu0 %v7110_v9  ;;  %v4744_v12 = vor.u32 %v6483_v62, %v4741_v63  ;;  %v6481_v9 = vld [vmem:[#allocation5 + $0x3c4] sm:$0xf]  ;;  %v4544_v35 = vor.u32 %v6433_v14, %v4541_v16  ;;  %v4728_v62 = vor.u32 %v6479_v50, %v4725_v49 }
 0x13a   :  { %3703 = vmatpush.bf16.msrb.mxu0 %v4568_v28  ;;  %3672 = vmatmul.bf16.vlgmr.msra.gmra.mxu1 %v7117_v25  ;;  %v6465_v28 = vld [vmem:[#allocation5 + $0x344] sm:$0xf]  ;;  %v3465_v25 = vpop.f32.mrf.mxu1  ;;  %v4736_v47 = vor.u32 %v6481_v9, %v4733_v33  ;;  %v4648_v50 = vor.u32 %v6459_v41, %v4645_v42 }
 0x13b   :  { %3716 = vmatpush.bf16.msrb.mxu1 %v4632_v29  ;;  %3685 = vmatmul.bf16.vlgmr.msra.gmra.mxu2 %v7108_v8  ;;  %v4605_v8 = vld [vmem:[#allocation5 + $0x2c8] sm:$0xf0]  ;;  %v6441_v49 = vld [vmem:[#allocation5 + $0x284] sm:$0xf] }
 0x13c   :  { %3729 = vmatpush.bf16.msrb.mxu2 %v4696_v30  ;;  %3698 = vmatmul.bf16.vlgmr.msra.gmra.mxu3 %v7112_v15  ;;  %v4669_v29 = vld [vmem:[#allocation5 + $0x348] sm:$0xf0]  ;;  %v3452_v30 = vpop.f32.mrf.mxu0  ;;  %v4608_v53 = vor.u32 %v6449_v21, %v4605_v8  ;;  %v6477_v21 = vld [vmem:[#allocation5 + $0x3a4] sm:$0xf] }
 0x13d   :  { %3742 = vmatpush.bf16.msrb.mxu3 %v4760_v39  ;;  %v3453_v15 = vadd.f32 %v3452_v30, %v7213_v6  ;;  %v4672_v39 = vor.u32 %v6465_v28, %v4669_v29  ;;  %v4528_v28 = vor.u32 %v6429_v54, %v4525_v56  ;;  %v4637_v54 = vld [vmem:[#allocation5 + $0x308] sm:$0xf0]  ;;  %v6473_v56 = vld [vmem:[#allocation5 + $0x384] sm:$0xf] }
 0x13e   :  { %3704 = vmatpush.bf16.msrb.mxu0 %v4560_v45  ;;  %v4597_v45 = vld [vmem:[#allocation5 + $0x2b8] sm:$0xf0]  ;;  %v3478_v63 = vpop.f32.mrf.mxu2  ;;  %v6517_v41 = vld [vmem:[#allocation5 + $0x4e4] sm:$0xf] }
 0x13f   :  { %3717 = vmatpush.bf16.msrb.mxu1 %v4624_v46  ;;  %v3466_v44 = vadd.f32 %v3465_v25, %v3453_v15  ;;  %v6463_v46 = vld [vmem:[#allocation5 + $0x334] sm:$0xf]  ;;  %v4600_v6 = vor.u32 %v6447_v58, %v4597_v45  ;;  %v3491_v16 = vpop.f32.mrf.mxu3  ;;  %v6425_v45 = vld [vmem:[#allocation5 + $0x204] sm:$0xf] }
 0x140   :  { %3730 = vmatpush.bf16.msrb.mxu2 %v4688_v48  ;;  %v4661_v48 = vld [vmem:[#allocation5 + $0x338] sm:$0xf0]  ;;  %v6427_v15 = vld [vmem:[#allocation5 + $0x214] sm:$0xf] }
 0x141   :  { %3743 = vmatpush.bf16.msrb.mxu3 %v4752_v52  ;;  %v4664_v52 = vor.u32 %v6463_v46, %v4661_v48  ;;  %v3479_v14 = vadd.f32 %v3478_v63, %v3466_v44  ;;  %v6443_v25 = vld [vmem:[#allocation5 + $0x294] sm:$0xf]  ;;  %v4509_v46 = vld [vmem:[#allocation5 + $0x208] sm:$0xf0] }
 0x142   :  { %3705 = vmatpush.bf16.msrb.mxu0 %v4552_v3  ;;  %v4589_v3 = vld [vmem:[#allocation5 + $0x2a8] sm:$0xf0]  ;;  %v3467_v29 = vpop.f32.mrf.mxu1  ;;  %v6475_v58 = vld [vmem:[#allocation5 + $0x394] sm:$0xf] }
 0x143   :  { %3718 = vmatpush.bf16.msrb.mxu1 %v4616_v7  ;;  %v6461_v7 = vld [vmem:[#allocation5 + $0x324] sm:$0xf]  ;;  %v7220_v30 = vadd.f32 %v3491_v16, %v3479_v14  ;;  %v4592_v9 = vor.u32 %v6445_v57, %v4589_v3  ;;  %v4701_v57 = vld [vmem:[#allocation5 + $0x388] sm:$0xf0]  ;;  %v6503_v63 = vld [vmem:[#allocation5 + $0x474] sm:$0xf]  ;;  %v4512_v14 = vor.u32 %v6425_v45, %v4509_v46 }
 0x144   :  { %3731 = vmatpush.bf16.msrb.mxu2 %v4680_v10  ;;  %v4653_v10 = vld [vmem:[#allocation5 + $0x328] sm:$0xf0]  ;;  %v3454_v8 = vpop.f32.mrf.mxu0  ;;  %v4821_v3 = vld [vmem:[#allocation5 + $0x478] sm:$0xf0]  ;;  %v6551_v29 = vld [vmem:[#allocation5 + $0x5f4] sm:$0xf] }
 0x145   :  { %3744 = vmatpush.bf16.msrb.mxu3 %v4744_v12  ;;  %v4717_v12 = vld [vmem:[#allocation5 + $0x3a8] sm:$0xf0]  ;;  %v4656_v33 = vor.u32 %v6461_v7, %v4653_v10  ;;  %v6519_v7 = vld [vmem:[#allocation5 + $0x4f4] sm:$0xf]  ;;  %v4885_v16 = vld [vmem:[#allocation5 + $0x4f8] sm:$0xf0] }
 0x146   :  { %3706 = vmatpush.bf16.msrb.mxu0 %v4544_v35  ;;  %v4517_v35 = vld [vmem:[#allocation5 + $0x218] sm:$0xf0]  ;;  %v6549_v45 = vld [vmem:[#allocation5 + $0x5e4] sm:$0xf]  ;;  %v5005_v46 = vld [vmem:[#allocation5 + $0x5e8] sm:$0xf0] }
 0x147   :  { %3719 = vmatpush.bf16.msrb.mxu1 %v4608_v53  ;;  %v4720_v53 = vor.u32 %v6477_v21, %v4717_v12  ;;  %v4520_v44 = vor.u32 %v6427_v15, %v4517_v35  ;;  %v3493_v10 = vpop.f32.mrf.mxu3  ;;  %v6535_v21 = vld [vmem:[#allocation5 + $0x574] sm:$0xf]  ;;  %v4949_v12 = vld [vmem:[#allocation5 + $0x578] sm:$0xf0]  ;;  %v4824_v15 = vor.u32 %v6503_v63, %v4821_v3  ;;  %v4888_v35 = vor.u32 %v6519_v7, %v4885_v16  ;;  %v6497_v16 = vld [vmem:[#allocation5 + $0x444] sm:$0xf] }
 0x148   :  { %3732 = vmatpush.bf16.msrb.mxu2 %v4672_v39  ;;  %v4581_v39 = vld [vmem:[#allocation5 + $0x298] sm:$0xf0]  ;;  %v6547_v63 = vld [vmem:[#allocation5 + $0x5d4] sm:$0xf] }
 0x149   :  { %3745 = vmatpush.bf16.msrb.mxu3 %v4736_v47  ;;  %v4709_v47 = vld [vmem:[#allocation5 + $0x398] sm:$0xf0]  ;;  %v4584_v48 = vor.u32 %v6443_v25, %v4581_v39  ;;  %v4952_v25 = vor.u32 %v6535_v21, %v4949_v12  ;;  %v4813_v39 = vld [vmem:[#allocation5 + $0x468] sm:$0xf0] }
 0x14a   :  { %3707 = vmatpush.bf16.msrb.mxu0 %v4536_v51  ;;  %v4573_v51 = vld [vmem:[#allocation5 + $0x288] sm:$0xf0]  ;;  %v4997_v3 = vld [vmem:[#allocation5 + $0x5d8] sm:$0xf0] }
 0x14b   :  { %3720 = vmatpush.bf16.msrb.mxu1 %v4600_v6  ;;  %v6457_v6 = vld [vmem:[#allocation5 + $0x304] sm:$0xf]  ;;  %v4576_v8 = vor.u32 %v6441_v49, %v4573_v51  ;;  %v6499_v51 = vld [vmem:[#allocation5 + $0x454] sm:$0xf]  ;;  %v4797_v21 = vld [vmem:[#allocation5 + $0x448] sm:$0xf0]  ;;  %v5000_v12 = vor.u32 %v6547_v63, %v4997_v3 }
 0x14c   :  { %3733 = vmatpush.bf16.msrb.mxu2 %v4664_v52  ;;  %v4712_v52 = vor.u32 %v6475_v58, %v4709_v47  ;;  %v4877_v58 = vld [vmem:[#allocation5 + $0x4e8] sm:$0xf0]  ;;  %v6533_v47 = vld [vmem:[#allocation5 + $0x564] sm:$0xf] }
 0x14d   :  { %3746 = vmatpush.bf16.msrb.mxu3 %v4728_v62  ;;  %v3480_v62 = vpop.f32.mrf.mxu2  ;;  %v4909_v63 = vld [vmem:[#allocation5 + $0x528] sm:$0xf0] }
 0x14e   :  { %3708 = vmatpush.bf16.msrb.mxu0 %v4528_v28  ;;  %v4640_v28 = vor.u32 %v6457_v6, %v4637_v54  ;;  %v4805_v6 = vld [vmem:[#allocation5 + $0x458] sm:$0xf0]  ;;  %v5008_v54 = vor.u32 %v6549_v45, %v5005_v46  ;;  %v6543_v46 = vld [vmem:[#allocation5 + $0x5b4] sm:$0xf] }
 0x14f   :  { %3721 = vmatpush.bf16.msrb.mxu1 %v4592_v9  ;;  %v5013_v9 = vld [vmem:[#allocation5 + $0x5f8] sm:$0xf0]  ;;  %v4808_v7 = vor.u32 %v6499_v51, %v4805_v6  ;;  %v6493_v51 = vld [vmem:[#allocation5 + $0x424] sm:$0xf]  ;;  %v4781_v6 = vld [vmem:[#allocation5 + $0x428] sm:$0xf0] }
 0x150   :  { %3734 = vmatpush.bf16.msrb.mxu2 %v4656_v33  ;;  %v4704_v33 = vor.u32 %v6473_v56, %v4701_v57  ;;  %v5016_v42 = vor.u32 %v6551_v29, %v5013_v9  ;;  %v4869_v56 = vld [vmem:[#allocation5 + $0x4d8] sm:$0xf0]  ;;  %v6531_v57 = vld [vmem:[#allocation5 + $0x554] sm:$0xf]  ;;  %v4925_v29 = vld [vmem:[#allocation5 + $0x548] sm:$0xf0] }
 0x151   :  { %3747 = vmatpush.bf16.msrb.mxu3 %v4720_v53  ;;  %v6501_v53 = vld [vmem:[#allocation5 + $0x464] sm:$0xf]  ;;  %v4933_v62 = vld [vmem:[#allocation5 + $0x558] sm:$0xf0] }
 0x152   :  { %3709 = vmatpush.bf16.msrb.mxu0 %v4520_v44  ;;  %v4941_v44 = vld [vmem:[#allocation5 + $0x568] sm:$0xf0]  ;;  %v4917_v45 = vld [vmem:[#allocation5 + $0x538] sm:$0xf0] }
 0x153   :  { %3722 = vmatpush.bf16.msrb.mxu1 %v4584_v48  ;;  %v4816_v48 = vor.u32 %v6501_v53, %v4813_v39  ;;  %v4944_v49 = vor.u32 %v6533_v47, %v4941_v44  ;;  %v6495_v53 = vld [vmem:[#allocation5 + $0x434] sm:$0xf]  ;;  %v4789_v39 = vld [vmem:[#allocation5 + $0x438] sm:$0xf0] }
 0x154   :  { %3735 = vmatpush.bf16.msrb.mxu2 %v4648_v50  ;;  %v4880_v50 = vor.u32 %v6517_v41, %v4877_v58  ;;  %v6511_v41 = vld [vmem:[#allocation5 + $0x4b4] sm:$0xf]  ;;  %v4853_v47 = vld [vmem:[#allocation5 + $0x4b8] sm:$0xf0] }
 0x155   :  { %3748 = vmatpush.bf16.msrb.mxu3 %v4712_v52  ;;  %v6515_v52 = vld [vmem:[#allocation5 + $0x4d4] sm:$0xf] }
 0x156   :  { %3710 = vmatpush.bf16.msrb.mxu0 %v4512_v14  ;;  %v4872_v10 = vor.u32 %v6515_v52, %v4869_v56  ;;  %v4936_v14 = vor.u32 %v6531_v57, %v4933_v62  ;;  %v3504_v9 = vpop.f32.mrf.mxu0  ;;  %v6527_v44 = vld [vmem:[#allocation5 + $0x534] sm:$0xf]  ;;  %v6509_v52 = vld [vmem:[#allocation5 + $0x4a4] sm:$0xf]  ;;  %v4845_v57 = vld [vmem:[#allocation5 + $0x4a8] sm:$0xf0] }
 0x157   :  { %3723 = vmatpush.bf16.msrb.mxu1 %v4576_v8  ;;  %v4861_v8 = vld [vmem:[#allocation5 + $0x4c8] sm:$0xf0]  ;;  %v6525_v62 = vld [vmem:[#allocation5 + $0x524] sm:$0xf] }
 0x158   :  { %3736 = vmatpush.bf16.msrb.mxu2 %v4640_v28  ;;  %v6529_v28 = vld [vmem:[#allocation5 + $0x544] sm:$0xf] }
 0x159   :  { %3749 = vmatpush.bf16.msrb.mxu3 %v4704_v33  ;;  %3711 = vmatmul.bf16.vlgmr.msrb.gmra.mxu0 %v7122_v37  ;;  %v6545_v37 = vld [vmem:[#allocation5 + $0x5c4] sm:$0xf]  ;;  %v4989_v33 = vld [vmem:[#allocation5 + $0x5c8] sm:$0xf0] }
 0x15a   :  { %3755 = vmatpush.bf16.msra.mxu0 %v4824_v15  ;;  %3724 = vmatmul.bf16.vlgmr.msrb.gmra.mxu1 %v7126_v40  ;;  %v4800_v15 = vor.u32 %v6497_v16, %v4797_v21  ;;  %v3517_v40 = vpop.f32.mrf.mxu1  ;;  %v4784_v21 = vor.u32 %v6493_v51, %v4781_v6  ;;  %v6567_v51 = vld [vmem:[#allocation5 + $0x674] sm:$0xf]  ;;  %v5077_v6 = vld [vmem:[#allocation5 + $0x678] sm:$0xf0] }
 0x15b   :  { %3768 = vmatpush.bf16.msra.mxu1 %v4888_v35  ;;  %3737 = vmatmul.bf16.vlgmr.msrb.gmra.mxu2 %v7120_v34  ;;  %v6513_v34 = vld [vmem:[#allocation5 + $0x4c4] sm:$0xf] }
 0x15c   :  { %3781 = vmatpush.bf16.msra.mxu2 %v4952_v25  ;;  %3750 = vmatmul.bf16.vlgmr.msrb.gmra.mxu3 %v7124_v38  ;;  %v3505_v38 = vadd.f32 %v3504_v9, %v7220_v30  ;;  %v4864_v35 = vor.u32 %v6513_v34, %v4861_v8  ;;  %v4928_v25 = vor.u32 %v6529_v28, %v4925_v29  ;;  %v6491_v29 = vld [vmem:[#allocation5 + $0x414] sm:$0xf]  ;;  %v4773_v9 = vld [vmem:[#allocation5 + $0x418] sm:$0xf0] }
 0x15d   :  { %3794 = vmatpush.bf16.msra.mxu3 %v5016_v42  ;;  %v4992_v42 = vor.u32 %v6545_v37, %v4989_v33  ;;  %v4856_v30 = vor.u32 %v6511_v41, %v4853_v47  ;;  %v4848_v8 = vor.u32 %v6509_v52, %v4845_v57  ;;  %v4912_v28 = vor.u32 %v6525_v62, %v4909_v63  ;;  %v6507_v37 = vld [vmem:[#allocation5 + $0x494] sm:$0xf]  ;;  %v4765_v41 = vld [vmem:[#allocation5 + $0x408] sm:$0xf0]  ;;  %v6505_v47 = vld [vmem:[#allocation5 + $0x484] sm:$0xf] }
 0x15e   :  { %3756 = vmatpush.bf16.msra.mxu0 %v4816_v48  ;;  %v3518_v58 = vadd.f32 %v3517_v40, %v3505_v38  ;;  %v4981_v48 = vld [vmem:[#allocation5 + $0x5b8] sm:$0xf0]  ;;  %v3530_v56 = vpop.f32.mrf.mxu2  ;;  %v3506_v16 = vpop.f32.mrf.mxu0  ;;  %v6583_v52 = vld [vmem:[#allocation5 + $0x6f4] sm:$0xf] }
 0x15f   :  { %3769 = vmatpush.bf16.msra.mxu1 %v4880_v50  ;;  %v4792_v50 = vor.u32 %v6495_v53, %v4789_v39  ;;  %v4837_v38 = vld [vmem:[#allocation5 + $0x498] sm:$0xf0]  ;;  %v4776_v53 = vor.u32 %v6491_v29, %v4773_v9  ;;  %v6489_v39 = vld [vmem:[#allocation5 + $0x404] sm:$0xf]  ;;  %v6599_v62 = vld [vmem:[#allocation5 + $0x774] sm:$0xf] }
 0x160   :  { %3782 = vmatpush.bf16.msra.mxu2 %v4944_v49  ;;  %v4920_v49 = vor.u32 %v6527_v44, %v4917_v45  ;;  %v3531_v3 = vadd.f32 %v3530_v56, %v3518_v58  ;;  %v4901_v40 = vld [vmem:[#allocation5 + $0x518] sm:$0xf0]  ;;  %v4829_v44 = vld [vmem:[#allocation5 + $0x488] sm:$0xf0]  ;;  %v6521_v45 = vld [vmem:[#allocation5 + $0x504] sm:$0xf]  ;;  %v4768_v56 = vor.u32 %v6489_v39, %v4765_v41 }
 0x161   :  { %3795 = vmatpush.bf16.msra.mxu3 %v5008_v54  ;;  %v4984_v54 = vor.u32 %v6543_v46, %v4981_v48  ;;  %v4893_v48 = vld [vmem:[#allocation5 + $0x508] sm:$0xf0]  ;;  %v5141_v57 = vld [vmem:[#allocation5 + $0x6f8] sm:$0xf0]  ;;  %v6581_v9 = vld [vmem:[#allocation5 + $0x6e4] sm:$0xf] }
 0x162   :  { %3757 = vmatpush.bf16.msra.mxu0 %v4808_v7  ;;  %v3543_v7 = vpop.f32.mrf.mxu3  ;;  %v3519_v34 = vpop.f32.mrf.mxu1  ;;  %v5205_v63 = vld [vmem:[#allocation5 + $0x778] sm:$0xf0]  ;;  %v5069_v29 = vld [vmem:[#allocation5 + $0x668] sm:$0xf0]  ;;  %v6563_v41 = vld [vmem:[#allocation5 + $0x654] sm:$0xf] }
 0x163   :  { %3770 = vmatpush.bf16.msra.mxu1 %v4872_v10  ;;  %v6541_v10 = vld [vmem:[#allocation5 + $0x5a4] sm:$0xf]  ;;  %v5144_v34 = vor.u32 %v6583_v52, %v5141_v57 }
 0x164   :  { %3783 = vmatpush.bf16.msra.mxu2 %v4936_v14  ;;  %v4973_v14 = vld [vmem:[#allocation5 + $0x5a8] sm:$0xf0]  ;;  %v6577_v52 = vld [vmem:[#allocation5 + $0x6c4] sm:$0xf] }
 0x165   :  { %3796 = vmatpush.bf16.msra.mxu3 %v5000_v12  ;;  %v7227_v12 = vadd.f32 %v3543_v7, %v3531_v3  ;;  %v4976_v33 = vor.u32 %v6541_v10, %v4973_v14  ;;  %v4832_v3 = vor.u32 %v6505_v47, %v4829_v44  ;;  %v4896_v7 = vor.u32 %v6521_v45, %v4893_v48  ;;  %v6615_v10 = vld [vmem:[#allocation5 + $0x7f4] sm:$0xf]  ;;  %v5269_v14 = vld [vmem:[#allocation5 + $0x7f8] sm:$0xf0]  ;;  %v6593_v57 = vld [vmem:[#allocation5 + $0x744] sm:$0xf] }
 0x166   :  { %3758 = vmatpush.bf16.msra.mxu0 %v4800_v15  ;;  %v6523_v15 = vld [vmem:[#allocation5 + $0x514] sm:$0xf]  ;;  %v5125_v44 = vld [vmem:[#allocation5 + $0x6d8] sm:$0xf0] }
 0x167   :  { %3771 = vmatpush.bf16.msra.mxu1 %v4864_v35  ;;  %v6539_v35 = vld [vmem:[#allocation5 + $0x594] sm:$0xf]  ;;  %v4904_v58 = vor.u32 %v6523_v15, %v4901_v40  ;;  %v5197_v15 = vld [vmem:[#allocation5 + $0x768] sm:$0xf0]  ;;  %v6613_v40 = vld [vmem:[#allocation5 + $0x7e4] sm:$0xf] }
 0x168   :  { %3784 = vmatpush.bf16.msra.mxu2 %v4928_v25  ;;  %v4965_v25 = vld [vmem:[#allocation5 + $0x598] sm:$0xf0]  ;;  %v6595_v45 = vld [vmem:[#allocation5 + $0x754] sm:$0xf] }
 0x169   :  { %3797 = vmatpush.bf16.msra.mxu3 %v4992_v42  ;;  %v4840_v42 = vor.u32 %v6507_v37, %v4837_v38  ;;  %v4968_v46 = vor.u32 %v6539_v35, %v4965_v25  ;;  %v5272_v37 = vor.u32 %v6615_v10, %v5269_v14  ;;  %v6597_v38 = vld [vmem:[#allocation5 + $0x764] sm:$0xf]  ;;  %v5261_v35 = vld [vmem:[#allocation5 + $0x7e8] sm:$0xf0]  ;;  %v6611_v48 = vld [vmem:[#allocation5 + $0x7d4] sm:$0xf] }
 0x16a   :  { %3759 = vmatpush.bf16.msra.mxu0 %v4792_v50  ;;  %v6537_v50 = vld [vmem:[#allocation5 + $0x584] sm:$0xf]  ;;  %v5200_v39 = vor.u32 %v6597_v38, %v5197_v15  ;;  %v5264_v47 = vor.u32 %v6613_v40, %v5261_v35  ;;  %v5237_v38 = vld [vmem:[#allocation5 + $0x7b8] sm:$0xf0] }
 0x16b   :  { %3772 = vmatpush.bf16.msra.mxu1 %v4856_v30  ;;  %v4957_v30 = vld [vmem:[#allocation5 + $0x588] sm:$0xf0]  ;;  %v6557_v35 = vld [vmem:[#allocation5 + $0x624] sm:$0xf] }
 0x16c   :  { %3785 = vmatpush.bf16.msra.mxu2 %v4920_v49  ;;  %v3532_v49 = vpop.f32.mrf.mxu2  ;;  %v4960_v16 = vor.u32 %v6537_v50, %v4957_v30  ;;  %v5253_v50 = vld [vmem:[#allocation5 + $0x7d8] sm:$0xf0] }
 0x16d   :  { %3798 = vmatpush.bf16.msra.mxu3 %v4984_v54  ;;  %v3545_v54 = vpop.f32.mrf.mxu3 }
 0x16e   :  { %3760 = vmatpush.bf16.msra.mxu0 %v4784_v21  ;;  %v5080_v21 = vor.u32 %v6567_v51, %v5077_v6  ;;  %v6561_v6 = vld [vmem:[#allocation5 + $0x644] sm:$0xf]  ;;  %v5256_v54 = vor.u32 %v6611_v48, %v5253_v50  ;;  %v5229_v48 = vld [vmem:[#allocation5 + $0x7a8] sm:$0xf0] }
 0x16f   :  { %3773 = vmatpush.bf16.msra.mxu1 %v4848_v8  ;;  %v5208_v8 = vor.u32 %v6599_v62, %v5205_v63  ;;  %v5245_v63 = vld [vmem:[#allocation5 + $0x7c8] sm:$0xf0] }
 0x170   :  { %3786 = vmatpush.bf16.msra.mxu2 %v4912_v28  ;;  %v6565_v28 = vld [vmem:[#allocation5 + $0x664] sm:$0xf] }
 0x171   :  { %3799 = vmatpush.bf16.msra.mxu3 %v4976_v33  ;;  %v5133_v33 = vld [vmem:[#allocation5 + $0x6e8] sm:$0xf0]  ;;  %v5072_v25 = vor.u32 %v6565_v28, %v5069_v29  ;;  %v5109_v29 = vld [vmem:[#allocation5 + $0x6b8] sm:$0xf0] }
 0x172   :  { %3761 = vmatpush.bf16.msra.mxu0 %v4776_v53  ;;  %v5136_v53 = vor.u32 %v6581_v9, %v5133_v33  ;;  %v6591_v9 = vld [vmem:[#allocation5 + $0x734] sm:$0xf] }
 0x173   :  { %3774 = vmatpush.bf16.msra.mxu1 %v4840_v42  ;;  %v5061_v42 = vld [vmem:[#allocation5 + $0x658] sm:$0xf0]  ;;  %v6607_v33 = vld [vmem:[#allocation5 + $0x7b4] sm:$0xf] }
 0x174   :  { %3787 = vmatpush.bf16.msra.mxu2 %v4904_v58  ;;  %v6579_v58 = vld [vmem:[#allocation5 + $0x6d4] sm:$0xf]  ;;  %v5064_v30 = vor.u32 %v6563_v41, %v5061_v42  ;;  %v5101_v42 = vld [vmem:[#allocation5 + $0x6a8] sm:$0xf0] }
 0x175   :  { %3800 = vmatpush.bf16.msra.mxu3 %v4968_v46  ;;  %v5189_v46 = vld [vmem:[#allocation5 + $0x758] sm:$0xf0]  ;;  %v5128_v49 = vor.u32 %v6579_v58, %v5125_v44  ;;  %v6589_v58 = vld [vmem:[#allocation5 + $0x724] sm:$0xf] }
 0x176   :  { %3762 = vmatpush.bf16.msra.mxu0 %v4768_v56  ;;  %v5192_v51 = vor.u32 %v6595_v45, %v5189_v46  ;;  %v5117_v56 = vld [vmem:[#allocation5 + $0x6c8] sm:$0xf0]  ;;  %v3556_v62 = vpop.f32.mrf.mxu0  ;;  %v6605_v46 = vld [vmem:[#allocation5 + $0x7a4] sm:$0xf] }
 0x177   :  { %3775 = vmatpush.bf16.msra.mxu1 %v4832_v3  ;;  %v5120_v10 = vor.u32 %v6577_v52, %v5117_v56  ;;  %v6555_v52 = vld [vmem:[#allocation5 + $0x614] sm:$0xf] }
 0x178   :  { %3788 = vmatpush.bf16.msra.mxu2 %v4896_v7  ;;  %v3569_v7 = vpop.f32.mrf.mxu1  ;;  %v6571_v56 = vld [vmem:[#allocation5 + $0x694] sm:$0xf] }
 0x179   :  { %3801 = vmatpush.bf16.msra.mxu3 %v4960_v16  ;;  %3763 = vmatmul.bf16.vlgmr.msra.gmra.mxu0 %v7132_v18  ;;  %v5053_v18 = vld [vmem:[#allocation5 + $0x648] sm:$0xf0]  ;;  %v6559_v16 = vld [vmem:[#allocation5 + $0x634] sm:$0xf] }
 0x17a   :  { %3807 = vmatpush.bf16.msrb.mxu0 %v5080_v21  ;;  %3776 = vmatmul.bf16.vlgmr.msra.gmra.mxu1 %v7136_v23  ;;  %v6609_v23 = vld [vmem:[#allocation5 + $0x7c4] sm:$0xf]  ;;  %v5056_v3 = vor.u32 %v6561_v6, %v5053_v18  ;;  %v5045_v21 = vld [vmem:[#allocation5 + $0x638] sm:$0xf0] }
 0x17b   :  { %3820 = vmatpush.bf16.msrb.mxu1 %v5144_v34  ;;  %3789 = vmatmul.bf16.vlgmr.msra.gmra.mxu2 %v7134_v22  ;;  %v5181_v22 = vld [vmem:[#allocation5 + $0x748] sm:$0xf0]  ;;  %v6575_v34 = vld [vmem:[#allocation5 + $0x6b4] sm:$0xf]  ;;  %v5048_v15 = vor.u32 %v6559_v16, %v5045_v21  ;;  %v6569_v21 = vld [vmem:[#allocation5 + $0x684] sm:$0xf] }
 0x17c   :  { %3833 = vmatpush.bf16.msrb.mxu2 %v5208_v8  ;;  %3802 = vmatmul.bf16.vlgmr.msra.gmra.mxu3 %v7138_v27  ;;  %v3557_v27 = vadd.f32 %v3556_v62, %v7227_v12  ;;  %v5184_v14 = vor.u32 %v6593_v57, %v5181_v22  ;;  %v5248_v8 = vor.u32 %v6609_v23, %v5245_v63  ;;  %v5093_v22 = vld [vmem:[#allocation5 + $0x698] sm:$0xf0]  ;;  %v6587_v62 = vld [vmem:[#allocation5 + $0x714] sm:$0xf] }
 0x17d   :  { %3846 = vmatpush.bf16.msrb.mxu3 %v5272_v37  ;;  %v5173_v37 = vld [vmem:[#allocation5 + $0x738] sm:$0xf0]  ;;  %v5112_v12 = vor.u32 %v6575_v34, %v5109_v29  ;;  %v5232_v57 = vor.u32 %v6605_v46, %v5229_v48  ;;  %v6603_v63 = vld [vmem:[#allocation5 + $0x794] sm:$0xf]  ;;  %v5085_v34 = vld [vmem:[#allocation5 + $0x688] sm:$0xf0] }
 0x17e   :  { %3808 = vmatpush.bf16.msrb.mxu0 %v5072_v25  ;;  %v3570_v28 = vadd.f32 %v3569_v7, %v3557_v27  ;;  %v5176_v40 = vor.u32 %v6591_v9, %v5173_v37  ;;  %v5037_v25 = vld [vmem:[#allocation5 + $0x628] sm:$0xf0]  ;;  %v3582_v41 = vpop.f32.mrf.mxu2  ;;  %v3558_v50 = vpop.f32.mrf.mxu0  ;;  %v5157_v23 = vld [vmem:[#allocation5 + $0x718] sm:$0xf0]  ;;  %v6553_v7 = vld [vmem:[#allocation5 + $0x604] sm:$0xf] }
 0x17f   :  { %3821 = vmatpush.bf16.msrb.mxu1 %v5136_v53  ;;  %v6573_v53 = vld [vmem:[#allocation5 + $0x6a4] sm:$0xf]  ;;  %v3595_v45 = vpop.f32.mrf.mxu3  ;;  %v5221_v27 = vld [vmem:[#allocation5 + $0x798] sm:$0xf0]  ;;  %v5160_v16 = vor.u32 %v6587_v62, %v5157_v23  ;;  %v5149_v29 = vld [vmem:[#allocation5 + $0x708] sm:$0xf0] }
 0x180   :  { %3834 = vmatpush.bf16.msrb.mxu2 %v5200_v39  ;;  %v5240_v39 = vor.u32 %v6607_v33, %v5237_v38  ;;  %v3583_v44 = vadd.f32 %v3582_v41, %v3570_v28  ;;  %v5104_v6 = vor.u32 %v6573_v53, %v5101_v42  ;;  %v5224_v28 = vor.u32 %v6603_v63, %v5221_v27  ;;  %v6601_v9 = vld [vmem:[#allocation5 + $0x784] sm:$0xf]  ;;  %v5213_v37 = vld [vmem:[#allocation5 + $0x788] sm:$0xf0]  ;;  %v6631_v38 = vld [vmem:[#allocation5 + $0x874] sm:$0xf] }
 0x181   :  { %3847 = vmatpush.bf16.msrb.mxu3 %v5264_v47  ;;  %v5165_v47 = vld [vmem:[#allocation5 + $0x728] sm:$0xf0]  ;;  %v6663_v53 = vld [vmem:[#allocation5 + $0x974] sm:$0xf]  ;;  %v5088_v41 = vor.u32 %v6569_v21, %v5085_v34  ;;  %v6629_v50 = vld [vmem:[#allocation5 + $0x864] sm:$0xf] }
 0x182   :  { %3809 = vmatpush.bf16.msrb.mxu0 %v5064_v30  ;;  %v5040_v30 = vor.u32 %v6557_v35, %v5037_v25  ;;  %v5168_v18 = vor.u32 %v6589_v58, %v5165_v47  ;;  %v5397_v25 = vld [vmem:[#allocation5 + $0x8f8] sm:$0xf0]  ;;  %v6679_v58 = vld [vmem:[#allocation5 + $0x9f4] sm:$0xf] }
 0x183   :  { %3822 = vmatpush.bf16.msrb.mxu1 %v5128_v49  ;;  %v3571_v49 = vpop.f32.mrf.mxu1  ;;  %v5525_v47 = vld [vmem:[#allocation5 + $0x9f8] sm:$0xf0]  ;;  %v6627_v63 = vld [vmem:[#allocation5 + $0x854] sm:$0xf] }
 0x184   :  { %3835 = vmatpush.bf16.msrb.mxu2 %v5192_v51  ;;  %v7234_v51 = vadd.f32 %v3595_v45, %v3583_v44  ;;  %v5216_v44 = vor.u32 %v6601_v9, %v5213_v37  ;;  %v6645_v49 = vld [vmem:[#allocation5 + $0x8e4] sm:$0xf]  ;;  %v5317_v27 = vld [vmem:[#allocation5 + $0x858] sm:$0xf0]  ;;  %v6675_v21 = vld [vmem:[#allocation5 + $0x9d4] sm:$0xf] }
 0x185   :  { %3848 = vmatpush.bf16.msrb.mxu3 %v5256_v54  ;;  %v5029_v54 = vld [vmem:[#allocation5 + $0x618] sm:$0xf0]  ;;  %v6625_v9 = vld [vmem:[#allocation5 + $0x844] sm:$0xf] }
 0x186   :  { %3810 = vmatpush.bf16.msrb.mxu0 %v5056_v3  ;;  %v5032_v3 = vor.u32 %v6555_v52, %v5029_v54  ;;  %v3584_v33 = vpop.f32.mrf.mxu2  ;;  %v6661_v52 = vld [vmem:[#allocation5 + $0x964] sm:$0xf]  ;;  %v5453_v54 = vld [vmem:[#allocation5 + $0x968] sm:$0xf0]  ;;  %v5509_v34 = vld [vmem:[#allocation5 + $0x9d8] sm:$0xf0] }
 0x187   :  { %3823 = vmatpush.bf16.msrb.mxu1 %v5120_v10  ;;  %v5021_v10 = vld [vmem:[#allocation5 + $0x608] sm:$0xf0]  ;;  %v5456_v23 = vor.u32 %v6661_v52, %v5453_v54  ;;  %v6641_v37 = vld [vmem:[#allocation5 + $0x8c4] sm:$0xf]  ;;  %v5512_v33 = vor.u32 %v6675_v21, %v5509_v34 }
 0x188   :  { %3836 = vmatpush.bf16.msrb.mxu2 %v5184_v14  ;;  %v5096_v14 = vor.u32 %v6571_v56, %v5093_v22  ;;  %v5024_v35 = vor.u32 %v6553_v7, %v5021_v10  ;;  %v6677_v56 = vld [vmem:[#allocation5 + $0x9e4] sm:$0xf]  ;;  %v5381_v10 = vld [vmem:[#allocation5 + $0x8d8] sm:$0xf0]  ;;  %v5293_v52 = vld [vmem:[#allocation5 + $0x828] sm:$0xf0] }
 0x189   :  { %3849 = vmatpush.bf16.msrb.mxu3 %v5248_v8  ;;  %v6585_v8 = vld [vmem:[#allocation5 + $0x704] sm:$0xf] }
 0x18a   :  { %3811 = vmatpush.bf16.msrb.mxu0 %v5048_v15  ;;  %v5333_v15 = vld [vmem:[#allocation5 + $0x878] sm:$0xf0]  ;;  %v5152_v42 = vor.u32 %v6585_v8, %v5149_v29  ;;  %v5320_v8 = vor.u32 %v6627_v63, %v5317_v27  ;;  %v6637_v54 = vld [vmem:[#allocation5 + $0x8a4] sm:$0xf] }
 0x18b   :  { %3824 = vmatpush.bf16.msrb.mxu1 %v5112_v12  ;;  %v6647_v12 = vld [vmem:[#allocation5 + $0x8f4] sm:$0xf]  ;;  %v5336_v45 = vor.u32 %v6631_v38, %v5333_v15  ;;  %v5373_v38 = vld [vmem:[#allocation5 + $0x8c8] sm:$0xf0]  ;;  %v6657_v15 = vld [vmem:[#allocation5 + $0x944] sm:$0xf] }
 0x18c   :  { %3837 = vmatpush.bf16.msrb.mxu2 %v5176_v40  ;;  %v3597_v40 = vpop.f32.mrf.mxu3  ;;  %v5400_v46 = vor.u32 %v6647_v12, %v5397_v25 }
 0x18d   :  { %3850 = vmatpush.bf16.msrb.mxu3 %v5240_v39  ;;  %v5461_v39 = vld [vmem:[#allocation5 + $0x978] sm:$0xf0]  ;;  %v5501_v40 = vld [vmem:[#allocation5 + $0x9c8] sm:$0xf0] }
 0x18e   :  { %3812 = vmatpush.bf16.msrb.mxu0 %v5040_v30  ;;  %v5464_v48 = vor.u32 %v6663_v53, %v5461_v39  ;;  %v5325_v30 = vld [vmem:[#allocation5 + $0x868] sm:$0xf0]  ;;  %v5376_v53 = vor.u32 %v6641_v37, %v5373_v38  ;;  %v5349_v37 = vld [vmem:[#allocation5 + $0x898] sm:$0xf0] }
 0x18f   :  { %3825 = vmatpush.bf16.msrb.mxu1 %v5104_v6  ;;  %v5528_v6 = vor.u32 %v6679_v58, %v5525_v47  ;;  %v5328_v22 = vor.u32 %v6629_v50, %v5325_v30  ;;  %v6639_v58 = vld [vmem:[#allocation5 + $0x8b4] sm:$0xf]  ;;  %v5493_v30 = vld [vmem:[#allocation5 + $0x9b8] sm:$0xf0] }
 0x190   :  { %3838 = vmatpush.bf16.msrb.mxu2 %v5168_v18  ;;  %v5389_v18 = vld [vmem:[#allocation5 + $0x8e8] sm:$0xf0]  ;;  %v6671_v50 = vld [vmem:[#allocation5 + $0x9b4] sm:$0xf]  ;;  %v5413_v38 = vld [vmem:[#allocation5 + $0x918] sm:$0xf0] }
 0x191   :  { %3851 = vmatpush.bf16.msrb.mxu3 %v5232_v57  ;;  %v5517_v57 = vld [vmem:[#allocation5 + $0x9e8] sm:$0xf0]  ;;  %v5392_v62 = vor.u32 %v6645_v49, %v5389_v18  ;;  %v6621_v18 = vld [vmem:[#allocation5 + $0x824] sm:$0xf] }
 0x192   :  { %3813 = vmatpush.bf16.msrb.mxu0 %v5032_v3  ;;  %v6643_v3 = vld [vmem:[#allocation5 + $0x8d4] sm:$0xf]  ;;  %v5520_v7 = vor.u32 %v6677_v56, %v5517_v57  ;;  %v5496_v56 = vor.u32 %v6671_v50, %v5493_v30 }
 0x193   :  { %3826 = vmatpush.bf16.msrb.mxu1 %v5096_v14  ;;  %v6659_v14 = vld [vmem:[#allocation5 + $0x954] sm:$0xf] }
 0x194   :  { %3839 = vmatpush.bf16.msrb.mxu2 %v5160_v16  ;;  %v5445_v16 = vld [vmem:[#allocation5 + $0x958] sm:$0xf0] }
 0x195   :  { %3852 = vmatpush.bf16.msrb.mxu3 %v5224_v28  ;;  %v5384_v28 = vor.u32 %v6643_v3, %v5381_v10  ;;  %v5448_v29 = vor.u32 %v6659_v14, %v5445_v16  ;;  %v6669_v3 = vld [vmem:[#allocation5 + $0x9a4] sm:$0xf]  ;;  %v5296_v14 = vor.u32 %v6621_v18, %v5293_v52 }
 0x196   :  { %3814 = vmatpush.bf16.msrb.mxu0 %v5024_v35  ;;  %v3608_v12 = vpop.f32.mrf.mxu0 }
 0x197   :  { %3827 = vmatpush.bf16.msrb.mxu1 %v5088_v41  ;;  %v3621_v25 = vpop.f32.mrf.mxu1  ;;  %v6623_v41 = vld [vmem:[#allocation5 + $0x834] sm:$0xf] }
 0x198   :  { %3840 = vmatpush.bf16.msrb.mxu2 %v5152_v42  ;;  %v5301_v42 = vld [vmem:[#allocation5 + $0x838] sm:$0xf0] }
 0x199   :  { %3853 = vmatpush.bf16.msrb.mxu3 %v5216_v44  ;;  %3815 = vmatmul.bf16.vlgmr.msrb.gmra.mxu0 %v7144_v13  ;;  %v5309_v13 = vld [vmem:[#allocation5 + $0x848] sm:$0xf0]  ;;  %v5304_v49 = vor.u32 %v6623_v41, %v5301_v42 }
 0x19a   :  { %3859 = vmatpush.bf16.msra.mxu0 %v5336_v45  ;;  %3828 = vmatmul.bf16.vlgmr.msrb.gmra.mxu1 %v7148_v20  ;;  %v6673_v20 = vld [vmem:[#allocation5 + $0x9c4] sm:$0xf]  ;;  %v5312_v35 = vor.u32 %v6625_v9, %v5309_v13  ;;  %v5365_v45 = vld [vmem:[#allocation5 + $0x8b8] sm:$0xf0]  ;;  %v6635_v9 = vld [vmem:[#allocation5 + $0x894] sm:$0xf] }
 0x19b   :  { %3872 = vmatpush.bf16.msra.mxu1 %v5400_v46  ;;  %3841 = vmatmul.bf16.vlgmr.msrb.gmra.mxu2 %v7146_v19  ;;  %v5437_v19 = vld [vmem:[#allocation5 + $0x948] sm:$0xf0]  ;;  %v5504_v47 = vor.u32 %v6673_v20, %v5501_v40  ;;  %v6655_v46 = vld [vmem:[#allocation5 + $0x934] sm:$0xf]  ;;  %v6617_v20 = vld [vmem:[#allocation5 + $0x804] sm:$0xf] }
 0x19c   :  { %3885 = vmatpush.bf16.msra.mxu2 %v5464_v48  ;;  %3854 = vmatmul.bf16.vlgmr.msrb.gmra.mxu3 %v7150_v26  ;;  %v3609_v26 = vadd.f32 %v3608_v12, %v7234_v51  ;;  %v5440_v39 = vor.u32 %v6657_v15, %v5437_v19  ;;  %v5429_v48 = vld [vmem:[#allocation5 + $0x938] sm:$0xf0]  ;;  %v5368_v51 = vor.u32 %v6639_v58, %v5365_v45  ;;  %v6667_v15 = vld [vmem:[#allocation5 + $0x994] sm:$0xf]  ;;  %v5277_v40 = vld [vmem:[#allocation5 + $0x808] sm:$0xf0] }
 0x19d   :  { %3898 = vmatpush.bf16.msra.mxu3 %v5528_v6  ;;  %v5432_v6 = vor.u32 %v6655_v46, %v5429_v48  ;;  %v5477_v19 = vld [vmem:[#allocation5 + $0x998] sm:$0xf0]  ;;  %v5405_v42 = vld [vmem:[#allocation5 + $0x908] sm:$0xf0]  ;;  %v6665_v58 = vld [vmem:[#allocation5 + $0x984] sm:$0xf]  ;;  %v5280_v30 = vor.u32 %v6617_v20, %v5277_v40 }
 0x19e   :  { %3860 = vmatpush.bf16.msra.mxu0 %v5328_v22  ;;  %v3622_v44 = vadd.f32 %v3621_v25, %v3609_v26  ;;  %v3634_v57 = vpop.f32.mrf.mxu2  ;;  %v5357_v22 = vld [vmem:[#allocation5 + $0x8a8] sm:$0xf0]  ;;  %v3610_v10 = vpop.f32.mrf.mxu0  ;;  %v5352_v26 = vor.u32 %v6635_v9, %v5349_v37  ;;  %v6633_v25 = vld [vmem:[#allocation5 + $0x884] sm:$0xf]  ;;  %v5480_v41 = vor.u32 %v6667_v15, %v5477_v19  ;;  %v6695_v45 = vld [vmem:[#allocation5 + $0xa74] sm:$0xf] }
 0x19f   :  { %3873 = vmatpush.bf16.msra.mxu1 %v5392_v62  ;;  %v6653_v62 = vld [vmem:[#allocation5 + $0x924] sm:$0xf]  ;;  %v3647_v27 = vpop.f32.mrf.mxu3  ;;  %v3623_v16 = vpop.f32.mrf.mxu1  ;;  %v5360_v34 = vor.u32 %v6637_v54, %v5357_v22  ;;  %v5589_v46 = vld [vmem:[#allocation5 + $0xa78] sm:$0xf0]  ;;  %v6711_v48 = vld [vmem:[#allocation5 + $0xaf4] sm:$0xf] }
 0x1a0   :  { %3886 = vmatpush.bf16.msra.mxu2 %v5456_v23  ;;  %v5421_v23 = vld [vmem:[#allocation5 + $0x928] sm:$0xf0]  ;;  %v3635_v63 = vadd.f32 %v3634_v57, %v3622_v44  ;;  %v6743_v54 = vld [vmem:[#allocation5 + $0xbf4] sm:$0xf]  ;;  %v5592_v22 = vor.u32 %v6695_v45, %v5589_v46  ;;  %v5573_v37 = vld [vmem:[#allocation5 + $0xa58] sm:$0xf0] }
 0x1a1   :  { %3899 = vmatpush.bf16.msra.mxu3 %v5520_v7  ;;  %v5485_v7 = vld [vmem:[#allocation5 + $0x9a8] sm:$0xf0]  ;;  %v5637_v15 = vld [vmem:[#allocation5 + $0xad8] sm:$0xf0]  ;;  %v6723_v19 = vld [vmem:[#allocation5 + $0xb54] sm:$0xf] }
 0x1a2   :  { %3861 = vmatpush.bf16.msra.mxu0 %v5320_v8  ;;  %v7241_v21 = vadd.f32 %v3647_v27, %v3635_v63  ;;  %v5424_v8 = vor.u32 %v6653_v62, %v5421_v23  ;;  %v5488_v13 = vor.u32 %v6669_v3, %v5485_v7  ;;  %v6693_v63 = vld [vmem:[#allocation5 + $0xa64] sm:$0xf]  ;;  %v5581_v27 = vld [vmem:[#allocation5 + $0xa68] sm:$0xf0]  ;;  %v6739_v20 = vld [vmem:[#allocation5 + $0xbd4] sm:$0xf] }
 0x1a3   :  { %3874 = vmatpush.bf16.msra.mxu1 %v5384_v28  ;;  %v6619_v28 = vld [vmem:[#allocation5 + $0x814] sm:$0xf]  ;;  %v6709_v3 = vld [vmem:[#allocation5 + $0xae4] sm:$0xf]  ;;  %v5645_v10 = vld [vmem:[#allocation5 + $0xae8] sm:$0xf0] }
 0x1a4   :  { %3887 = vmatpush.bf16.msra.mxu2 %v5448_v29  ;;  %v5285_v29 = vld [vmem:[#allocation5 + $0x818] sm:$0xf0]  ;;  %v5709_v16 = vld [vmem:[#allocation5 + $0xb68] sm:$0xf0] }
 0x1a5   :  { %3900 = vmatpush.bf16.msra.mxu3 %v5512_v33  ;;  %v6651_v33 = vld [vmem:[#allocation5 + $0x914] sm:$0xf]  ;;  %v5288_v12 = vor.u32 %v6619_v28, %v5285_v29  ;;  %v5584_v28 = vor.u32 %v6693_v63, %v5581_v27  ;;  %v5648_v29 = vor.u32 %v6709_v3, %v5645_v10  ;;  %v5765_v40 = vld [vmem:[#allocation5 + $0xbd8] sm:$0xf0]  ;;  %v5757_v45 = vld [vmem:[#allocation5 + $0xbc8] sm:$0xf0] }
 0x1a6   :  { %3862 = vmatpush.bf16.msra.mxu0 %v5312_v35  ;;  %v5416_v35 = vor.u32 %v6651_v33, %v5413_v38  ;;  %v3636_v44 = vpop.f32.mrf.mxu2  ;;  %v6707_v33 = vld [vmem:[#allocation5 + $0xad4] sm:$0xf]  ;;  %v5549_v10 = vld [vmem:[#allocation5 + $0xa28] sm:$0xf0] }
 0x1a7   :  { %3875 = vmatpush.bf16.msra.mxu1 %v5376_v53  ;;  %v5341_v53 = vld [vmem:[#allocation5 + $0x888] sm:$0xf0]  ;;  %v3649_v50 = vpop.f32.mrf.mxu3  ;;  %v6737_v44 = vld [vmem:[#allocation5 + $0xbc4] sm:$0xf] }
 0x1a8   :  { %3888 = vmatpush.bf16.msra.mxu2 %v5440_v39  ;;  %v6649_v39 = vld [vmem:[#allocation5 + $0x904] sm:$0xf]  ;;  %v5344_v18 = vor.u32 %v6633_v25, %v5341_v53  ;;  %v5640_v25 = vor.u32 %v6707_v33, %v5637_v15  ;;  %v5741_v33 = vld [vmem:[#allocation5 + $0xba8] sm:$0xf0] }
 0x1a9   :  { %3901 = vmatpush.bf16.msra.mxu3 %v5504_v47  ;;  %v5469_v47 = vld [vmem:[#allocation5 + $0x988] sm:$0xf0]  ;;  %v5408_v52 = vor.u32 %v6649_v39, %v5405_v42  ;;  %v6705_v39 = vld [vmem:[#allocation5 + $0xac4] sm:$0xf] }
 0x1aa   :  { %3863 = vmatpush.bf16.msra.mxu0 %v5304_v49  ;;  %v5653_v49 = vld [vmem:[#allocation5 + $0xaf8] sm:$0xf0]  ;;  %v5472_v57 = vor.u32 %v6665_v58, %v5469_v47  ;;  %v5768_v58 = vor.u32 %v6739_v20, %v5765_v40  ;;  %v6721_v47 = vld [vmem:[#allocation5 + $0xb44] sm:$0xf]  ;;  %v6683_v40 = vld [vmem:[#allocation5 + $0xa14] sm:$0xf] }
 0x1ab   :  { %3876 = vmatpush.bf16.msra.mxu1 %v5368_v51  ;;  %v6727_v51 = vld [vmem:[#allocation5 + $0xb74] sm:$0xf]  ;;  %v5656_v62 = vor.u32 %v6711_v48, %v5653_v49  ;;  %v5557_v49 = vld [vmem:[#allocation5 + $0xa38] sm:$0xf0] }
 0x1ac   :  { %3889 = vmatpush.bf16.msra.mxu2 %v5432_v6  ;;  %v5717_v6 = vld [vmem:[#allocation5 + $0xb78] sm:$0xf0] }
 0x1ad   :  { %3902 = vmatpush.bf16.msra.mxu3 %v5496_v56  ;;  %v5781_v56 = vld [vmem:[#allocation5 + $0xbf8] sm:$0xf0]  ;;  %v5720_v23 = vor.u32 %v6727_v51, %v5717_v6  ;;  %v6703_v51 = vld [vmem:[#allocation5 + $0xab4] sm:$0xf] }
 0x1ae   :  { %3864 = vmatpush.bf16.msra.mxu0 %v5296_v14  ;;  %v5784_v7 = vor.u32 %v6743_v54, %v5781_v56  ;;  %v6725_v14 = vld [vmem:[#allocation5 + $0xb64] sm:$0xf]  ;;  %v5621_v54 = vld [vmem:[#allocation5 + $0xab8] sm:$0xf0]  ;;  %v6719_v56 = vld [vmem:[#allocation5 + $0xb34] sm:$0xf] }
 0x1af   :  { %3877 = vmatpush.bf16.msra.mxu1 %v5360_v34  ;;  %v6741_v34 = vld [vmem:[#allocation5 + $0xbe4] sm:$0xf]  ;;  %v5712_v9 = vor.u32 %v6725_v14, %v5709_v16  ;;  %v5624_v27 = vor.u32 %v6703_v51, %v5621_v54  ;;  %v5845_v54 = vld [vmem:[#allocation5 + $0xc78] sm:$0xf0] }
 0x1b0   :  { %3890 = vmatpush.bf16.msra.mxu2 %v5424_v8  ;;  %v5773_v8 = vld [vmem:[#allocation5 + $0xbe8] sm:$0xf0]  ;;  %v6701_v14 = vld [vmem:[#allocation5 + $0xaa4] sm:$0xf] }
 0x1b1   :  { %3903 = vmatpush.bf16.msra.mxu3 %v5488_v13  ;;  %v6691_v13 = vld [vmem:[#allocation5 + $0xa54] sm:$0xf]  ;;  %v5776_v38 = vor.u32 %v6741_v34, %v5773_v8  ;;  %v5613_v8 = vld [vmem:[#allocation5 + $0xaa8] sm:$0xf0]  ;;  %v6729_v51 = vld [vmem:[#allocation5 + $0xb84] sm:$0xf] }
 0x1b2   :  { %3865 = vmatpush.bf16.msra.mxu0 %v5288_v12  ;;  %v5701_v12 = vld [vmem:[#allocation5 + $0xb58] sm:$0xf0] }
 0x1b3   :  { %3878 = vmatpush.bf16.msra.mxu1 %v5352_v26  ;;  %v5576_v26 = vor.u32 %v6691_v13, %v5573_v37  ;;  %v5704_v53 = vor.u32 %v6723_v19, %v5701_v12  ;;  %v6733_v37 = vld [vmem:[#allocation5 + $0xba4] sm:$0xf]  ;;  %v5616_v12 = vor.u32 %v6701_v14, %v5613_v8 }
 0x1b4   :  { %3891 = vmatpush.bf16.msra.mxu2 %v5416_v35  ;;  %v6689_v35 = vld [vmem:[#allocation5 + $0xa44] sm:$0xf] }
 0x1b5   :  { %3904 = vmatpush.bf16.msra.mxu3 %v5480_v41  ;;  %v6900_v41 = vld [vmem:[#allocation7] sm:$0x3]  ;;  %v6757_v8 = vld [vmem:[#allocation5 + $0xc64] sm:$0xf] }
 0x1b6   :  { %3866 = vmatpush.bf16.msra.mxu0 %v5280_v30  ;;  %v672_v42 = vperm.slane %v6900_v41, 1  ;;  %v3660_v46 = vpop.f32.mrf.mxu0  ;;  %v6687_v30 = vld [vmem:[#allocation5 + $0xa34] sm:$0xf]  ;;  %v5669_v41 = vld [vmem:[#allocation5 + $0xb18] sm:$0xf0] }
 0x1b7   :  { %3879 = vmatpush.bf16.msra.mxu1 %v5344_v18  ;;  %v3673_v18 = vpop.f32.mrf.mxu1  ;;  %v5560_v63 = vor.u32 %v6687_v30, %v5557_v49  ;;  %v5661_v49 = vld [vmem:[#allocation5 + $0xb08] sm:$0xf0] }
 0x1b8   :  { %3892 = vmatpush.bf16.msra.mxu2 %v5408_v52  ;;  %v3661_v6 = vadd.f32 %v3660_v46, %v672_v42  ;;  %v5760_v52 = vor.u32 %v6737_v44, %v5757_v45  ;;  %v6731_v42 = vld [vmem:[#allocation5 + $0xb94] sm:$0xf]  ;;  %v5597_v46 = vld [vmem:[#allocation5 + $0xa88] sm:$0xf0] }
 0x1b9   :  { %3905 = vmatpush.bf16.msra.mxu3 %v5472_v57  ;;  %3867 = vmatmul.bf16.vlgmr.msra.gmra.mxu0 %v7156_v24  ;;  %v5565_v24 = vld [vmem:[#allocation5 + $0xa48] sm:$0xf0]  ;;  %v5685_v57 = vld [vmem:[#allocation5 + $0xb38] sm:$0xf0] }
 0x1ba   :  { %3911 = vmatpush.bf16.msrb.mxu0 %v5592_v22  ;;  %3880 = vmatmul.bf16.vlgmr.msra.gmra.mxu1 %v7160_v32  ;;  %v5693_v32 = vld [vmem:[#allocation5 + $0xb48] sm:$0xf0]  ;;  %v6735_v22 = vld [vmem:[#allocation5 + $0xbb4] sm:$0xf]  ;;  %v5688_v3 = vor.u32 %v6719_v56, %v5685_v57 }
 0x1bb   :  { %3924 = vmatpush.bf16.msrb.mxu1 %v5656_v62  ;;  %3893 = vmatmul.bf16.vlgmr.msra.gmra.mxu2 %v7158_v31  ;;  %v5629_v31 = vld [vmem:[#allocation5 + $0xac8] sm:$0xf0]  ;;  %v5696_v50 = vor.u32 %v6721_v47, %v5693_v32  ;;  %v5749_v62 = vld [vmem:[#allocation5 + $0xbb8] sm:$0xf0]  ;;  %v6681_v47 = vld [vmem:[#allocation5 + $0xa04] sm:$0xf] }
 0x1bc   :  { %3937 = vmatpush.bf16.msrb.mxu2 %v5720_v23  ;;  %3906 = vmatmul.bf16.vlgmr.msra.gmra.mxu3 %v7162_v36  ;;  %v5568_v36 = vor.u32 %v6689_v35, %v5565_v24  ;;  %v5632_v48 = vor.u32 %v6705_v39, %v5629_v31  ;;  %v3674_v23 = vadd.f32 %v3673_v18, %v3661_v6  ;;  %v6699_v35 = vld [vmem:[#allocation5 + $0xa94] sm:$0xf]  ;;  %v5605_v24 = vld [vmem:[#allocation5 + $0xa98] sm:$0xf0]  ;;  %v5533_v32 = vld [vmem:[#allocation5 + $0xa08] sm:$0xf0] }
 0x1bd   :  { %3950 = vmatpush.bf16.msrb.mxu3 %v5784_v7  ;;  %v6685_v7 = vld [vmem:[#allocation5 + $0xa24] sm:$0xf]  ;;  %v5752_v34 = vor.u32 %v6735_v22, %v5749_v62  ;;  %v6715_v39 = vld [vmem:[#allocation5 + $0xb14] sm:$0xf]  ;;  %v5608_v44 = vor.u32 %v6699_v35, %v5605_v24  ;;  %v5725_v6 = vld [vmem:[#allocation5 + $0xb88] sm:$0xf0]  ;;  %v5536_v57 = vor.u32 %v6681_v47, %v5533_v32 }
 0x1be   :  { %3912 = vmatpush.bf16.msrb.mxu0 %v5584_v28  ;;  %v3686_v16 = vpop.f32.mrf.mxu2  ;;  %v6717_v28 = vld [vmem:[#allocation5 + $0xb24] sm:$0xf]  ;;  %v3662_v19 = vpop.f32.mrf.mxu0  ;;  %v5672_v45 = vor.u32 %v6715_v39, %v5669_v41  ;;  %v6775_v56 = vld [vmem:[#allocation5 + $0xcf4] sm:$0xf]  ;;  %v5909_v22 = vld [vmem:[#allocation5 + $0xcf8] sm:$0xf0] }
 0x1bf   :  { %3925 = vmatpush.bf16.msrb.mxu1 %v5648_v29  ;;  %v5677_v29 = vld [vmem:[#allocation5 + $0xb28] sm:$0xf0]  ;;  %v3699_v13 = vpop.f32.mrf.mxu3  ;;  %v6791_v62 = vld [vmem:[#allocation5 + $0xd74] sm:$0xf]  ;;  %v5829_v35 = vld [vmem:[#allocation5 + $0xc58] sm:$0xf0] }
 0x1c0   :  { %3938 = vmatpush.bf16.msrb.mxu2 %v5712_v9  ;;  %v3687_v9 = vadd.f32 %v3686_v16, %v3674_v23  ;;  %v5680_v20 = vor.u32 %v6717_v28, %v5677_v29  ;;  %v5973_v23 = vld [vmem:[#allocation5 + $0xd78] sm:$0xf0]  ;;  %v5912_v16 = vor.u32 %v6775_v56, %v5909_v22  ;;  %v5837_v28 = vld [vmem:[#allocation5 + $0xc68] sm:$0xf0]  ;;  %v6773_v29 = vld [vmem:[#allocation5 + $0xce4] sm:$0xf] }
 0x1c1   :  { %3951 = vmatpush.bf16.msrb.mxu3 %v5776_v38  ;;  %v5552_v38 = vor.u32 %v6685_v7, %v5549_v10  ;;  %v6037_v7 = vld [vmem:[#allocation5 + $0xdf8] sm:$0xf0]  ;;  %v5728_v10 = vor.u32 %v6729_v51, %v5725_v6  ;;  %v6029_v19 = vld [vmem:[#allocation5 + $0xde8] sm:$0xf0]  ;;  %v6787_v39 = vld [vmem:[#allocation5 + $0xd54] sm:$0xf] }
 0x1c2   :  { %3913 = vmatpush.bf16.msrb.mxu0 %v5576_v26  ;;  %v7247_v15 = vadd.f32 %v3699_v13, %v3687_v9  ;;  %v5541_v26 = vld [vmem:[#allocation5 + $0xa18] sm:$0xf0]  ;;  %v5901_v13 = vld [vmem:[#allocation5 + $0xce8] sm:$0xf0]  ;;  %v6751_v6 = vld [vmem:[#allocation5 + $0xc34] sm:$0xf] }
 0x1c3   :  { %3926 = vmatpush.bf16.msrb.mxu1 %v5640_v25  ;;  %v3675_v25 = vpop.f32.mrf.mxu1  ;;  %v5544_v31 = vor.u32 %v6683_v40, %v5541_v26  ;;  %v6755_v26 = vld [vmem:[#allocation5 + $0xc54] sm:$0xf]  ;;  %v5893_v24 = vld [vmem:[#allocation5 + $0xcd8] sm:$0xf0] }
 0x1c4   :  { %3939 = vmatpush.bf16.msrb.mxu2 %v5704_v53  ;;  %v5744_v53 = vor.u32 %v6733_v37, %v5741_v33  ;;  %v6789_v37 = vld [vmem:[#allocation5 + $0xd64] sm:$0xf]  ;;  %v5965_v33 = vld [vmem:[#allocation5 + $0xd68] sm:$0xf0]  ;;  %v6771_v25 = vld [vmem:[#allocation5 + $0xcd4] sm:$0xf] }
 0x1c5   :  { %3952 = vmatpush.bf16.msrb.mxu3 %v5768_v58  ;;  %v5733_v58 = vld [vmem:[#allocation5 + $0xb98] sm:$0xf0]  ;;  %v5968_v40 = vor.u32 %v6789_v37, %v5965_v33  ;;  %v5896_v47 = vor.u32 %v6771_v25, %v5893_v24  ;;  %v6747_v25 = vld [vmem:[#allocation5 + $0xc14] sm:$0xf] }
 0x1c6   :  { %3914 = vmatpush.bf16.msrb.mxu0 %v5568_v36  ;;  %v6697_v36 = vld [vmem:[#allocation5 + $0xa84] sm:$0xf]  ;;  %v5736_v30 = vor.u32 %v6731_v42, %v5733_v58  ;;  %v5957_v41 = vld [vmem:[#allocation5 + $0xd58] sm:$0xf0]  ;;  %v6803_v42 = vld [vmem:[#allocation5 + $0xdd4] sm:$0xf] }
 0x1c7   :  { %3927 = vmatpush.bf16.msrb.mxu1 %v5632_v48  ;;  %v6713_v48 = vld [vmem:[#allocation5 + $0xb04] sm:$0xf]  ;;  %v3701_v18 = vpop.f32.mrf.mxu3  ;;  %v6021_v58 = vld [vmem:[#allocation5 + $0xdd8] sm:$0xf0]  ;;  %v5960_v32 = vor.u32 %v6787_v39, %v5957_v41  ;;  %v6763_v24 = vld [vmem:[#allocation5 + $0xc94] sm:$0xf] }
 0x1c8   :  { %3940 = vmatpush.bf16.msrb.mxu2 %v5696_v50  ;;  %v3688_v50 = vpop.f32.mrf.mxu2  ;;  %v5813_v18 = vld [vmem:[#allocation5 + $0xc38] sm:$0xf0] }
 0x1c9   :  { %3953 = vmatpush.bf16.msrb.mxu3 %v5760_v52  ;;  %v6759_v52 = vld [vmem:[#allocation5 + $0xc74] sm:$0xf]  ;;  %v6801_v50 = vld [vmem:[#allocation5 + $0xdc4] sm:$0xf]  ;;  %v5877_v22 = vld [vmem:[#allocation5 + $0xcb8] sm:$0xf0] }
 0x1ca   :  { %3915 = vmatpush.bf16.msrb.mxu0 %v5560_v63  ;;  %v5600_v63 = vor.u32 %v6697_v36, %v5597_v46  ;;  %v5848_v14 = vor.u32 %v6759_v52, %v5845_v54  ;;  %v6024_v36 = vor.u32 %v6803_v42, %v6021_v58  ;;  %v5885_v46 = vld [vmem:[#allocation5 + $0xcc8] sm:$0xf0]  ;;  %v6767_v52 = vld [vmem:[#allocation5 + $0xcb4] sm:$0xf]  ;;  %v5861_v42 = vld [vmem:[#allocation5 + $0xc98] sm:$0xf0] }
 0x1cb   :  { %3928 = vmatpush.bf16.msrb.mxu1 %v5624_v27  ;;  %v5664_v27 = vor.u32 %v6713_v48, %v5661_v49  ;;  %v6785_v48 = vld [vmem:[#allocation5 + $0xd44] sm:$0xf]  ;;  %v6779_v58 = vld [vmem:[#allocation5 + $0xd14] sm:$0xf] }
 0x1cc   :  { %3941 = vmatpush.bf16.msrb.mxu2 %v5688_v3  ;;  %v6807_v3 = vld [vmem:[#allocation5 + $0xdf4] sm:$0xf] }
 0x1cd   :  { %3954 = vmatpush.bf16.msrb.mxu3 %v5752_v34  ;;  %v5976_v34 = vor.u32 %v6791_v62, %v5973_v23  ;;  %v6040_v9 = vor.u32 %v6807_v3, %v6037_v7  ;;  %v6783_v62 = vld [vmem:[#allocation5 + $0xd34] sm:$0xf]  ;;  %v5941_v23 = vld [vmem:[#allocation5 + $0xd38] sm:$0xf0]  ;;  %v5816_v7 = vor.u32 %v6751_v6, %v5813_v18 }
 0x1ce   :  { %3916 = vmatpush.bf16.msrb.mxu0 %v5552_v38  ;;  %v6805_v38 = vld [vmem:[#allocation5 + $0xde4] sm:$0xf]  ;;  %v6823_v18 = vld [vmem:[#allocation5 + $0xe74] sm:$0xf] }
 0x1cf   :  { %3929 = vmatpush.bf16.msrb.mxu1 %v5616_v12  ;;  %v5840_v12 = vor.u32 %v6757_v8, %v5837_v28  ;;  %v6765_v8 = vld [vmem:[#allocation5 + $0xca4] sm:$0xf] }
 0x1d0   :  { %3942 = vmatpush.bf16.msrb.mxu2 %v5680_v20  ;;  %v5904_v20 = vor.u32 %v6773_v29, %v5901_v13  ;;  %v5869_v29 = vld [vmem:[#allocation5 + $0xca8] sm:$0xf0] }
 0x1d1   :  { %3955 = vmatpush.bf16.msrb.mxu3 %v5744_v53  ;;  %v6032_v53 = vor.u32 %v6805_v38, %v6029_v19  ;;  %v5933_v13 = vld [vmem:[#allocation5 + $0xd28] sm:$0xf0]  ;;  %v6797_v38 = vld [vmem:[#allocation5 + $0xda4] sm:$0xf] }
 0x1d2   :  { %3917 = vmatpush.bf16.msrb.mxu0 %v5544_v31  ;;  %v5832_v31 = vor.u32 %v6755_v26, %v5829_v35  ;;  %v5997_v19 = vld [vmem:[#allocation5 + $0xda8] sm:$0xf0]  ;;  %v5872_v26 = vor.u32 %v6765_v8, %v5869_v29 }
 0x1d3   :  { %3930 = vmatpush.bf16.msrb.mxu1 %v5608_v44  ;;  %v6753_v44 = vld [vmem:[#allocation5 + $0xc44] sm:$0xf]  ;;  %v6000_v41 = vor.u32 %v6797_v38, %v5997_v19  ;;  %v6093_v8 = vld [vmem:[#allocation5 + $0xe68] sm:$0xf0] }
 0x1d4   :  { %3943 = vmatpush.bf16.msrb.mxu2 %v5672_v45  ;;  %v6769_v45 = vld [vmem:[#allocation5 + $0xcc4] sm:$0xf]  ;;  %v6157_v29 = vld [vmem:[#allocation5 + $0xee8] sm:$0xf0] }
 0x1d5   :  { %3956 = vmatpush.bf16.msrb.mxu3 %v5736_v30 }
 0x1d6   :  { %3918 = vmatpush.bf16.msrb.mxu0 %v5536_v57  ;;  %v3712_v49 = vpop.f32.mrf.mxu0 }
 0x1d7   :  { %3931 = vmatpush.bf16.msrb.mxu1 %v5600_v63  ;;  %v3713_v54 = vadd.f32 %v3712_v49, %v7247_v15  ;;  %v3725_v56 = vpop.f32.mrf.mxu1  ;;  %v6799_v63 = vld [vmem:[#allocation5 + $0xdb4] sm:$0xf]  ;;  %v5917_v49 = vld [vmem:[#allocation5 + $0xd08] sm:$0xf0] }
 0x1d8   :  { %3944 = vmatpush.bf16.msrb.mxu2 %v5664_v27  ;;  %v6005_v27 = vld [vmem:[#allocation5 + $0xdb8] sm:$0xf0] }
 0x1d9   :  { %3957 = vmatpush.bf16.msrb.mxu3 %v5728_v10  ;;  %3919 = vmatmul.bf16.vlgmr.msrb.gmra.mxu0 %v7170_v61  ;;  %v5821_v61 = vld [vmem:[#allocation5 + $0xc48] sm:$0xf0]  ;;  %v3726_v3 = vadd.f32 %v3725_v56, %v3713_v54  ;;  %v5880_v10 = vor.u32 %v6767_v52, %v5877_v22  ;;  %v6008_v15 = vor.u32 %v6799_v63, %v6005_v27  ;;  %v6101_v52 = vld [vmem:[#allocation5 + $0xe78] sm:$0xf0]  ;;  %v6839_v54 = vld [vmem:[#allocation5 + $0xef4] sm:$0xf] }
 0x1da   :  { %3963 = vmatpush.bf16.msra.mxu0 %v5848_v14  ;;  %3932 = vmatmul.bf16.vlgmr.msrb.gmra.mxu1 %v7174_v2  ;;  %v6013_v2 = vld [vmem:[#allocation5 + $0xdc8] sm:$0xf0]  ;;  %v5824_v30 = vor.u32 %v6753_v44, %v5821_v61  ;;  %v5944_v14 = vor.u32 %v6783_v62, %v5941_v23  ;;  %v6745_v61 = vld [vmem:[#allocation5 + $0xc04] sm:$0xf]  ;;  %v6855_v22 = vld [vmem:[#allocation5 + $0xf74] sm:$0xf] }
 0x1db   :  { %3976 = vmatpush.bf16.msra.mxu1 %v5912_v16  ;;  %3945 = vmatmul.bf16.vlgmr.msrb.gmra.mxu2 %v7172_v1  ;;  %v5949_v1 = vld [vmem:[#allocation5 + $0xd48] sm:$0xf0]  ;;  %v6016_v57 = vor.u32 %v6801_v50, %v6013_v2  ;;  %v6749_v16 = vld [vmem:[#allocation5 + $0xc24] sm:$0xf]  ;;  %v6229_v62 = vld [vmem:[#allocation5 + $0xf78] sm:$0xf0] }
 0x1dc   :  { %3989 = vmatpush.bf16.msra.mxu2 %v5976_v34  ;;  %3958 = vmatmul.bf16.vlgmr.msrb.gmra.mxu3 %v7176_v5  ;;  %v5888_v5 = vor.u32 %v6769_v45, %v5885_v46  ;;  %v5952_v51 = vor.u32 %v6785_v48, %v5949_v1  ;;  %v5805_v34 = vld [vmem:[#allocation5 + $0xc28] sm:$0xf0]  ;;  %v6761_v48 = vld [vmem:[#allocation5 + $0xc84] sm:$0xf]  ;;  %v6871_v27 = vld [vmem:[#allocation5 + $0xff4] sm:$0xf] }
 0x1dd   :  { %4002 = vmatpush.bf16.msra.mxu3 %v6040_v9  ;;  %v6781_v9 = vld [vmem:[#allocation5 + $0xd24] sm:$0xf]  ;;  %v5789_v45 = vld [vmem:[#allocation5 + $0xc08] sm:$0xf0] }
 0x1de   :  { %3964 = vmatpush.bf16.msra.mxu0 %v5840_v12  ;;  %v3738_v28 = vpop.f32.mrf.mxu2  ;;  %v5808_v12 = vor.u32 %v6749_v16, %v5805_v34  ;;  %v5936_v35 = vor.u32 %v6781_v9, %v5933_v13  ;;  %v5853_v1 = vld [vmem:[#allocation5 + $0xc88] sm:$0xf0]  ;;  %v6777_v50 = vld [vmem:[#allocation5 + $0xd04] sm:$0xf]  ;;  %v5792_v56 = vor.u32 %v6745_v61, %v5789_v45  ;;  %v6232_v16 = vor.u32 %v6855_v22, %v6229_v62  ;;  %v6261_v22 = vld [vmem:[#allocation5 + $0xfb8] sm:$0xf0] }
 0x1df   :  { %3977 = vmatpush.bf16.msra.mxu1 %v5904_v20  ;;  %v3739_v37 = vadd.f32 %v3738_v28, %v3726_v3  ;;  %v3751_v33 = vpop.f32.mrf.mxu3  ;;  %v3727_v39 = vpop.f32.mrf.mxu1  ;;  %v5856_v23 = vor.u32 %v6761_v48, %v5853_v1  ;;  %v5920_v63 = vor.u32 %v6777_v50, %v5917_v49  ;;  %v6293_v3 = vld [vmem:[#allocation5 + $0xff8] sm:$0xf0]  ;;  %v6821_v34 = vld [vmem:[#allocation5 + $0xe64] sm:$0xf]  ;;  %v6221_v13 = vld [vmem:[#allocation5 + $0xf68] sm:$0xf0] }
 0x1e0   :  { %3990 = vmatpush.bf16.msra.mxu2 %v5968_v40  ;;  %v3714_v40 = vpop.f32.mrf.mxu0  ;;  %v6837_v28 = vld [vmem:[#allocation5 + $0xee4] sm:$0xf]  ;;  %v6096_v38 = vor.u32 %v6821_v34, %v6093_v8  ;;  %v6213_v39 = vld [vmem:[#allocation5 + $0xf58] sm:$0xf0]  ;;  %v6141_v45 = vld [vmem:[#allocation5 + $0xec8] sm:$0xf0] }
 0x1e1   :  { %4003 = vmatpush.bf16.msra.mxu3 %v6032_v53  ;;  %v7254_v20 = vadd.f32 %v3751_v33, %v3739_v37  ;;  %v5797_v53 = vld [vmem:[#allocation5 + $0xc18] sm:$0xf0]  ;;  %v6853_v9 = vld [vmem:[#allocation5 + $0xf64] sm:$0xf]  ;;  %v6285_v33 = vld [vmem:[#allocation5 + $0xfe8] sm:$0xf0]  ;;  %v6160_v19 = vor.u32 %v6837_v28, %v6157_v29 }
 0x1e2   :  { %3965 = vmatpush.bf16.msra.mxu0 %v5832_v31  ;;  %v5925_v31 = vld [vmem:[#allocation5 + $0xd18] sm:$0xf0]  ;;  %v5800_v44 = vor.u32 %v6747_v25, %v5797_v53  ;;  %v6869_v37 = vld [vmem:[#allocation5 + $0xfe4] sm:$0xf]  ;;  %v6819_v40 = vld [vmem:[#allocation5 + $0xe54] sm:$0xf] }
 0x1e3   :  { %3978 = vmatpush.bf16.msra.mxu1 %v5896_v47  ;;  %v6795_v47 = vld [vmem:[#allocation5 + $0xd94] sm:$0xf]  ;;  %v5928_v46 = vor.u32 %v6779_v58, %v5925_v31  ;;  %v6288_v25 = vor.u32 %v6869_v37, %v6285_v33  ;;  %v6149_v53 = vld [vmem:[#allocation5 + $0xed8] sm:$0xf0]  ;;  %v6269_v48 = vld [vmem:[#allocation5 + $0xfc8] sm:$0xf0] }
 0x1e4   :  { %3991 = vmatpush.bf16.msra.mxu2 %v5960_v32  ;;  %v5989_v32 = vld [vmem:[#allocation5 + $0xd98] sm:$0xf0]  ;;  %v6815_v49 = vld [vmem:[#allocation5 + $0xe34] sm:$0xf]  ;;  %v6189_v34 = vld [vmem:[#allocation5 + $0xf28] sm:$0xf0] }
 0x1e5   :  { %4004 = vmatpush.bf16.msra.mxu3 %v6024_v36  ;;  %v5864_v36 = vor.u32 %v6763_v24, %v5861_v42  ;;  %v6851_v24 = vld [vmem:[#allocation5 + $0xf54] sm:$0xf]  ;;  %v6277_v42 = vld [vmem:[#allocation5 + $0xfd8] sm:$0xf0]  ;;  %v6253_v29 = vld [vmem:[#allocation5 + $0xfa8] sm:$0xf0] }
 0x1e6   :  { %3966 = vmatpush.bf16.msra.mxu0 %v5824_v30  ;;  %v3740_v2 = vpop.f32.mrf.mxu2  ;;  %v5992_v30 = vor.u32 %v6795_v47, %v5989_v32  ;;  %v6216_v47 = vor.u32 %v6851_v24, %v6213_v39  ;;  %v6817_v32 = vld [vmem:[#allocation5 + $0xe44] sm:$0xf]  ;;  %v6181_v24 = vld [vmem:[#allocation5 + $0xf18] sm:$0xf0]  ;;  %v6859_v39 = vld [vmem:[#allocation5 + $0xf94] sm:$0xf] }
 0x1e7   :  { %3979 = vmatpush.bf16.msra.mxu1 %v5888_v5  ;;  %v6793_v5 = vld [vmem:[#allocation5 + $0xd84] sm:$0xf]  ;;  %v3753_v6 = vpop.f32.mrf.mxu3 }
 0x1e8   :  { %3992 = vmatpush.bf16.msra.mxu2 %v5952_v51  ;;  %v5981_v51 = vld [vmem:[#allocation5 + $0xd88] sm:$0xf0] }
 0x1e9   :  { %4005 = vmatpush.bf16.msra.mxu3 %v6016_v57  ;;  %v6165_v57 = vld [vmem:[#allocation5 + $0xef8] sm:$0xf0] }
 0x1ea   :  { %3967 = vmatpush.bf16.msra.mxu0 %v5816_v7  ;;  %v5984_v7 = vor.u32 %v6793_v5, %v5981_v51  ;;  %v6069_v5 = vld [vmem:[#allocation5 + $0xe38] sm:$0xf0]  ;;  %v6831_v51 = vld [vmem:[#allocation5 + $0xeb4] sm:$0xf] }
 0x1eb   :  { %3980 = vmatpush.bf16.msra.mxu1 %v5880_v10  ;;  %v6104_v10 = vor.u32 %v6823_v18, %v6101_v52  ;;  %v6133_v52 = vld [vmem:[#allocation5 + $0xeb8] sm:$0xf0]  ;;  %v6072_v62 = vor.u32 %v6815_v49, %v6069_v5  ;;  %v6879_v49 = vld [vmem:[#allocation8 + $0x30] sm:$0xff]  ;;  %v6878_v5 = vld [vmem:[#allocation8 + $0x28] sm:$0xff] }
 0x1ec   :  { %3993 = vmatpush.bf16.msra.mxu2 %v5944_v14  ;;  %v6168_v14 = vor.u32 %v6839_v54, %v6165_v57  ;;  %v6847_v54 = vld [vmem:[#allocation5 + $0xf34] sm:$0xf] }
 0x1ed   :  { %4006 = vmatpush.bf16.msra.mxu3 %v6008_v15  ;;  %v6296_v15 = vor.u32 %v6871_v27, %v6293_v3  ;;  %v6863_v57 = vld [vmem:[#allocation5 + $0xfb4] sm:$0xf]  ;;  %v6061_v27 = vld [vmem:[#allocation5 + $0xe28] sm:$0xf0]  ;;  %v6829_v3 = vld [vmem:[#allocation5 + $0xea4] sm:$0xf] }
 0x1ee   :  { %3968 = vmatpush.bf16.msra.mxu0 %v5808_v12  ;;  %v6224_v12 = vor.u32 %v6853_v9, %v6221_v13 }
 0x1ef   :  { %3981 = vmatpush.bf16.msra.mxu1 %v5872_v26  ;;  %v6085_v26 = vld [vmem:[#allocation5 + $0xe58] sm:$0xf0] }
 0x1f0   :  { %3994 = vmatpush.bf16.msra.mxu2 %v5936_v35  ;;  %v6835_v35 = vld [vmem:[#allocation5 + $0xed4] sm:$0xf]  ;;  %v6088_v58 = vor.u32 %v6819_v40, %v6085_v26  ;;  %v6053_v40 = vld [vmem:[#allocation5 + $0xe18] sm:$0xf0] }
 0x1f1   :  { %4007 = vmatpush.bf16.msra.mxu3 %v6000_v41  ;;  %v6867_v41 = vld [vmem:[#allocation5 + $0xfd4] sm:$0xf]  ;;  %v6152_v31 = vor.u32 %v6835_v35, %v6149_v53 }
 0x1f2   :  { %3969 = vmatpush.bf16.msra.mxu0 %v5800_v44  ;;  %v6833_v44 = vld [vmem:[#allocation5 + $0xec4] sm:$0xf]  ;;  %v6280_v61 = vor.u32 %v6867_v41, %v6277_v42  ;;  %v6827_v26 = vld [vmem:[#allocation5 + $0xe94] sm:$0xf]  ;;  %v6245_v41 = vld [vmem:[#allocation5 + $0xf98] sm:$0xf0] }
 0x1f3   :  { %3982 = vmatpush.bf16.msra.mxu1 %v5864_v36  ;;  %v6849_v36 = vld [vmem:[#allocation5 + $0xf44] sm:$0xf]  ;;  %v6144_v2 = vor.u32 %v6833_v44, %v6141_v45  ;;  %v6843_v53 = vld [vmem:[#allocation5 + $0xf14] sm:$0xf]  ;;  %v6248_v44 = vor.u32 %v6859_v39, %v6245_v41 }
 0x1f4   :  { %3995 = vmatpush.bf16.msra.mxu2 %v5928_v46  ;;  %v6841_v45 = vld [vmem:[#allocation5 + $0xf04] sm:$0xf] }
 0x1f5   :  { %4008 = vmatpush.bf16.msra.mxu3 %v5992_v30  ;;  %v6885_v41 = vld [vmem:[#allocation8 + $0x60] sm:$0xff] }
 0x1f6   :  { %3970 = vmatpush.bf16.msra.mxu0 %v5792_v56  ;;  %v3764_v46 = vpop.f32.mrf.mxu0  ;;  %v6197_v56 = vld [vmem:[#allocation5 + $0xf38] sm:$0xf0] }
 0x1f7   :  { %3983 = vmatpush.bf16.msra.mxu1 %v5856_v23  ;;  %v3777_v50 = vpop.f32.mrf.mxu1  ;;  %v6200_v23 = vor.u32 %v6847_v54, %v6197_v56  ;;  %v6876_v56 = vld [vmem:[#allocation8 + $0x18] sm:$0xff] }
 0x1f8   :  { %3996 = vmatpush.bf16.msra.mxu2 %v5920_v63  ;;  %v6813_v63 = vld [vmem:[#allocation5 + $0xe24] sm:$0xf] }
 0x1f9   :  { %4009 = vmatpush.bf16.msra.mxu3 %v5984_v7  ;;  %3971 = vmatmul.bf16.vlgmr.msra.gmra.mxu0 %v7185_v55  ;;  %v6077_v55 = vld [vmem:[#allocation5 + $0xe48] sm:$0xf0]  ;;  %v6264_v7 = vor.u32 %v6863_v57, %v6261_v22  ;;  %v6064_v13 = vor.u32 %v6813_v63, %v6061_v27  ;;  %v6873_v27 = vld [vmem:[#allocation8] sm:$0xff] }
 0x1fa   :  { %4015 = vmatpush.bf16.msrb.mxu0 %v6104_v10  ;;  %3984 = vmatmul.bf16.vlgmr.msra.gmra.mxu1 %v7189_v60  ;;  %v6865_v60 = vld [vmem:[#allocation5 + $0xfc4] sm:$0xf]  ;;  %v6080_v1 = vor.u32 %v6817_v32, %v6077_v55  ;;  %v6045_v32 = vld [vmem:[#allocation5 + $0xe08] sm:$0xf0] }
 0x1fb   :  { %4028 = vmatpush.bf16.msrb.mxu1 %v6168_v14  ;;  %3997 = vmatmul.bf16.vlgmr.msra.gmra.mxu2 %v7187_v59  ;;  %v6205_v59 = vld [vmem:[#allocation5 + $0xf48] sm:$0xf0]  ;;  %v6272_v6 = vor.u32 %v6865_v60, %v6269_v48  ;;  %v6825_v55 = vld [vmem:[#allocation5 + $0xe84] sm:$0xf] }
 0x1fc   :  { %4041 = vmatpush.bf16.msrb.mxu2 %v6232_v16  ;;  %4010 = vmatmul.bf16.vlgmr.msra.gmra.mxu3 %v7191_v0  ;;  %v3765_v0 = vadd.f32 %v3764_v46, %v7254_v20  ;;  %v6208_v30 = vor.u32 %v6849_v36, %v6205_v59  ;;  %v6136_v20 = vor.u32 %v6831_v51, %v6133_v52  ;;  %v6125_v14 = vld [vmem:[#allocation5 + $0xea8] sm:$0xf0]  ;;  %v6845_v16 = vld [vmem:[#allocation5 + $0xf24] sm:$0xf] }
 0x1fd   :  { %4054 = vmatpush.bf16.msrb.mxu3 %v6296_v15  ;;  %v6861_v15 = vld [vmem:[#allocation5 + $0xfa4] sm:$0xf]  ;;  %v6173_v36 = vld [vmem:[#allocation5 + $0xf08] sm:$0xf0] }
 0x1fe   :  { %4016 = vmatpush.bf16.msrb.mxu0 %v6096_v38  ;;  %v3778_v18 = vadd.f32 %v3777_v50, %v3765_v0  ;;  %v3790_v10 = vpop.f32.mrf.mxu2  ;;  %v3766_v9 = vpop.f32.mrf.mxu0  ;;  %v6128_v38 = vor.u32 %v6829_v3, %v6125_v14  ;;  %v6256_v35 = vor.u32 %v6861_v15, %v6253_v29  ;;  %v6857_v46 = vld [vmem:[#allocation5 + $0xf84] sm:$0xf]  ;;  %v6237_v60 = vld [vmem:[#allocation5 + $0xf88] sm:$0xf0]  ;;  %v6176_v50 = vor.u32 %v6841_v45, %v6173_v36 }
 0x1ff   :  { %4029 = vmatpush.bf16.msrb.mxu1 %v6160_v19  ;;  %v3803_v28 = vpop.f32.mrf.mxu3  ;;  %v3779_v37 = vpop.f32.mrf.mxu1  ;;  %v6192_v19 = vor.u32 %v6845_v16, %v6189_v34  ;;  %v4067_v3 = vmax.f32 %v7241_v21, 0.0 }
 0x200   :  { %4042 = vmatpush.bf16.msrb.mxu2 %v6224_v12  ;;  %v3791_v8 = vadd.f32 %v3790_v10, %v3778_v18  ;;  %v6811_v12 = vld [vmem:[#allocation5 + $0xe14] sm:$0xf]  ;;  %v6877_v18 = vld [vmem:[#allocation8 + $0x20] sm:$0xff] }
 0x201   :  { %4055 = vmatpush.bf16.msrb.mxu3 %v6288_v25  ;;  %v6117_v25 = vld [vmem:[#allocation5 + $0xe98] sm:$0xf0]  ;;  %v6056_v42 = vor.u32 %v6811_v12, %v6053_v40 }
 0x202   :  { %4017 = vmatpush.bf16.msrb.mxu0 %v6088_v58  ;;  %v3804_v33 = vadd.f32 %v3803_v28, %v3791_v8  ;;  %v6120_v58 = vor.u32 %v6827_v26, %v6117_v25  ;;  %v6888_v26 = vld [vmem:[#allocation8 + $0x78] sm:$0xff]  ;;  %v6887_v25 = vld [vmem:[#allocation8 + $0x70] sm:$0xff] }
 0x203   :  { %4030 = vmatpush.bf16.msrb.mxu1 %v6152_v31  ;;  %v6184_v31 = vor.u32 %v6843_v53, %v6181_v24  ;;  %v6886_v53 = vld [vmem:[#allocation8 + $0x68] sm:$0xff] }
 0x204   :  { %4043 = vmatpush.bf16.msrb.mxu2 %v6216_v47  ;;  %v6809_v47 = vld [vmem:[#allocation5 + $0xe04] sm:$0xf] }
 0x205   :  { %4056 = vmatpush.bf16.msrb.mxu3 %v6280_v61  ;;  %v6109_v61 = vld [vmem:[#allocation5 + $0xe88] sm:$0xf0]  ;;  %v6048_v0 = vor.u32 %v6809_v47, %v6045_v32 }
 0x206   :  { %4018 = vmatpush.bf16.msrb.mxu0 %v6080_v1  ;;  %v3792_v59 = vpop.f32.mrf.mxu2  ;;  %v6112_v1 = vor.u32 %v6825_v55, %v6109_v61  ;;  %v6882_v32 = vld [vmem:[#allocation8 + $0x48] sm:$0xff] }
 0x207   :  { %4031 = vmatpush.bf16.msrb.mxu1 %v6144_v2  ;;  %v3805_v48 = vpop.f32.mrf.mxu3  ;;  %v6240_v2 = vor.u32 %v6857_v46, %v6237_v60  ;;  %v6881_v59 = vld [vmem:[#allocation8 + $0x40] sm:$0xff] }
 0x208   :  { %4044 = vmatpush.bf16.msrb.mxu2 %v6208_v30  ;;  %v6880_v30 = vld [vmem:[#allocation8 + $0x38] sm:$0xff] }
 0x209   :  { %4057 = vmatpush.bf16.msrb.mxu3 %v6272_v6 }
 0x20a   :  { %4019 = vmatpush.bf16.msrb.mxu0 %v6072_v62 }
 0x20b   :  { %4032 = vmatpush.bf16.msrb.mxu1 %v6136_v20 }
 0x20c   :  { %4045 = vmatpush.bf16.msrb.mxu2 %v6200_v23 }
 0x20d   :  { %4058 = vmatpush.bf16.msrb.mxu3 %v6264_v7  ;;  %v4069_v7 = vpack.c.bf16 %v4067_v3, %v4067_v3 }
 0x20e   :  { %4020 = vmatpush.bf16.msrb.mxu0 %v6064_v13 }
 0x20f   :  { %4033 = vmatpush.bf16.msrb.mxu1 %v6128_v38 }
 0x210   :  { %4046 = vmatpush.bf16.msrb.mxu2 %v6192_v19 }
 0x211   :  { %4059 = vmatpush.bf16.msrb.mxu3 %v6256_v35 }
 0x212   :  { %4021 = vmatpush.bf16.msrb.mxu0 %v6056_v42  ;;  %v6884_v42 = vld [vmem:[#allocation8 + $0x58] sm:$0xff] }
 0x213   :  { %4034 = vmatpush.bf16.msrb.mxu1 %v6120_v58 }
 0x214   :  { %4047 = vmatpush.bf16.msrb.mxu2 %v6184_v31  ;;  %v6883_v31 = vld [vmem:[#allocation8 + $0x50] sm:$0xff] }
 0x215   :  { %4060 = vmatpush.bf16.msrb.mxu3 %v6248_v44 }
 0x216   :  { %4022 = vmatpush.bf16.msrb.mxu0 %v6048_v0  ;;  %v3816_v51 = vpop.f32.mrf.mxu0 }
 0x217   :  { %4035 = vmatpush.bf16.msrb.mxu1 %v6112_v1  ;;  %v3817_v6 = vadd.f32 %v3816_v51, %v3804_v33  ;;  %v3829_v52 = vpop.f32.mrf.mxu1 }
 0x218   :  { %4048 = vmatpush.bf16.msrb.mxu2 %v6176_v50 }
 0x219   :  { %4061 = vmatpush.bf16.msrb.mxu3 %v6240_v2  ;;  %4023 = vmatmul.bf16.vlgmr.msrb.gmra.mxu0 %v7200_v4  ;;  %v3830_v54 = vadd.f32 %v3829_v52, %v3817_v6 }
 0x21a   :  { %4203 = vmatpush.bf16.msra.mxu0 %v6880_v30  ;;  %4036 = vmatmul.bf16.vlgmr.msrb.gmra.mxu1 %v7204_v43  ;;  %v6875_v43 = vld [vmem:[#allocation8 + $0x10] sm:$0xff] }
 0x21b   :  { %4049 = vmatmul.bf16.vlgmr.msrb.gmra.mxu2 %v7202_v11  ;;  %4216 = vmatpush.bf16.msra.mxu1 %v6888_v26 }
 0x21c   :  { %4062 = vmatmul.bf16.vlgmr.msrb.gmra.mxu3 %v7206_v17  ;;  %v6874_v17 = vld [vmem:[#allocation8 + $0x8] sm:$0xff] }
 0x21e   :  { %4204 = vmatpush.bf16.msra.mxu0 %v6879_v49  ;;  %v3842_v57 = vpop.f32.mrf.mxu2  ;;  %v3818_v4 = vpop.f32.mrf.mxu0 }
 0x21f   :  { %v3843_v22 = vadd.f32 %v3842_v57, %v3830_v54  ;;  %v3855_v62 = vpop.f32.mrf.mxu3  ;;  %v3831_v20 = vpop.f32.mrf.mxu1  ;;  %4217 = vmatpush.bf16.msra.mxu1 %v6887_v25 }
 0x221   :  { %v3856_v11 = vadd.f32 %v3855_v62, %v3843_v22 }
 0x222   :  { %4205 = vmatpush.bf16.msra.mxu0 %v6878_v5 }
 0x223   :  { %4218 = vmatpush.bf16.msra.mxu1 %v6886_v53 }
 0x226   :  { %4206 = vmatpush.bf16.msra.mxu0 %v6877_v18  ;;  %v3844_v23 = vpop.f32.mrf.mxu2 }
 0x227   :  { %v3857_v63 = vpop.f32.mrf.mxu3  ;;  %4219 = vmatpush.bf16.msra.mxu1 %v6885_v41 }
 0x228   :  { %v6899_v63 = vld [vmem:[#allocation10] ss:$0 sm:$0xff] }
 0x22a   :  { %4207 = vmatpush.bf16.msra.mxu0 %v6876_v56 }
 0x22b   :  { %4220 = vmatpush.bf16.msra.mxu1 %v6884_v42 }
 0x22e   :  { %4208 = vmatpush.bf16.msra.mxu0 %v6875_v43 }
 0x22f   :  { %4221 = vmatpush.bf16.msra.mxu1 %v6883_v31 }
 0x232   :  { %4209 = vmatpush.bf16.msra.mxu0 %v6874_v17 }
 0x233   :  { %4222 = vmatpush.bf16.msra.mxu1 %v6882_v32 }
 0x236   :  { %4210 = vmatpush.bf16.msra.mxu0 %v6873_v27  ;;  %v3868_v10 = vpop.f32.mrf.mxu0 }
 0x237   :  { %v3869_v14 = vadd.f32 %v3868_v10, %v3856_v11  ;;  %v3881_v16 = vpop.f32.mrf.mxu1  ;;  %4223 = vmatpush.bf16.msra.mxu1 %v6881_v59 }
 0x239   :  { %4211 = vmatmul.bf16.vlgmr.msra.gmra.mxu0 %v4069_v7  ;;  %v3882_v34 = vadd.f32 %v3881_v16, %v3869_v14 }
 0x23e   :  { %v3894_v8 = vpop.f32.mrf.mxu2  ;;  %v3870_v29 = vpop.f32.mrf.mxu0 }
 0x23f   :  { %v3895_v28 = vadd.f32 %v3894_v8, %v3882_v34  ;;  %v3907_v15 = vpop.f32.mrf.mxu3  ;;  %v3883_v9 = vpop.f32.mrf.mxu1 }
 0x241   :  { %v3908_v13 = vadd.f32 %v3907_v15, %v3895_v28 }
 0x246   :  { %v3896_v37 = vpop.f32.mrf.mxu2 }
 0x247   :  { %v3909_v33 = vpop.f32.mrf.mxu3 }
 0x256   :  { %v3920_v38 = vpop.f32.mrf.mxu0 }
 0x257   :  { %v3933_v19 = vpop.f32.mrf.mxu1  ;;  %v3921_v55 = vadd.f32 %v3920_v38, %v3908_v13 }
 0x259   :  { %v3934_v46 = vadd.f32 %v3933_v19, %v3921_v55 }
 0x25e   :  { %v3946_v12 = vpop.f32.mrf.mxu2  ;;  %v3922_v21 = vpop.f32.mrf.mxu0 }
 0x25f   :  { %v3959_v40 = vpop.f32.mrf.mxu3  ;;  %v3935_v35 = vpop.f32.mrf.mxu1  ;;  %v3947_v60 = vadd.f32 %v3946_v12, %v3934_v46 }
 0x261   :  { %v3960_v1 = vadd.f32 %v3959_v40, %v3947_v60 }
 0x266   :  { %v3948_v24 = vpop.f32.mrf.mxu2 }
 0x267   :  { %v3961_v39 = vpop.f32.mrf.mxu3 }
 0x276   :  { %v3972_v58 = vpop.f32.mrf.mxu0 }
 0x277   :  { %v3985_v47 = vpop.f32.mrf.mxu1  ;;  %v3973_v50 = vadd.f32 %v3972_v58, %v3960_v1 }
 0x279   :  { %v3986_v2 = vadd.f32 %v3985_v47, %v3973_v50 }
 0x27e   :  { %v3998_v44 = vpop.f32.mrf.mxu2  ;;  %v3974_v45 = vpop.f32.mrf.mxu0 }
 0x27f   :  { %v4011_v61 = vpop.f32.mrf.mxu3  ;;  %v3987_v36 = vpop.f32.mrf.mxu1  ;;  %v3999_v30 = vadd.f32 %v3998_v44, %v3986_v2 }
 0x281   :  { %v4012_v49 = vadd.f32 %v4011_v61, %v3999_v30 }
 0x286   :  { %v4000_v48 = vpop.f32.mrf.mxu2 }
 0x287   :  { %v4013_v0 = vpop.f32.mrf.mxu3 }
 0x296   :  { %v4024_v5 = vpop.f32.mrf.mxu0 }
 0x297   :  { %v4037_v51 = vpop.f32.mrf.mxu1  ;;  %v4025_v6 = vadd.f32 %v4024_v5, %v4012_v49 }
 0x299   :  { %v4038_v18 = vadd.f32 %v4037_v51, %v4025_v6 }
 0x29e   :  { %v4050_v52 = vpop.f32.mrf.mxu2  ;;  %v4026_v57 = vpop.f32.mrf.mxu0 }
 0x29f   :  { %v4051_v54 = vadd.f32 %v4050_v52, %v4038_v18  ;;  %v4063_v56 = vpop.f32.mrf.mxu3  ;;  %v4039_v22 = vpop.f32.mrf.mxu1 }
 0x2a1   :  { %v4064_v62 = vadd.f32 %v4063_v56, %v4051_v54 }
 0x2a3   :  { %v4068_v4 = vmax.f32 %v4064_v62, 0.0 }
 0x2a5   :  { %v4070_v43 = vpack.c.bf16 %v4068_v4, %v4068_v4 }
 0x2a6   :  { %v4052_v20 = vpop.f32.mrf.mxu2 }
 0x2a7   :  { %v4065_v11 = vpop.f32.mrf.mxu3  ;;  %4224 = vmatmul.bf16.vlgmr.msra.gmra.mxu1 %v4070_v43 }
 0x2b6   :  { %v4212_v17 = vpop.f32.mrf.mxu0 }
 0x2b7   :  { %v4213_v27 = vadd.f32 %v6899_v63, %v4212_v17 }
 0x2be   :  { %v4214_v23 = vpop.f32.mrf.mxu0 }
 0x324   :  { %v4225_v3 = vpop.f32.mrf.mxu1 }
 0x325   :  { %v4226_v7 = vadd.f32 %v4225_v3, %v4213_v27 }
 0x327   :  { %4229 = vst [vmem:[#allocation11] sm:$0xff] %v4226_v7 }
 0x328   :  { %4240 = dma.vmem_to_hbm [thread:$0]  %s4236_s4, 128, %s4238_s21, [#allocation4]  }
 0x32c   :  { %v4227_v10 = vpop.f32.mrf.mxu1 }
 0x32d   :  { %7051 = dma.done.wait [#allocation4], 128  }
 0x32e   :  { %7052 = vsyncadd [#allocation4], 4294967168 }
 0x32f   :  { %4245 = vsyncpa [#allocation3], 1 }
 0x330   :  { %4246 = vsyncpa [#allocation6], 1 }
 0x331   :  { %4247 = vsyncpa [#allocation9], 1 }
 0x332   :  { %4248 = vsyncpa [#allocation4], 1 }

</bundles_post_ra>
